<compile_context>
chip_gen: v6e
topology: v6e:2x2x1
jax: 0.10.0
libtpu: 0.0.40
codegen_flags: <defaults>
</compile_context>

<pallas_src>
import functools

import jax
import jax.numpy as jnp
import numpy as np
from jax import lax
from jax.experimental import pallas as pl
from jax.experimental.pallas import tpu as pltpu


def _vicreg_kernel(x_ref, y_ref, out_ref,
                   gram_x, gram_y, sum_x, sum_y, dsq, stage,
                   *, batch: int):
    i = pl.program_id(0)
    nsteps = pl.num_programs(0)
    D = gram_x.shape[-1]

    # Contract over the batch (sublane) dim -> (D, D); lowers to the
    # transposed-LHS MXU feed, no XLU transpose of the (TB, D) tile.
    dims = (((0,), (0,)), ((), ()))

    # ---- init resident accumulators on the first batch tile ----
    @pl.when(i == 0)
    def _init():
        gram_x[...] = jnp.zeros_like(gram_x)
        gram_y[...] = jnp.zeros_like(gram_y)
        sum_x[...] = jnp.zeros_like(sum_x)
        sum_y[...] = jnp.zeros_like(sum_y)
        dsq[...] = jnp.zeros_like(dsq)
        stage[...] = jnp.zeros_like(stage)

    # ---- accumulate this batch tile ----
    x = x_ref[...]                       # (TB, D), native dtype feeds the MXU
    y = y_ref[...]
    xf = x.astype(jnp.float32)           # per-tile f32 for VALU statistics
    yf = y.astype(jnp.float32)

    gram_x[...] += lax.dot_general(x, x, dims, preferred_element_type=jnp.float32)
    gram_y[...] += lax.dot_general(y, y, dims, preferred_element_type=jnp.float32)

    sum_x[...] += jnp.sum(xf, axis=0, keepdims=True)
    sum_y[...] += jnp.sum(yf, axis=0, keepdims=True)

    d = xf - yf
    dsq[...] += jnp.sum(d * d, axis=0, keepdims=True)   # (1, D)

    # ---- finalize on the last batch tile ----
    @pl.when(i == nsteps - 1)
    def _finalize():
        nB = jnp.float32(batch)
        inv_B = jnp.float32(1.0 / batch)
        inv_Bm1 = jnp.float32(1.0 / (batch - 1))
        inv_D = jnp.float32(1.0 / D)

        mu_x = sum_x[...] * inv_B                        # (1, D)
        mu_y = sum_y[...] * inv_B

        # diag-extraction mask, built once (VPU, finalize only)
        row = lax.broadcasted_iota(jnp.int32, (D, D), 0)
        col = lax.broadcasted_iota(jnp.int32, (D, D), 1)
        eye = row == col

        # outer product mu mu^T via an MXU-friendly (8, D)^T (8, D) matmul:
        # stage holds [mu; 0; ...; 0], so stage^T stage == mu mu^T.
        stage[0:1, :] = mu_x
        outer_x = lax.dot_general(stage[...], stage[...], dims,
                                  preferred_element_type=jnp.float32)
        cov_x = (gram_x[...] - nB * outer_x) * inv_Bm1
        # unbiased per-feature variance == diagonal of the covariance matrix
        var_x = jnp.sum(jnp.where(eye, cov_x, 0.0), axis=0, keepdims=True)
        # off-diagonal sum of squares = total - diagonal
        off_x = jnp.sum(cov_x * cov_x) - jnp.sum(var_x * var_x)

        stage[0:1, :] = mu_y
        outer_y = lax.dot_general(stage[...], stage[...], dims,
                                  preferred_element_type=jnp.float32)
        cov_y = (gram_y[...] - nB * outer_y) * inv_Bm1
        var_y = jnp.sum(jnp.where(eye, cov_y, 0.0), axis=0, keepdims=True)
        off_y = jnp.sum(cov_y * cov_y) - jnp.sum(var_y * var_y)

        std_x = jnp.sqrt(var_x + jnp.float32(0.0001))
        std_y = jnp.sqrt(var_y + jnp.float32(0.0001))
        std_loss = (jnp.sum(jnp.maximum(1.0 - std_x, 0.0))
                    + jnp.sum(jnp.maximum(1.0 - std_y, 0.0))) * inv_D * 0.5
        cov_loss = (off_x + off_y) * inv_D

        out_ref[0] = jnp.sum(dsq[...]) * inv_B * inv_D   # MSE (invariance)
        out_ref[1] = std_loss
        out_ref[2] = cov_loss


def _pick_batch_tile(batch: int) -> int:
    # Prefer 256 (fills v6e/v7x MXU contraction), then 128 (v5e), then the
    # largest multiple-of-8 divisor; otherwise take the whole batch.
    for tb in (256, 128, 64, 32, 16, 8):
        if batch % tb == 0:
            return tb
    return batch


def vicreg_pallas(x, y, *, batch_tile=None):
    """x, y: (B, D) arrays.  Returns a dict matching the PyTorch module."""
    assert x.shape == y.shape and x.ndim == 2
    B, D = x.shape
    assert B >= 2, "VICReg needs batch >= 2 (unbiased variance divides by B-1)"

    TB = _pick_batch_tile(B) if batch_tile is None else int(batch_tile)
    assert B % TB == 0, f"batch {B} must be divisible by batch tile {TB}"
    num_tiles = B // TB
    itemsize = jnp.dtype(x.dtype).itemsize

    kernel = functools.partial(_vicreg_kernel, batch=B)

    grid_spec = pltpu.PrefetchScalarGridSpec(
        num_scalar_prefetch=0,
        grid=(num_tiles,),
        in_specs=[pl.BlockSpec((TB, D), lambda i: (i, 0)),
                  pl.BlockSpec((TB, D), lambda i: (i, 0))],
        out_specs=pl.BlockSpec(memory_space=pltpu.SMEM),
        scratch_shapes=[
            pltpu.VMEM((D, D), jnp.float32),   # gram_x accumulator
            pltpu.VMEM((D, D), jnp.float32),   # gram_y accumulator
            pltpu.VMEM((1, D), jnp.float32),   # sum_x
            pltpu.VMEM((1, D), jnp.float32),   # sum_y
            pltpu.VMEM((1, D), jnp.float32),   # per-feature sum((x - y)^2)
            pltpu.VMEM((8, D), jnp.float32),   # staging rows for mu mu^T
        ],
    )

    # VMEM budget: double-buffered input tiles + resident accumulators +
    # finalize-time (D, D) temporaries (outer, cov, mask, squares).
    vmem_need = (2 * 2 * TB * D * itemsize     # x/y tiles, double-buffered
                 + 2 * D * D * 4               # Gram accumulators
                 + 6 * D * D * 4               # finalize temporaries
                 + (3 + 8) * D * 4)            # vector stats + staging
    vmem_limit = int(min(max(vmem_need + (8 << 20), 32 << 20), 128 << 20))

    cost = pl.CostEstimate(
        flops=4 * B * D * D + 12 * B * D + 10 * D * D,
        transcendentals=2 * D,
        bytes_accessed=2 * B * D * itemsize + 3 * 4,
    )

    losses = pl.pallas_call(
        kernel,
        out_shape=jax.ShapeDtypeStruct((3,), jnp.float32),
        grid_spec=grid_spec,
        compiler_params=pltpu.CompilerParams(
            dimension_semantics=("arbitrary",),   # batch axis is a reduction
            vmem_limit_bytes=vmem_limit,
        ),
        cost_estimate=cost,
    )(x, y)

    repr_loss, std_loss, cov_loss = losses[0], losses[1], losses[2]
    inv_w, var_w, cov_w = 5.0, 5.0, 1.0
    total = inv_w * repr_loss + var_w * std_loss + cov_w * cov_loss
    return {
        "loss": total,
        "not_weighted_inv": repr_loss,
        "not_weighted_var": std_loss,
        "not_weighted_cov": cov_loss,
        "weighted_inv": inv_w * repr_loss,
        "weighted_var": var_w * std_loss,
        "weighted_cov": cov_w * cov_loss,
    }


def _vicreg_ref_np(x, y):
    """float64 numpy reference matching the PyTorch module."""
    x = np.asarray(x, dtype=np.float64)
    y = np.asarray(y, dtype=np.float64)
    B, D = x.shape
    repr_loss = np.mean((x - y) ** 2)
    xm = x - x.mean(axis=0)
    ym = y - y.mean(axis=0)
    std_x = np.sqrt(xm.var(axis=0, ddof=1) + 0.0001)
    std_y = np.sqrt(ym.var(axis=0, ddof=1) + 0.0001)
    std_loss = np.mean(np.maximum(1 - std_x, 0)) / 2 + np.mean(np.maximum(1 - std_y, 0)) / 2
    cov_x = xm.T @ xm / (B - 1)
    cov_y = ym.T @ ym / (B - 1)
    mask = 1.0 - np.eye(D)
    cov_loss = np.sum((cov_x * mask) ** 2) / D + np.sum((cov_y * mask) ** 2) / D
    return 5.0 * repr_loss + 5.0 * std_loss + 1.0 * cov_loss


if __name__ == "__main__":
    key = jax.random.PRNGKey(0)
    kx, ky = jax.random.split(key)
    B, D = 32, 256  # (batch, embedding) -- small, multi-tile test
    x = jax.random.normal(kx, (B, D), dtype=jnp.float32)
    y = jax.random.normal(ky, (B, D), dtype=jnp.float32)

    # batch_tile=8 -> 4 grid steps, exercising the accumulate/finalize path.
    out = vicreg_pallas(x, y, batch_tile=8)
    jax.block_until_ready(out["loss"])

    ref = _vicreg_ref_np(x, y)
    got = float(out["loss"])
    assert np.allclose(got, ref, rtol=3e-3, atol=1e-3), (got, ref)

    # Single-tile path (whole batch in one step) must also agree.
    out1 = vicreg_pallas(x, y)
    jax.block_until_ready(out1["loss"])
    assert np.allclose(float(out1["loss"]), ref, rtol=3e-3, atol=1e-3), (float(out1["loss"]), ref)

    print("KERNEL_OK")
</pallas_src>

<mosaic_0001>
module attributes {stable_mosaic.version = 11 : i64} {
  func.func @_vicreg_kernel(%arg0: i32, %arg1: memref<8x256xf32, #tpu.memory_space<vmem>>, %arg2: memref<8x256xf32, #tpu.memory_space<vmem>>, %arg3: memref<3xf32, #tpu.memory_space<smem>>, %arg4: memref<256x256xf32, #tpu.memory_space<vmem>>, %arg5: memref<256x256xf32, #tpu.memory_space<vmem>>, %arg6: memref<1x256xf32, #tpu.memory_space<vmem>>, %arg7: memref<1x256xf32, #tpu.memory_space<vmem>>, %arg8: memref<1x256xf32, #tpu.memory_space<vmem>>, %arg9: memref<8x256xf32, #tpu.memory_space<vmem>>) attributes {dimension_semantics = [#tpu.dimension_semantics<arbitrary>], iteration_bounds = array<i64: 4>, scalar_prefetch = 0 : i64, scratch_operands = 6 : i64, tpu.core_type = #tpu.core_type<tc>, window_params = [{transform_indices = @transform_0, window_bounds = array<i64: 8, 256>}, {transform_indices = @transform_1, window_bounds = array<i64: 8, 256>}, {transform_indices = @transform_2, window_bounds = array<i64: 3>}]} {
    %c0_i32 = arith.constant 0 : i32
    %0 = arith.cmpi eq, %arg0, %c0_i32 : i32
    %1 = arith.extui %0 : i1 to i32
    %c0_i32_0 = arith.constant 0 : i32
    %2 = arith.cmpi ne, %1, %c0_i32_0 : i32
    scf.if %2 {
      %cst_29 = arith.constant 0.000000e+00 : f32
      %33 = vector.broadcast %cst_29 : f32 to vector<256x256xf32>
      %c0_30 = arith.constant 0 : index
      %c0_31 = arith.constant 0 : index
      %34 = vector.load %arg4[%c0_30, %c0_31] : memref<256x256xf32, #tpu.memory_space<vmem>>, vector<256x256xf32>
      tpu.vector_store %arg4[%c0_30, %c0_31], %33 {strides = array<i32>} : memref<256x256xf32, #tpu.memory_space<vmem>>, vector<256x256xf32>,
      %cst_32 = arith.constant 0.000000e+00 : f32
      %35 = vector.broadcast %cst_32 : f32 to vector<256x256xf32>
      %c0_33 = arith.constant 0 : index
      %c0_34 = arith.constant 0 : index
      %36 = vector.load %arg5[%c0_33, %c0_34] : memref<256x256xf32, #tpu.memory_space<vmem>>, vector<256x256xf32>
      tpu.vector_store %arg5[%c0_33, %c0_34], %35 {strides = array<i32>} : memref<256x256xf32, #tpu.memory_space<vmem>>, vector<256x256xf32>,
      %cst_35 = arith.constant 0.000000e+00 : f32
      %37 = vector.broadcast %cst_35 : f32 to vector<1x256xf32>
      %c0_36 = arith.constant 0 : index
      %c0_37 = arith.constant 0 : index
      %38 = vector.load %arg6[%c0_36, %c0_37] : memref<1x256xf32, #tpu.memory_space<vmem>>, vector<1x256xf32>
      tpu.vector_store %arg6[%c0_36, %c0_37], %37 {strides = array<i32>} : memref<1x256xf32, #tpu.memory_space<vmem>>, vector<1x256xf32>,
      %cst_38 = arith.constant 0.000000e+00 : f32
      %39 = vector.broadcast %cst_38 : f32 to vector<1x256xf32>
      %c0_39 = arith.constant 0 : index
      %c0_40 = arith.constant 0 : index
      %40 = vector.load %arg7[%c0_39, %c0_40] : memref<1x256xf32, #tpu.memory_space<vmem>>, vector<1x256xf32>
      tpu.vector_store %arg7[%c0_39, %c0_40], %39 {strides = array<i32>} : memref<1x256xf32, #tpu.memory_space<vmem>>, vector<1x256xf32>,
      %cst_41 = arith.constant 0.000000e+00 : f32
      %41 = vector.broadcast %cst_41 : f32 to vector<1x256xf32>
      %c0_42 = arith.constant 0 : index
      %c0_43 = arith.constant 0 : index
      %42 = vector.load %arg8[%c0_42, %c0_43] : memref<1x256xf32, #tpu.memory_space<vmem>>, vector<1x256xf32>
      tpu.vector_store %arg8[%c0_42, %c0_43], %41 {strides = array<i32>} : memref<1x256xf32, #tpu.memory_space<vmem>>, vector<1x256xf32>,
      %cst_44 = arith.constant 0.000000e+00 : f32
      %43 = vector.broadcast %cst_44 : f32 to vector<8x256xf32>
      %c0_45 = arith.constant 0 : index
      %c0_46 = arith.constant 0 : index
      %44 = vector.load %arg9[%c0_45, %c0_46] : memref<8x256xf32, #tpu.memory_space<vmem>>, vector<8x256xf32>
      tpu.vector_store %arg9[%c0_45, %c0_46], %43 {strides = array<i32>} : memref<8x256xf32, #tpu.memory_space<vmem>>, vector<8x256xf32>,
    } else {
    }
    %c0 = arith.constant 0 : index
    %c0_1 = arith.constant 0 : index
    %3 = vector.load %arg1[%c0, %c0_1] : memref<8x256xf32, #tpu.memory_space<vmem>>, vector<8x256xf32>
    %c0_2 = arith.constant 0 : index
    %c0_3 = arith.constant 0 : index
    %4 = vector.load %arg2[%c0_2, %c0_3] : memref<8x256xf32, #tpu.memory_space<vmem>>, vector<8x256xf32>
    %c0_4 = arith.constant 0 : index
    %c0_5 = arith.constant 0 : index
    %5 = vector.load %arg4[%c0_4, %c0_5] : memref<256x256xf32, #tpu.memory_space<vmem>>, vector<256x256xf32>
    %cst = arith.constant dense<0.000000e+00> : vector<256x256xf32>
    %6 = tpu.matmul %3, %3, %cst {dimension_numbers = #tpu.dot_dimension_numbers<[0], [0], [1], [1], [0, 1, 1, 1], [], []>} : vector<8x256xf32>, vector<8x256xf32>, vector<256x256xf32> -> vector<256x256xf32>
    %7 = arith.addf %5, %6 : vector<256x256xf32>
    %c0_6 = arith.constant 0 : index
    %c0_7 = arith.constant 0 : index
    %8 = vector.load %arg4[%c0_6, %c0_7] : memref<256x256xf32, #tpu.memory_space<vmem>>, vector<256x256xf32>
    tpu.vector_store %arg4[%c0_6, %c0_7], %7 {strides = array<i32>} : memref<256x256xf32, #tpu.memory_space<vmem>>, vector<256x256xf32>,
    %c0_8 = arith.constant 0 : index
    %c0_9 = arith.constant 0 : index
    %9 = vector.load %arg5[%c0_8, %c0_9] : memref<256x256xf32, #tpu.memory_space<vmem>>, vector<256x256xf32>
    %cst_10 = arith.constant dense<0.000000e+00> : vector<256x256xf32>
    %10 = tpu.matmul %4, %4, %cst_10 {dimension_numbers = #tpu.dot_dimension_numbers<[0], [0], [1], [1], [0, 1, 1, 1], [], []>} : vector<8x256xf32>, vector<8x256xf32>, vector<256x256xf32> -> vector<256x256xf32>
    %11 = arith.addf %9, %10 : vector<256x256xf32>
    %c0_11 = arith.constant 0 : index
    %c0_12 = arith.constant 0 : index
    %12 = vector.load %arg5[%c0_11, %c0_12] : memref<256x256xf32, #tpu.memory_space<vmem>>, vector<256x256xf32>
    tpu.vector_store %arg5[%c0_11, %c0_12], %11 {strides = array<i32>} : memref<256x256xf32, #tpu.memory_space<vmem>>, vector<256x256xf32>,
    %c0_13 = arith.constant 0 : index
    %c0_14 = arith.constant 0 : index
    %13 = vector.load %arg6[%c0_13, %c0_14] : memref<1x256xf32, #tpu.memory_space<vmem>>, vector<1x256xf32>
    %cst_15 = arith.constant dense<0.000000e+00> : vector<256xf32>
    %14 = vector.multi_reduction <add>, %3, %cst_15 [0] : vector<8x256xf32> to vector<256xf32>
    %15 = vector.shape_cast %14 : vector<256xf32> to vector<1x256xf32>
    %16 = arith.addf %13, %15 : vector<1x256xf32>
    %c0_16 = arith.constant 0 : index
    %c0_17 = arith.constant 0 : index
    %17 = vector.load %arg6[%c0_16, %c0_17] : memref<1x256xf32, #tpu.memory_space<vmem>>, vector<1x256xf32>
    tpu.vector_store %arg6[%c0_16, %c0_17], %16 {strides = array<i32>} : memref<1x256xf32, #tpu.memory_space<vmem>>, vector<1x256xf32>,
    %c0_18 = arith.constant 0 : index
    %c0_19 = arith.constant 0 : index
    %18 = vector.load %arg7[%c0_18, %c0_19] : memref<1x256xf32, #tpu.memory_space<vmem>>, vector<1x256xf32>
    %cst_20 = arith.constant dense<0.000000e+00> : vector<256xf32>
    %19 = vector.multi_reduction <add>, %4, %cst_20 [0] : vector<8x256xf32> to vector<256xf32>
    %20 = vector.shape_cast %19 : vector<256xf32> to vector<1x256xf32>
    %21 = arith.addf %18, %20 : vector<1x256xf32>
    %c0_21 = arith.constant 0 : index
    %c0_22 = arith.constant 0 : index
    %22 = vector.load %arg7[%c0_21, %c0_22] : memref<1x256xf32, #tpu.memory_space<vmem>>, vector<1x256xf32>
    tpu.vector_store %arg7[%c0_21, %c0_22], %21 {strides = array<i32>} : memref<1x256xf32, #tpu.memory_space<vmem>>, vector<1x256xf32>,
    %23 = arith.subf %3, %4 : vector<8x256xf32>
    %c0_23 = arith.constant 0 : index
    %c0_24 = arith.constant 0 : index
    %24 = vector.load %arg8[%c0_23, %c0_24] : memref<1x256xf32, #tpu.memory_space<vmem>>, vector<1x256xf32>
    %25 = arith.mulf %23, %23 : vector<8x256xf32>
    %cst_25 = arith.constant dense<0.000000e+00> : vector<256xf32>
    %26 = vector.multi_reduction <add>, %25, %cst_25 [0] : vector<8x256xf32> to vector<256xf32>
    %27 = vector.shape_cast %26 : vector<256xf32> to vector<1x256xf32>
    %28 = arith.addf %24, %27 : vector<1x256xf32>
    %c0_26 = arith.constant 0 : index
    %c0_27 = arith.constant 0 : index
    %29 = vector.load %arg8[%c0_26, %c0_27] : memref<1x256xf32, #tpu.memory_space<vmem>>, vector<1x256xf32>
    tpu.vector_store %arg8[%c0_26, %c0_27], %28 {strides = array<i32>} : memref<1x256xf32, #tpu.memory_space<vmem>>, vector<1x256xf32>,
    %c3_i32 = arith.constant 3 : i32
    %30 = arith.cmpi eq, %arg0, %c3_i32 : i32
    %31 = arith.extui %30 : i1 to i32
    %c0_i32_28 = arith.constant 0 : i32
    %32 = arith.cmpi ne, %31, %c0_i32_28 : i32
    scf.if %32 {
      %c0_29 = arith.constant 0 : index
      %c0_30 = arith.constant 0 : index
      %33 = vector.load %arg6[%c0_29, %c0_30] : memref<1x256xf32, #tpu.memory_space<vmem>>, vector<1x256xf32>
      %cst_31 = arith.constant 3.125000e-02 : f32
      %34 = vector.broadcast %cst_31 : f32 to vector<1x256xf32>
      %35 = arith.mulf %33, %34 : vector<1x256xf32>
      %c0_32 = arith.constant 0 : index
      %c0_33 = arith.constant 0 : index
      %36 = vector.load %arg7[%c0_32, %c0_33] : memref<1x256xf32, #tpu.memory_space<vmem>>, vector<1x256xf32>
      %cst_34 = arith.constant 3.125000e-02 : f32
      %37 = vector.broadcast %cst_34 : f32 to vector<1x256xf32>
      %38 = arith.mulf %36, %37 : vector<1x256xf32>
      %39 = tpu.iota {dimensions = array<i32: 0>} : vector<256x256xi32>
      %40 = tpu.iota {dimensions = array<i32: 1>} : vector<256x256xi32>
      %41 = arith.cmpi eq, %39, %40 : vector<256x256xi32>
      %c0_35 = arith.constant 0 : index
      %c0_36 = arith.constant 0 : index
      %42 = vector.load %arg9[%c0_35, %c0_36] : memref<8x256xf32, #tpu.memory_space<vmem>>, vector<1x256xf32>
      tpu.vector_store %arg9[%c0_35, %c0_36], %35 {strides = array<i32>} : memref<8x256xf32, #tpu.memory_space<vmem>>, vector<1x256xf32>,
      %c0_37 = arith.constant 0 : index
      %c0_38 = arith.constant 0 : index
      %43 = vector.load %arg9[%c0_37, %c0_38] : memref<8x256xf32, #tpu.memory_space<vmem>>, vector<8x256xf32>
      %c0_39 = arith.constant 0 : index
      %c0_40 = arith.constant 0 : index
      %44 = vector.load %arg9[%c0_39, %c0_40] : memref<8x256xf32, #tpu.memory_space<vmem>>, vector<8x256xf32>
      %cst_41 = arith.constant dense<0.000000e+00> : vector<256x256xf32>
      %45 = tpu.matmul %43, %44, %cst_41 {dimension_numbers = #tpu.dot_dimension_numbers<[0], [0], [1], [1], [0, 1, 1, 1], [], []>} : vector<8x256xf32>, vector<8x256xf32>, vector<256x256xf32> -> vector<256x256xf32>
      %c0_42 = arith.constant 0 : index
      %c0_43 = arith.constant 0 : index
      %46 = vector.load %arg4[%c0_42, %c0_43] : memref<256x256xf32, #tpu.memory_space<vmem>>, vector<256x256xf32>
      %cst_44 = arith.constant 3.200000e+01 : f32
      %47 = vector.broadcast %cst_44 : f32 to vector<256x256xf32>
      %48 = arith.mulf %47, %45 : vector<256x256xf32>
      %49 = arith.subf %46, %48 : vector<256x256xf32>
      %cst_45 = arith.constant 0.0322580636 : f32
      %50 = vector.broadcast %cst_45 : f32 to vector<256x256xf32>
      %51 = arith.mulf %49, %50 : vector<256x256xf32>
      %cst_46 = arith.constant 0.000000e+00 : f32
      %52 = vector.broadcast %cst_46 : f32 to vector<256x256xf32>
      %53 = arith.select %41, %51, %52 : vector<256x256xi1>, vector<256x256xf32>
      %cst_47 = arith.constant dense<0.000000e+00> : vector<256xf32>
      %54 = vector.multi_reduction <add>, %53, %cst_47 [0] : vector<256x256xf32> to vector<256xf32>
      %55 = vector.shape_cast %54 : vector<256xf32> to vector<1x256xf32>
      %56 = arith.mulf %51, %51 : vector<256x256xf32>
      %57 = vector.shape_cast %56 : vector<256x256xf32> to vector<1x256x256xf32>
      %cst_48 = arith.constant dense<0.000000e+00> : vector<1xf32>
      %58 = vector.multi_reduction <add>, %57, %cst_48 [1, 2] : vector<1x256x256xf32> to vector<1xf32>
      %59 = vector.shape_cast %58 : vector<1xf32> to vector<1x1x1xf32>
      %60 = vector.extract %59[0, 0, 0] : f32 from vector<1x1x1xf32>
      %61 = arith.mulf %55, %55 : vector<1x256xf32>
      %62 = vector.shape_cast %61 : vector<1x256xf32> to vector<1x1x256xf32>
      %cst_49 = arith.constant dense<0.000000e+00> : vector<1xf32>
      %63 = vector.multi_reduction <add>, %62, %cst_49 [1, 2] : vector<1x1x256xf32> to vector<1xf32>
      %64 = vector.shape_cast %63 : vector<1xf32> to vector<1x1x1xf32>
      %65 = vector.extract %64[0, 0, 0] : f32 from vector<1x1x1xf32>
      %66 = arith.subf %60, %65 : f32
      %c0_50 = arith.constant 0 : index
      %c0_51 = arith.constant 0 : index
      %67 = vector.load %arg9[%c0_50, %c0_51] : memref<8x256xf32, #tpu.memory_space<vmem>>, vector<1x256xf32>
      tpu.vector_store %arg9[%c0_50, %c0_51], %38 {strides = array<i32>} : memref<8x256xf32, #tpu.memory_space<vmem>>, vector<1x256xf32>,
      %c0_52 = arith.constant 0 : index
      %c0_53 = arith.constant 0 : index
      %68 = vector.load %arg9[%c0_52, %c0_53] : memref<8x256xf32, #tpu.memory_space<vmem>>, vector<8x256xf32>
      %c0_54 = arith.constant 0 : index
      %c0_55 = arith.constant 0 : index
      %69 = vector.load %arg9[%c0_54, %c0_55] : memref<8x256xf32, #tpu.memory_space<vmem>>, vector<8x256xf32>
      %cst_56 = arith.constant dense<0.000000e+00> : vector<256x256xf32>
      %70 = tpu.matmul %68, %69, %cst_56 {dimension_numbers = #tpu.dot_dimension_numbers<[0], [0], [1], [1], [0, 1, 1, 1], [], []>} : vector<8x256xf32>, vector<8x256xf32>, vector<256x256xf32> -> vector<256x256xf32>
      %c0_57 = arith.constant 0 : index
      %c0_58 = arith.constant 0 : index
      %71 = vector.load %arg5[%c0_57, %c0_58] : memref<256x256xf32, #tpu.memory_space<vmem>>, vector<256x256xf32>
      %cst_59 = arith.constant 3.200000e+01 : f32
      %72 = vector.broadcast %cst_59 : f32 to vector<256x256xf32>
      %73 = arith.mulf %72, %70 : vector<256x256xf32>
      %74 = arith.subf %71, %73 : vector<256x256xf32>
      %cst_60 = arith.constant 0.0322580636 : f32
      %75 = vector.broadcast %cst_60 : f32 to vector<256x256xf32>
      %76 = arith.mulf %74, %75 : vector<256x256xf32>
      %cst_61 = arith.constant 0.000000e+00 : f32
      %77 = vector.broadcast %cst_61 : f32 to vector<256x256xf32>
      %78 = arith.select %41, %76, %77 : vector<256x256xi1>, vector<256x256xf32>
      %cst_62 = arith.constant dense<0.000000e+00> : vector<256xf32>
      %79 = vector.multi_reduction <add>, %78, %cst_62 [0] : vector<256x256xf32> to vector<256xf32>
      %80 = vector.shape_cast %79 : vector<256xf32> to vector<1x256xf32>
      %81 = arith.mulf %76, %76 : vector<256x256xf32>
      %82 = vector.shape_cast %81 : vector<256x256xf32> to vector<1x256x256xf32>
      %cst_63 = arith.constant dense<0.000000e+00> : vector<1xf32>
      %83 = vector.multi_reduction <add>, %82, %cst_63 [1, 2] : vector<1x256x256xf32> to vector<1xf32>
      %84 = vector.shape_cast %83 : vector<1xf32> to vector<1x1x1xf32>
      %85 = vector.extract %84[0, 0, 0] : f32 from vector<1x1x1xf32>
      %86 = arith.mulf %80, %80 : vector<1x256xf32>
      %87 = vector.shape_cast %86 : vector<1x256xf32> to vector<1x1x256xf32>
      %cst_64 = arith.constant dense<0.000000e+00> : vector<1xf32>
      %88 = vector.multi_reduction <add>, %87, %cst_64 [1, 2] : vector<1x1x256xf32> to vector<1xf32>
      %89 = vector.shape_cast %88 : vector<1xf32> to vector<1x1x1xf32>
      %90 = vector.extract %89[0, 0, 0] : f32 from vector<1x1x1xf32>
      %91 = arith.subf %85, %90 : f32
      %cst_65 = arith.constant 9.99999974E-5 : f32
      %92 = vector.broadcast %cst_65 : f32 to vector<1x256xf32>
      %93 = arith.addf %55, %92 : vector<1x256xf32>
      %94 = math.sqrt %93 : vector<1x256xf32>
      %cst_66 = arith.constant 9.99999974E-5 : f32
      %95 = vector.broadcast %cst_66 : f32 to vector<1x256xf32>
      %96 = arith.addf %80, %95 : vector<1x256xf32>
      %97 = math.sqrt %96 : vector<1x256xf32>
      %cst_67 = arith.constant 1.000000e+00 : f32
      %98 = vector.broadcast %cst_67 : f32 to vector<1x256xf32>
      %99 = arith.subf %98, %94 : vector<1x256xf32>
      %cst_68 = arith.constant 0.000000e+00 : f32
      %100 = vector.broadcast %cst_68 : f32 to vector<1x256xf32>
      %101 = arith.maximumf %99, %100 : vector<1x256xf32>
      %102 = vector.shape_cast %101 : vector<1x256xf32> to vector<1x1x256xf32>
      %cst_69 = arith.constant dense<0.000000e+00> : vector<1xf32>
      %103 = vector.multi_reduction <add>, %102, %cst_69 [1, 2] : vector<1x1x256xf32> to vector<1xf32>
      %104 = vector.shape_cast %103 : vector<1xf32> to vector<1x1x1xf32>
      %105 = vector.extract %104[0, 0, 0] : f32 from vector<1x1x1xf32>
      %cst_70 = arith.constant 1.000000e+00 : f32
      %106 = vector.broadcast %cst_70 : f32 to vector<1x256xf32>
      %107 = arith.subf %106, %97 : vector<1x256xf32>
      %cst_71 = arith.constant 0.000000e+00 : f32
      %108 = vector.broadcast %cst_71 : f32 to vector<1x256xf32>
      %109 = arith.maximumf %107, %108 : vector<1x256xf32>
      %110 = vector.shape_cast %109 : vector<1x256xf32> to vector<1x1x256xf32>
      %cst_72 = arith.constant dense<0.000000e+00> : vector<1xf32>
      %111 = vector.multi_reduction <add>, %110, %cst_72 [1, 2] : vector<1x1x256xf32> to vector<1xf32>
      %112 = vector.shape_cast %111 : vector<1xf32> to vector<1x1x1xf32>
      %113 = vector.extract %112[0, 0, 0] : f32 from vector<1x1x1xf32>
      %114 = arith.addf %105, %113 : f32
      %cst_73 = arith.constant 3.906250e-03 : f32
      %115 = arith.mulf %114, %cst_73 : f32
      %cst_74 = arith.constant 5.000000e-01 : f32
      %116 = arith.mulf %115, %cst_74 : f32
      %117 = arith.addf %66, %91 : f32
      %cst_75 = arith.constant 3.906250e-03 : f32
      %118 = arith.mulf %117, %cst_75 : f32
      %c0_76 = arith.constant 0 : index
      %c0_77 = arith.constant 0 : index
      %119 = vector.load %arg8[%c0_76, %c0_77] : memref<1x256xf32, #tpu.memory_space<vmem>>, vector<1x256xf32>
      %120 = vector.shape_cast %119 : vector<1x256xf32> to vector<1x1x256xf32>
      %cst_78 = arith.constant dense<0.000000e+00> : vector<1xf32>
      %121 = vector.multi_reduction <add>, %120, %cst_78 [1, 2] : vector<1x1x256xf32> to vector<1xf32>
      %122 = vector.shape_cast %121 : vector<1xf32> to vector<1x1x1xf32>
      %123 = vector.extract %122[0, 0, 0] : f32 from vector<1x1x1xf32>
      %cst_79 = arith.constant 3.125000e-02 : f32
      %124 = arith.mulf %123, %cst_79 : f32
      %cst_80 = arith.constant 3.906250e-03 : f32
      %125 = arith.mulf %124, %cst_80 : f32
      %c0_81 = arith.constant 0 : index
      %126 = memref.load %arg3[%c0_81] : memref<3xf32, #tpu.memory_space<smem>>
      memref.store %125, %arg3[%c0_81] : memref<3xf32, #tpu.memory_space<smem>>
      %c1 = arith.constant 1 : index
      %127 = memref.load %arg3[%c1] : memref<3xf32, #tpu.memory_space<smem>>
      memref.store %116, %arg3[%c1] : memref<3xf32, #tpu.memory_space<smem>>
      %c2 = arith.constant 2 : index
      %128 = memref.load %arg3[%c2] : memref<3xf32, #tpu.memory_space<smem>>
      memref.store %118, %arg3[%c2] : memref<3xf32, #tpu.memory_space<smem>>
    } else {
    }
    return
  }
  func.func @transform_0(%arg0: i32) -> (i32, i32) {
    %c0_i32 = arith.constant 0 : i32
    %c0_i32_0 = arith.constant 0 : i32
    return %arg0, %c0_i32 : i32, i32
  }
  func.func @transform_1(%arg0: i32) -> (i32, i32) {
    %c0_i32 = arith.constant 0 : i32
    %c0_i32_0 = arith.constant 0 : i32
    return %arg0, %c0_i32 : i32, i32
  }
  func.func @transform_2(%arg0: i32) -> i32 {
    %c0_i32 = arith.constant 0 : i32
    %c0_i32_0 = arith.constant 0 : i32
    return %c0_i32 : i32
  }
}

</mosaic_0001>

<bundles_post_ra>
// kernel: tpu_custom_call.1
= control target key start
LH: loop header
LB: loop body
LE: loop exit
PB: predicated region body
PF: predicated region fallthrough
CT: control target
= control target key end

     0   :  { %7 = vsyncpa [#allocation9], 0  ;;  %s5441_s0 = inlined_call_operand.hbm [shape: f32[32,256], index: 0, kind: input, shape index: {}]   ;;  %s5442_s1 = inlined_call_operand.hbm [shape: f32[32,256], index: 1, kind: input, shape index: {}]   ;;  %s5443_s2 = inlined_call_operand.hbm [shape: f32[3], index: 2, kind: output, shape index: {}]  }
   0x1   :  { %9 = vsyncpa [#allocation9 + $0x1], 0 }
   0x2   :  { %10 = vsyncpa [#allocation12], 0 }
   0x3   :  { %12 = vsyncpa [#allocation12 + $0x1], 0 }
   0x4   :  { %13 = vsyncpa [#allocation10], 0  ;;  %s4235_s9 = smov 0   ;;  %s4237_s10 = smov 0  }
   0x5   :  { %s4239_s11 = smov 0   ;;  %s4241_s12 = smov 0  }
   0x6 LB: > { %s4254_s13 = sadd.s32 4294967295, %s4211_s12   ;;  %s4257_s14 = sadd.s32 1, %s4211_s12   ;;  %s4211_s12 = sphi %s4241_s12, %s5526_s12   ;;  %s4207_s11 = sphi %s4239_s11, %s5525_s11   ;;  %s4203_s10 = sphi %s4237_s10, %s5524_s10   ;;  %s4199_s9 = sphi %s4235_s9, %s5523_s9  }
   0x7   : > { %s23_s15 = ssub.s32 %s4211_s12, %s4257_s14  ;;  %s26_s16 = sadd.s32 1, %s4207_s11 }
   0x8   : > { %p24_p0 = scmp.eq.s32.totalorder %s23_s15, 0  ;;  %p33_p1 = scmp.ne.s32.totalorder %s4207_s11, %s4203_s10 }
   0x9   : > { %p34_p2 = scmp.eq.s32.totalorder %s4211_s12, 0  ;;  %p39_p3 = scmp.ne.s32.totalorder %s4203_s10, %s4199_s9 }
   0xa   : > { %s4267_s17 = scalar_select %p24_p0, %s4207_s11, %s26_s16  }
   0xb   : > { %p35_p4 = por %p34_p2, %p33_p1  ;;  %p40_p5 = scmp.eq.s32.totalorder %s4254_s13, 0 }
   0xc   : > { %p4055_p6 = scmp.lt.s32.totalorder %s4211_s12, 4  ;;  %s4276_s19 = sand.u32 1, %s4207_s11  }
   0xd   : > { %p4271_p7 = por %p40_p5, %p39_p3  ;;  %s3881_s20 = sshll.u32 %s4276_s19, 4 }
   0xe   : > { %s4024_s21 = sshll.u32 %s4211_s12, 8  ;;  %s114_s25 = scalar_lea.vmem [#allocation8], %s3881_s20 }
   0xf   : > { %s5471_s18 = scalar_select %p4271_p7, 1, 0 }
  0x10   : > { %s4285_s24 = scalar_lea.hbm %s5441_s0, %s4024_s21  ;;  %s122_s26 = sshll.u32 %s114_s25, 4  ;;  %s4289_s26 = int_to_ptr.vmem [resolvable:$true] %s122_s26 }
  0x11   : > { %p4291_p8 = pnand %p4055_p6, %p35_p4  ;;  %s111_s28 = scalar_lea.sflag [#allocation9], %s4276_s19 }
  0x12   : > { %s4103_s29 = scalar_lea.hbm %s4285_s24, 256  ;;  %s4108_s4 = scalar_lea.hbm %s5441_s0, 1024 }
  0x13   : > { %p4104_p11 = scmp.ne.s32.totalorder %s4285_s24, %s4103_s29  ;;  %p4105_p12 = pneg %p4291_p8 }
  0x14   : > { %p4109_p1 = scmp.lt.s32.totalorder %s4285_s24, %s5441_s0  ;;  %p4110_p2 = scmp.lt.s32.totalorder %s4108_s4, %s4103_s29 }
  0x15   : > { %p4106_p13 = pnand %p4105_p12, %p4104_p11 }
  0x16   : > { %p4111_p3 = por %p4110_p2, %p4109_p1 }
  0x17   : > { %p4107_p0 = pneg %p4106_p13 }
  0x19   : > { %p4112_p4 = pnand %p4111_p3, %p4107_p0 }
  0x1b   : > { %4115 = shalt.err (!%p4112_p4)
}
  0x1c   : > { %s4116_s7 = scalar_lea.vmem %s4289_s26, 256  ;;  %s4213_s8 = smov [#allocation8]  }
  0x1d   : > { %p4117_p5 = scmp.ne.s32.totalorder %s4289_s26, %s4116_s7  ;;  %s4121_s9 = sshll.u32 %s4213_s8, 4  ;;  %s4122_s9 = int_to_ptr.vmem [resolvable:$false] %s4121_s9 }
  0x1e   : > { %s4123_s15 = scalar_lea.vmem %s4122_s9, 512  ;;  %p4124_p13 = scmp.lt.s32.totalorder %s4289_s26, %s4122_s9 }
  0x1f   : > { %p4119_p6 = pnand %p4117_p5, %p4105_p12  ;;  %p4125_p9 = scmp.lt.s32.totalorder %s4123_s15, %s4116_s7 }
  0x21   : > { %p4120_p11 = pneg %p4119_p6  ;;  %p4126_p10 = por %p4125_p9, %p4124_p13 }
  0x23   : > { %p4127_p1 = pnand %p4126_p10, %p4120_p11 }
  0x25   : > { %4130 = shalt.err (!%p4127_p1)
}
  0x26   : > { %4051 = dma.hbm_to_vmem [thread:$0]  (!%p4291_p8), %s4285_s24, 256, %s4289_s26, %s111_s28  }
  0x27   : > { %p5473_p0 = scmp.lt.s32.totalorder %s4211_s12, 5  ;;  %p5474_p2 = scmp.ge.s32.totalorder %s4211_s12, 1 }
  0x28   : > { %s4335_s25 = scalar_lea.hbm %s5442_s1, %s4024_s21  ;;  %s133_s29 = scalar_lea.vmem [#allocation11], %s3881_s20 }
  0x29   : > { %p4326_p3 = pnand %p5474_p2, %p5473_p0  ;;  %s141_s30 = sshll.u32 %s133_s29, 4  ;;  %s142_s30 = int_to_ptr.vmem [resolvable:$true] %s141_s30 }
  0x2a   : > { %s130_s24 = scalar_lea.sflag [#allocation12], %s4276_s19  ;;  %s4131_s26 = scalar_lea.hbm %s4335_s25, 256 }
  0x2b   : > { %s5475_s16 = scalar_select %p4326_p3, 1, 0 }
  0x2c   : > { %p4132_p9 = scmp.ne.s32.totalorder %s4335_s25, %s4131_s26  ;;  %s4136_s3 = scalar_lea.hbm %s5442_s1, 1024 }
  0x2d   : > { %p4137_p5 = scmp.lt.s32.totalorder %s4335_s25, %s5442_s1  ;;  %p4138_p6 = scmp.lt.s32.totalorder %s4136_s3, %s4131_s26 }
  0x2e   : > { %p4134_p10 = pnand %p4132_p9, %p4105_p12 }
  0x2f   : > { %p4139_p11 = por %p4138_p6, %p4137_p5 }
  0x30   : > { %p4135_p4 = pneg %p4134_p10 }
  0x32   : > { %p4140_p13 = pnand %p4139_p11, %p4135_p4 }
  0x34   : > { %4143 = shalt.err (!%p4140_p13)
}
  0x35   : > { %s4144_s20 = scalar_lea.vmem %s142_s30, 256  ;;  %s4214_s19 = smov [#allocation11]  }
  0x36   : > { %p4145_p1 = scmp.ne.s32.totalorder %s142_s30, %s4144_s20  ;;  %s4149_s5 = sshll.u32 %s4214_s19, 4  ;;  %s4150_s5 = int_to_ptr.vmem [resolvable:$false] %s4149_s5 }
  0x37   : > { %s4151_s6 = scalar_lea.vmem %s4150_s5, 512  ;;  %p4152_p9 = scmp.lt.s32.totalorder %s142_s30, %s4150_s5 }
  0x38   : > { %p4147_p0 = pnand %p4145_p1, %p4105_p12  ;;  %p4153_p10 = scmp.lt.s32.totalorder %s4151_s6, %s4144_s20 }
  0x3a   : > { %p4148_p2 = pneg %p4147_p0  ;;  %p4154_p7 = por %p4153_p10, %p4152_p9 }
  0x3c   : > { %p4155_p3 = pnand %p4154_p7, %p4148_p2 }
  0x3e   : > { %4158 = shalt.err (!%p4155_p3)
}
  0x3f   : > { %4054 = dma.hbm_to_vmem [thread:$0]  (!%p4291_p8), %s4335_s25, 256, %s142_s30, %s130_s24  }
  0x40   : > { %p5476_p4 = scmp.ne.s32.totalorder %s5475_s16, 0 }
  0x42   : > { %150 = sbr.rel (%p5476_p4) target bundleno = 1470 (0x5be), region = 28 }
  0x47   : > { %s152_s7 = sand.u32 1, %s4203_s10   ;;  %p5477_p12 = scmp.ne.s32.totalorder %s5471_s18, 0 }
  0x48   : > { %s3888_s8 = sshll.u32 %s152_s7, 4  ;;  %s153_s9 = scalar_lea.sflag [#allocation9], %s152_s7 }
  0x49   : > { %s4361_s15 = scalar_lea.vmem [#allocation8], %s3888_s8 }
  0x4a   : > { %4186 = dma.done.wait (%p5477_p12), %s153_s9, 256  }
  0x4b   : > { %4188 = vsyncadd (%p5477_p12), %s153_s9, 4294967040  ;;  %s162_s22 = scalar_lea.sflag [#allocation12], %s152_s7  ;;  %s4367_s27 = scalar_lea.vmem [#allocation11], %s3888_s8 }
  0x4c   : > { %4190 = dma.done.wait (%p5477_p12), %s162_s22, 256  }
  0x4d   : > { %4192 = vsyncadd (%p5477_p12), %s162_s22, 4294967040  ;;  %p3890_p7 = scmp.ne.s32.totalorder %s4254_s13, 0 }
  0x4f   : > { %189 = sbr.rel (%p3890_p7) target bundleno = 152 (0x98), region = 40 }
  0x54   : > { %v318_v0 = vlaneseq  ;;  %v4215_v1 = vmov 0.0  }
  0x55   : > { %190 = vst [vmem:[#allocation2 + $0xb0] sm:$0xff] %v4215_v1  ;;  %191 = vst [vmem:[#allocation2 + $0x1b0] sm:$0xff] %v4215_v1 }
  0x56   : > { %192 = vst [vmem:[#allocation2 + $0xd8] sm:$0xff] %v4215_v1  ;;  %193 = vst [vmem:[#allocation2 + $0x18] sm:$0xff] %v4215_v1  ;;  %vm320_vm0 = vcmp.lt.s32.totalorder %v318_v0, 256 }
  0x57   : > { %194 = vst [vmem:[#allocation2 + $0x50] sm:$0xff] %v4215_v1  ;;  %195 = vst [vmem:[#allocation2 + $0x168] sm:$0xff] %v4215_v1 }
  0x58   : > { %196 = vst [vmem:[#allocation2 + $0x130] sm:$0xff] %v4215_v1  ;;  %197 = vst [vmem:[#allocation2 + $0x48] sm:$0xff] %v4215_v1 }
  0x59   : > { %198 = vst [vmem:[#allocation2 + $0x180] sm:$0xff] %v4215_v1  ;;  %199 = vst [vmem:[#allocation2 + $0x110] sm:$0xff] %v4215_v1 }
  0x5a   : > { %200 = vst [vmem:[#allocation2 + $0x118] sm:$0xff] %v4215_v1  ;;  %201 = vst [vmem:[#allocation2 + $0x98] sm:$0xff] %v4215_v1 }
  0x5b   : > { %202 = vst [vmem:[#allocation2 + $0x120] sm:$0xff] %v4215_v1  ;;  %203 = vst [vmem:[#allocation2 + $0x150] sm:$0xff] %v4215_v1 }
  0x5c   : > { %204 = vst [vmem:[#allocation2 + $0x108] sm:$0xff] %v4215_v1  ;;  %205 = vst [vmem:[#allocation2 + $0x60] sm:$0xff] %v4215_v1 }
  0x5d   : > { %206 = vst [vmem:[#allocation2 + $0xe0] sm:$0xff] %v4215_v1  ;;  %207 = vst [vmem:[#allocation2 + $0x188] sm:$0xff] %v4215_v1 }
  0x5e   : > { %208 = vst [vmem:[#allocation2 + $0x138] sm:$0xff] %v4215_v1  ;;  %209 = vst [vmem:[#allocation2 + $0x140] sm:$0xff] %v4215_v1 }
  0x5f   : > { %210 = vst [vmem:[#allocation2 + $0x80] sm:$0xff] %v4215_v1  ;;  %211 = vst [vmem:[#allocation2 + $0x1a8] sm:$0xff] %v4215_v1 }
  0x60   : > { %212 = vst [vmem:[#allocation2 + $0x1b8] sm:$0xff] %v4215_v1  ;;  %213 = vst [vmem:[#allocation2 + $0x28] sm:$0xff] %v4215_v1 }
  0x61   : > { %214 = vst [vmem:[#allocation2 + $0x1e8] sm:$0xff] %v4215_v1  ;;  %215 = vst [vmem:[#allocation2 + $0xf8] sm:$0xff] %v4215_v1 }
  0x62   : > { %216 = vst [vmem:[#allocation2 + $0x160] sm:$0xff] %v4215_v1  ;;  %217 = vst [vmem:[#allocation2 + $0x30] sm:$0xff] %v4215_v1 }
  0x63   : > { %218 = vst [vmem:[#allocation2 + $0x1e0] sm:$0xff] %v4215_v1  ;;  %219 = vst [vmem:[#allocation2] sm:$0xff] %v4215_v1 }
  0x64   : > { %220 = vst [vmem:[#allocation2 + $0xf0] sm:$0xff] %v4215_v1  ;;  %221 = vst [vmem:[#allocation2 + $0x8] sm:$0xff] %v4215_v1 }
  0x65   : > { %222 = vst [vmem:[#allocation2 + $0x148] sm:$0xff] %v4215_v1  ;;  %223 = vst [vmem:[#allocation2 + $0x1d0] sm:$0xff] %v4215_v1 }
  0x66   : > { %224 = vst [vmem:[#allocation2 + $0x100] sm:$0xff] %v4215_v1  ;;  %225 = vst [vmem:[#allocation2 + $0xc8] sm:$0xff] %v4215_v1 }
  0x67   : > { %226 = vst [vmem:[#allocation2 + $0x40] sm:$0xff] %v4215_v1  ;;  %227 = vst [vmem:[#allocation2 + $0x1f8] sm:$0xff] %v4215_v1 }
  0x68   : > { %228 = vst [vmem:[#allocation2 + $0x20] sm:$0xff] %v4215_v1  ;;  %229 = vst [vmem:[#allocation2 + $0x128] sm:$0xff] %v4215_v1 }
  0x69   : > { %230 = vst [vmem:[#allocation2 + $0x1a0] sm:$0xff] %v4215_v1  ;;  %231 = vst [vmem:[#allocation2 + $0x1f0] sm:$0xff] %v4215_v1 }
  0x6a   : > { %232 = vst [vmem:[#allocation2 + $0xe8] sm:$0xff] %v4215_v1  ;;  %233 = vst [vmem:[#allocation2 + $0x78] sm:$0xff] %v4215_v1 }
  0x6b   : > { %234 = vst [vmem:[#allocation2 + $0x70] sm:$0xff] %v4215_v1  ;;  %235 = vst [vmem:[#allocation2 + $0x90] sm:$0xff] %v4215_v1 }
  0x6c   : > { %236 = vst [vmem:[#allocation2 + $0x1d8] sm:$0xff] %v4215_v1  ;;  %237 = vst [vmem:[#allocation2 + $0xd0] sm:$0xff] %v4215_v1 }
  0x6d   : > { %238 = vst [vmem:[#allocation2 + $0xb8] sm:$0xff] %v4215_v1  ;;  %239 = vst [vmem:[#allocation2 + $0x88] sm:$0xff] %v4215_v1 }
  0x6e   : > { %240 = vst [vmem:[#allocation2 + $0xa8] sm:$0xff] %v4215_v1  ;;  %241 = vst [vmem:[#allocation2 + $0x1c8] sm:$0xff] %v4215_v1 }
  0x6f   : > { %242 = vst [vmem:[#allocation2 + $0x170] sm:$0xff] %v4215_v1  ;;  %243 = vst [vmem:[#allocation2 + $0x178] sm:$0xff] %v4215_v1 }
  0x70   : > { %244 = vst [vmem:[#allocation2 + $0x68] sm:$0xff] %v4215_v1  ;;  %245 = vst [vmem:[#allocation2 + $0x190] sm:$0xff] %v4215_v1 }
  0x71   : > { %246 = vst [vmem:[#allocation2 + $0x198] sm:$0xff] %v4215_v1  ;;  %247 = vst [vmem:[#allocation2 + $0x38] sm:$0xff] %v4215_v1 }
  0x72   : > { %248 = vst [vmem:[#allocation2 + $0xc0] sm:$0xff] %v4215_v1  ;;  %249 = vst [vmem:[#allocation2 + $0x1c0] sm:$0xff] %v4215_v1 }
  0x73   : > { %250 = vst [vmem:[#allocation2 + $0x158] sm:$0xff] %v4215_v1  ;;  %251 = vst [vmem:[#allocation2 + $0x10] sm:$0xff] %v4215_v1 }
  0x74   : > { %252 = vst [vmem:[#allocation2 + $0x58] sm:$0xff] %v4215_v1  ;;  %253 = vst [vmem:[#allocation2 + $0xa0] sm:$0xff] %v4215_v1 }
  0x75   : > { %254 = vst [vmem:[#allocation3 + $0x68] sm:$0xff] %v4215_v1  ;;  %255 = vst [vmem:[#allocation3 + $0x150] sm:$0xff] %v4215_v1 }
  0x76   : > { %256 = vst [vmem:[#allocation3 + $0x70] sm:$0xff] %v4215_v1  ;;  %257 = vst [vmem:[#allocation3 + $0x160] sm:$0xff] %v4215_v1 }
  0x77   : > { %258 = vst [vmem:[#allocation3 + $0xd0] sm:$0xff] %v4215_v1  ;;  %259 = vst [vmem:[#allocation3 + $0xd8] sm:$0xff] %v4215_v1 }
  0x78   : > { %260 = vst [vmem:[#allocation3 + $0x1e0] sm:$0xff] %v4215_v1  ;;  %261 = vst [vmem:[#allocation3 + $0x30] sm:$0xff] %v4215_v1 }
  0x79   : > { %262 = vst [vmem:[#allocation3 + $0x148] sm:$0xff] %v4215_v1  ;;  %263 = vst [vmem:[#allocation3 + $0x50] sm:$0xff] %v4215_v1 }
  0x7a   : > { %264 = vst [vmem:[#allocation3 + $0x1f0] sm:$0xff] %v4215_v1  ;;  %265 = vst [vmem:[#allocation3 + $0x130] sm:$0xff] %v4215_v1 }
  0x7b   : > { %266 = vst [vmem:[#allocation3 + $0x190] sm:$0xff] %v4215_v1  ;;  %267 = vst [vmem:[#allocation3 + $0x8] sm:$0xff] %v4215_v1 }
  0x7c   : > { %268 = vst [vmem:[#allocation3 + $0x88] sm:$0xff] %v4215_v1  ;;  %269 = vst [vmem:[#allocation3 + $0x38] sm:$0xff] %v4215_v1 }
  0x7d   : > { %270 = vst [vmem:[#allocation3 + $0xe0] sm:$0xff] %v4215_v1  ;;  %271 = vst [vmem:[#allocation3 + $0x10] sm:$0xff] %v4215_v1 }
  0x7e   : > { %272 = vst [vmem:[#allocation3 + $0x1a8] sm:$0xff] %v4215_v1  ;;  %273 = vst [vmem:[#allocation3 + $0xa0] sm:$0xff] %v4215_v1 }
  0x7f   : > { %274 = vst [vmem:[#allocation3 + $0x1c0] sm:$0xff] %v4215_v1  ;;  %275 = vst [vmem:[#allocation3 + $0x78] sm:$0xff] %v4215_v1 }
  0x80   : > { %276 = vst [vmem:[#allocation3 + $0x108] sm:$0xff] %v4215_v1  ;;  %277 = vst [vmem:[#allocation3 + $0x80] sm:$0xff] %v4215_v1 }
  0x81   : > { %278 = vst [vmem:[#allocation3 + $0x58] sm:$0xff] %v4215_v1  ;;  %279 = vst [vmem:[#allocation3 + $0x48] sm:$0xff] %v4215_v1 }
  0x82   : > { %280 = vst [vmem:[#allocation3 + $0x40] sm:$0xff] %v4215_v1  ;;  %281 = vst [vmem:[#allocation3 + $0x1a0] sm:$0xff] %v4215_v1 }
  0x83   : > { %282 = vst [vmem:[#allocation3 + $0x198] sm:$0xff] %v4215_v1  ;;  %283 = vst [vmem:[#allocation3 + $0xe8] sm:$0xff] %v4215_v1 }
  0x84   : > { %284 = vst [vmem:[#allocation3 + $0x168] sm:$0xff] %v4215_v1  ;;  %285 = vst [vmem:[#allocation3 + $0x158] sm:$0xff] %v4215_v1 }
  0x85   : > { %286 = vst [vmem:[#allocation3 + $0x1d8] sm:$0xff] %v4215_v1  ;;  %287 = vst [vmem:[#allocation3 + $0x28] sm:$0xff] %v4215_v1 }
  0x86   : > { %288 = vst [vmem:[#allocation3] sm:$0xff] %v4215_v1  ;;  %289 = vst [vmem:[#allocation3 + $0x1c8] sm:$0xff] %v4215_v1 }
  0x87   : > { %290 = vst [vmem:[#allocation3 + $0x1e8] sm:$0xff] %v4215_v1  ;;  %291 = vst [vmem:[#allocation3 + $0x140] sm:$0xff] %v4215_v1 }
  0x88   : > { %292 = vst [vmem:[#allocation3 + $0x60] sm:$0xff] %v4215_v1  ;;  %293 = vst [vmem:[#allocation3 + $0x98] sm:$0xff] %v4215_v1 }
  0x89   : > { %294 = vst [vmem:[#allocation3 + $0x1b8] sm:$0xff] %v4215_v1  ;;  %295 = vst [vmem:[#allocation3 + $0x100] sm:$0xff] %v4215_v1 }
  0x8a   : > { %296 = vst [vmem:[#allocation3 + $0xc8] sm:$0xff] %v4215_v1  ;;  %297 = vst [vmem:[#allocation3 + $0xf8] sm:$0xff] %v4215_v1 }
  0x8b   : > { %298 = vst [vmem:[#allocation3 + $0x178] sm:$0xff] %v4215_v1  ;;  %299 = vst [vmem:[#allocation3 + $0x180] sm:$0xff] %v4215_v1 }
  0x8c   : > { %300 = vst [vmem:[#allocation3 + $0xb0] sm:$0xff] %v4215_v1  ;;  %301 = vst [vmem:[#allocation3 + $0x110] sm:$0xff] %v4215_v1 }
  0x8d   : > { %302 = vst [vmem:[#allocation3 + $0x20] sm:$0xff] %v4215_v1  ;;  %303 = vst [vmem:[#allocation3 + $0xb8] sm:$0xff] %v4215_v1 }
  0x8e   : > { %304 = vst [vmem:[#allocation3 + $0x120] sm:$0xff] %v4215_v1  ;;  %305 = vst [vmem:[#allocation3 + $0x90] sm:$0xff] %v4215_v1 }
  0x8f   : > { %306 = vst [vmem:[#allocation3 + $0xa8] sm:$0xff] %v4215_v1  ;;  %307 = vst [vmem:[#allocation3 + $0xc0] sm:$0xff] %v4215_v1 }
  0x90   : > { %308 = vst [vmem:[#allocation3 + $0x138] sm:$0xff] %v4215_v1  ;;  %309 = vst [vmem:[#allocation3 + $0x188] sm:$0xff] %v4215_v1 }
  0x91   : > { %310 = vst [vmem:[#allocation3 + $0x1b0] sm:$0xff] %v4215_v1  ;;  %311 = vst [vmem:[#allocation3 + $0x18] sm:$0xff] %v4215_v1 }
  0x92   : > { %312 = vst [vmem:[#allocation3 + $0xf0] sm:$0xff] %v4215_v1  ;;  %313 = vst [vmem:[#allocation3 + $0x128] sm:$0xff] %v4215_v1 }
  0x93   : > { %314 = vst [vmem:[#allocation3 + $0x1f8] sm:$0xff] %v4215_v1  ;;  %315 = vst [vmem:[#allocation3 + $0x170] sm:$0xff] %v4215_v1 }
  0x94   : > { %316 = vst [vmem:[#allocation3 + $0x1d0] sm:$0xff] %v4215_v1  ;;  %317 = vst [vmem:[#allocation3 + $0x118] sm:$0xff] %v4215_v1 }
  0x95   : > { %325 = vst [vmem:[#allocation7] sm:$0xff] %v4215_v1  ;;  %326 = vst [vmem:[#allocation7 + $0x8] sm:$0xff] %v4215_v1 }
  0x96   : > { %322 = vst.msk [vmem:[#allocation4] sm:$0x3] %vm320_vm0, %v4215_v1  ;;  %323 = vst.msk [vmem:[#allocation5] sm:$0x3] %vm320_vm0, %v4215_v1 }
  0x97   : > { %324 = vst.msk [vmem:[#allocation6] sm:$0x3] %vm320_vm0, %v4215_v1 }
  0x98 PF: > { %v327_v2 = vld [vmem:[%s4361_s15] sm:$0xff]  ;;  %v328_v3 = vld [vmem:[%s4361_s15 + $0x8] sm:$0xff]  ;;  %v4216_v9 = vmov 0.0   ;;  %v4217_v12 = vmov 1966171168   ;;  %v1569_v14 = vlaneseq  ;;  %vm459_vm2 = vcmask 64512  }
  0x99   : > { %395 = vxpose.xlu0.b32.start.end [1/1] (short) %v327_v2, 128  ;;  %v1551_v4 = vrot.slane %v327_v2, 4  ;;  %427 = vxpose.xlu1.b32.start.end [1/1] (short) %v328_v3, 128  ;;  %v1557_v5 = vrot.slane %v328_v3, 4  ;;  %v4511_v6 = vld [vmem:[%s4367_s27] sm:$0xff]  ;;  %v4517_v10 = vld [vmem:[%s4367_s27 + $0x8] sm:$0xff]  ;;  %v1567_v13 = vunpack.c.l.s4 %v4217_v12  ;;  %p3955_p8 = scmp.ne.s32.totalorder %s4254_s13, 3 }
  0x9a   : > { %v1588_v7 = vrot.slane %v4511_v6, 4  ;;  %v1620_v8 = vsub.f32 %v327_v2, %v4511_v6  ;;  %586 = vmatprep.subr.mxu0 %v328_v3  ;;  %620 = vmatprep.mubr.f32.mxu0 %v4216_v9  ;;  %v1594_v18 = vrot.slane %v4517_v10, 4  ;;  %v1621_v19 = vsub.f32 %v328_v3, %v4517_v10 }
  0x9b   : > { %v1552_v11 = vadd.f32 %v1551_v4, %v327_v2  ;;  %v1558_v15 = vadd.f32 %v1557_v5, %v328_v3  ;;  %587 = vmatpush1.msra.mxu0 %v327_v2  ;;  %1195 = vmatprep.subr.mxu1 %v4517_v10  ;;  %v1568_v27 = vunpack.c.0.s8 %v1567_v13  ;;  %v4527_v28 = vshrl.u32 %v1569_v14, 7 }
  0x9c   : > { %v1589_v16 = vadd.f32 %v1588_v7, %v4511_v6  ;;  %v1623_v17 = vmul.f32 %v1620_v8, %v1620_v8  ;;  %1196 = vmatpush1.msra.mxu1 %v4511_v6  ;;  %1229 = vmatprep.mubr.f32.mxu1 %v4216_v9  ;;  %v1595_v24 = vadd.f32 %v1594_v18, %v4517_v10  ;;  %vm4531_vm1 = vcmp.lt.s32.totalorder %v1569_v14, 256 }
  0x9d   : > { %v1553_v20 = vrot.slane %v1552_v11, 2  ;;  %v1559_v21 = vrot.slane %v1558_v15, 2  ;;  %v1624_v25 = vmul.f32 %v1621_v19, %v1621_v19  ;;  %5478 = vst [vmem:[#allocation17_spill] sm:$0xff] %v4527_v28  ;;  %v1571_v41 = vsub.s32 %v1568_v27, %v4527_v28  ;;  %v1550_v52 = vld [vmem:[#allocation4] sm:$0x3] }
  0x9e   : > { %v1590_v22 = vrot.slane %v1589_v16, 2  ;;  %v1625_v23 = vrot.slane %v1623_v17, 4  ;;  %v1596_v32 = vrot.slane %v1595_v24, 2  ;;  %v1587_v61 = vld [vmem:[#allocation5] sm:$0x3] }
  0x9f   : > { %v1554_v26 = vadd.f32 %v1553_v20, %v1552_v11  ;;  %v1560_v29 = vadd.f32 %v1559_v21, %v1558_v15  ;;  %v1631_v33 = vrot.slane %v1624_v25, 4  ;;  %v1622_v2 = vld [vmem:[#allocation6] sm:$0x3] }
  0xa0   : > { %v1591_v30 = vadd.f32 %v1590_v22, %v1589_v16  ;;  %v1626_v31 = vadd.f32 %v1625_v23, %v1623_v17  ;;  %v1597_v38 = vadd.f32 %v1596_v32, %v1595_v24 }
  0xa1   : > { %v1555_v34 = vrot.slane %v1554_v26, 1  ;;  %v1561_v35 = vrot.slane %v1560_v29, 1  ;;  %v1632_v39 = vadd.f32 %v1631_v33, %v1624_v25 }
  0xa2   : > { %v1592_v36 = vrot.slane %v1591_v30, 1  ;;  %v1627_v37 = vrot.slane %v1626_v31, 2  ;;  %v1598_v45 = vrot.slane %v1597_v38, 1 }
  0xa3   : > { %v1556_v40 = vadd.f32 %v1555_v34, %v1554_v26  ;;  %v1562_v42 = vadd.f32 %v1561_v35, %v1560_v29  ;;  %v1633_v46 = vrot.slane %v1632_v39, 2 }
  0xa4   : > { %v1593_v43 = vadd.f32 %v1592_v36, %v1591_v30  ;;  %v1628_v44 = vadd.f32 %v1627_v37, %v1626_v31  ;;  %v1599_v49 = vadd.f32 %v1598_v45, %v1597_v38 }
  0xa5   : > { %v1565_v47 = vcombine.low %v1556_v40, %v1562_v42  ;;  %v1634_v50 = vadd.f32 %v1633_v46, %v1632_v39 }
  0xa6   : > { %v1629_v48 = vrot.slane %v1628_v44, 1  ;;  %v1602_v54 = vcombine.low %v1593_v43, %v1599_v49 }
  0xa7   : > { %v1572_v51 = vrot.slane %v1565_v47, %v1571_v41  ;;  %v1635_v55 = vrot.slane %v1634_v50, 1 }
  0xa8   : > { %v1630_v53 = vadd.f32 %v1629_v48, %v1628_v44  ;;  %v1609_v58 = vrot.slane %v1602_v54, %v1571_v41 }
  0xa9   : > { %v1579_v56 = vrot.slane %v1572_v51, %v1571_v41  ;;  %v1636_v59 = vadd.f32 %v1635_v55, %v1634_v50 }
  0xaa   : > { %v1616_v62 = vrot.slane %v1609_v58, %v1571_v41 }
  0xab   : > { %v1581_v60 = vadd.f32 %v1579_v56, %v1550_v52  ;;  %v1639_v63 = vcombine.low %v1630_v53, %v1636_v59 }
  0xac   : > { %v1618_v0 = vadd.f32 %v1616_v62, %v1587_v61 }
  0xad   : > { %1586 = vst.msk [vmem:[#allocation4] sm:$0x3] %vm4531_vm1, %v1581_v60  ;;  %v1646_v1 = vrot.slane %v1639_v63, %v1571_v41 }
  0xae   : > { %1619 = vst.msk [vmem:[#allocation5] sm:$0x3] %vm4531_vm1, %v1618_v0 }
  0xaf   : > { %v1653_v3 = vrot.slane %v1646_v1, %v1571_v41 }
  0xb1   : > { %v1655_v4 = vadd.f32 %v1653_v3, %v1622_v2 }
  0xb3   : > { %1656 = vst.msk [vmem:[#allocation6] sm:$0x3] %vm4531_vm1, %v1655_v4 }
  0xd6   : > { %1005 = vxpose.xlu0.b32.start.end [1/1] (short) %v4511_v6, 128  ;;  %1037 = vxpose.xlu1.b32.start.end [1/1] (short) %v4517_v10, 128 }
 0x115   : > { %v411_v5 = vpop.trf.xlu0  ;;  %v443_v7 = vpop.trf.xlu1 }
 0x116   : > { %3891 = vmatmul.mubr.msk.f32.vlgmr.msra.gmra.mxu0 %vm459_vm2, %v411_v5 }
 0x117   : > { %626 = vmatprep.mubr.f32.mxu0 %v4216_v9 }
 0x119   : > { %v412_v8 = vpop.trf.xlu0  ;;  %v444_v11 = vpop.trf.xlu1 }
 0x11a   : > { %3892 = vmatmul.mubr.msk.f32.gmra.mxu0 %vm459_vm2, %v412_v8 }
 0x11b   : > { %632 = vmatprep.mubr.f32.mxu0 %v4216_v9 }
 0x11d   : > { %v413_v12 = vpop.trf.xlu0  ;;  %v445_v10 = vpop.trf.xlu1 }
 0x11e   : > { %3893 = vmatmul.mubr.msk.f32.gmra.mxu0 %vm459_vm2, %v413_v12  ;;  %v331_v12 = vld [vmem:[#allocation2 + $0xb0] sm:$0xff] }
 0x11f   : > { %638 = vmatprep.mubr.f32.mxu0 %v4216_v9 }
 0x121   : > { %v414_v6 = vpop.trf.xlu0  ;;  %v446_v15 = vpop.trf.xlu1 }
 0x122   : > { %3894 = vmatmul.mubr.msk.f32.gmra.mxu0 %vm459_vm2, %v414_v6 }
 0x123   : > { %644 = vmatprep.mubr.f32.mxu0 %v4216_v9 }
 0x125   : > { %v415_v13 = vpop.trf.xlu0  ;;  %v447_v18 = vpop.trf.xlu1 }
 0x126   : > { %3895 = vmatmul.mubr.msk.f32.gmra.mxu0 %vm459_vm2, %v415_v13 }
 0x127   : > { %650 = vmatprep.mubr.f32.mxu0 %v4216_v9 }
 0x129   : > { %v416_v16 = vpop.trf.xlu0  ;;  %v448_v20 = vpop.trf.xlu1 }
 0x12a   : > { %3896 = vmatmul.mubr.msk.f32.gmra.mxu0 %vm459_vm2, %v416_v16  ;;  %v333_v16 = vld [vmem:[#allocation2 + $0xd8] sm:$0xff] }
 0x12b   : > { %656 = vmatprep.mubr.f32.mxu0 %v4216_v9 }
 0x12d   : > { %v417_v17 = vpop.trf.xlu0  ;;  %v449_v23 = vpop.trf.xlu1 }
 0x12e   : > { %3897 = vmatmul.mubr.msk.f32.gmra.mxu0 %vm459_vm2, %v417_v17 }
 0x12f   : > { %662 = vmatprep.mubr.f32.mxu0 %v4216_v9 }
 0x131   : > { %v418_v19 = vpop.trf.xlu0  ;;  %v450_v25 = vpop.trf.xlu1 }
 0x132   : > { %3898 = vmatmul.mubr.msk.f32.gmra.mxu0 %vm459_vm2, %v418_v19  ;;  %v334_v19 = vld [vmem:[#allocation2 + $0x18] sm:$0xff] }
 0x133   : > { %668 = vmatprep.mubr.f32.mxu0 %v4216_v9 }
 0x135   : > { %v419_v21 = vpop.trf.xlu0  ;;  %v451_v29 = vpop.trf.xlu1 }
 0x136   : > { %3899 = vmatmul.mubr.msk.f32.gmra.mxu0 %vm459_vm2, %v419_v21 }
 0x137   : > { %674 = vmatprep.mubr.f32.mxu0 %v4216_v9 }
 0x139   : > { %v420_v22 = vpop.trf.xlu0  ;;  %v452_v31 = vpop.trf.xlu1 }
 0x13a   : > { %3900 = vmatmul.mubr.msk.f32.gmra.mxu0 %vm459_vm2, %v420_v22  ;;  %v335_v22 = vld [vmem:[#allocation2 + $0x50] sm:$0xff] }
 0x13b   : > { %680 = vmatprep.mubr.f32.mxu0 %v4216_v9 }
 0x13d   : > { %v421_v24 = vpop.trf.xlu0  ;;  %v453_v34 = vpop.trf.xlu1 }
 0x13e   : > { %3901 = vmatmul.mubr.msk.f32.gmra.mxu0 %vm459_vm2, %v421_v24 }
 0x13f   : > { %686 = vmatprep.mubr.f32.mxu0 %v4216_v9 }
 0x141   : > { %v422_v26 = vpop.trf.xlu0  ;;  %v454_v36 = vpop.trf.xlu1 }
 0x142   : > { %3902 = vmatmul.mubr.msk.f32.gmra.mxu0 %vm459_vm2, %v422_v26 }
 0x143   : > { %692 = vmatprep.mubr.f32.mxu0 %v4216_v9 }
 0x145   : > { %v423_v27 = vpop.trf.xlu0  ;;  %v455_v39 = vpop.trf.xlu1 }
 0x146   : > { %3903 = vmatmul.mubr.msk.f32.gmra.mxu0 %vm459_vm2, %v423_v27  ;;  %v337_v27 = vld [vmem:[#allocation2 + $0x130] sm:$0xff] }
 0x147   : > { %698 = vmatprep.mubr.f32.mxu0 %v4216_v9 }
 0x149   : > { %v424_v30 = vpop.trf.xlu0  ;;  %v456_v41 = vpop.trf.xlu1 }
 0x14a   : > { %3904 = vmatmul.mubr.msk.f32.gmra.mxu0 %vm459_vm2, %v424_v30 }
 0x14b   : > { %704 = vmatprep.mubr.f32.mxu0 %v4216_v9 }
 0x14d   : > { %v425_v32 = vpop.trf.xlu0  ;;  %v457_v44 = vpop.trf.xlu1 }
 0x14e   : > { %3905 = vmatmul.mubr.msk.f32.gmra.mxu0 %vm459_vm2, %v425_v32 }
 0x14f   : > { %710 = vmatprep.mubr.f32.mxu0 %v4216_v9 }
 0x151   : > { %v426_v33 = vpop.trf.xlu0  ;;  %v458_v46 = vpop.trf.xlu1 }
 0x152   : > { %3906 = vmatmul.mubr.msk.f32.gmra.mxu0 %vm459_vm2, %v426_v33 }
 0x153   : > { %716 = vmatprep.mubr.f32.mxu0 %v4216_v9 }
 0x155   : > { %v1021_v35 = vpop.trf.xlu0  ;;  %v1053_v49 = vpop.trf.xlu1 }
 0x156   : > { %3907 = vmatmul.mubr.msk.f32.gmra.mxu0 %vm459_vm2, %v443_v7  ;;  %3923 = vmatmul.mubr.msk.f32.vlgmr.msra.gmra.mxu1 %vm459_vm2, %v1021_v35 }
 0x157   : > { %1235 = vmatprep.mubr.f32.mxu1 %v4216_v9  ;;  %722 = vmatprep.mubr.f32.mxu0 %v4216_v9 }
 0x159   : > { %v1022_v37 = vpop.trf.xlu0  ;;  %v1054_v51 = vpop.trf.xlu1 }
 0x15a   : > { %3908 = vmatmul.mubr.msk.f32.gmra.mxu0 %vm459_vm2, %v444_v11  ;;  %3924 = vmatmul.mubr.msk.f32.gmra.mxu1 %vm459_vm2, %v1022_v37  ;;  %v340_v37 = vld [vmem:[#allocation2 + $0x110] sm:$0xff] }
 0x15b   : > { %1241 = vmatprep.mubr.f32.mxu1 %v4216_v9  ;;  %728 = vmatprep.mubr.f32.mxu0 %v4216_v9 }
 0x15d   : > { %v1023_v38 = vpop.trf.xlu0  ;;  %v1055_v54 = vpop.trf.xlu1 }
 0x15e   : > { %3909 = vmatmul.mubr.msk.f32.gmra.mxu0 %vm459_vm2, %v445_v10  ;;  %3925 = vmatmul.mubr.msk.f32.gmra.mxu1 %vm459_vm2, %v1023_v38  ;;  %v332_v10 = vld [vmem:[#allocation2 + $0x1b0] sm:$0xff] }
 0x15f   : > { %1247 = vmatprep.mubr.f32.mxu1 %v4216_v9  ;;  %734 = vmatprep.mubr.f32.mxu0 %v4216_v9 }
 0x161   : > { %v1024_v40 = vpop.trf.xlu0  ;;  %v1056_v56 = vpop.trf.xlu1 }
 0x162   : > { %3910 = vmatmul.mubr.msk.f32.gmra.mxu0 %vm459_vm2, %v446_v15  ;;  %3926 = vmatmul.mubr.msk.f32.gmra.mxu1 %vm459_vm2, %v1024_v40  ;;  %v341_v40 = vld [vmem:[#allocation2 + $0x118] sm:$0xff] }
 0x163   : > { %1253 = vmatprep.mubr.f32.mxu1 %v4216_v9  ;;  %740 = vmatprep.mubr.f32.mxu0 %v4216_v9 }
 0x165   : > { %v1025_v42 = vpop.trf.xlu0  ;;  %v1057_v60 = vpop.trf.xlu1 }
 0x166   : > { %3911 = vmatmul.mubr.msk.f32.gmra.mxu0 %vm459_vm2, %v447_v18  ;;  %3927 = vmatmul.mubr.msk.f32.gmra.mxu1 %vm459_vm2, %v1025_v42 }
 0x167   : > { %1259 = vmatprep.mubr.f32.mxu1 %v4216_v9  ;;  %746 = vmatprep.mubr.f32.mxu0 %v4216_v9 }
 0x169   : > { %v1026_v43 = vpop.trf.xlu0  ;;  %v1058_v62 = vpop.trf.xlu1 }
 0x16a   : > { %3912 = vmatmul.mubr.msk.f32.gmra.mxu0 %vm459_vm2, %v448_v20  ;;  %3928 = vmatmul.mubr.msk.f32.gmra.mxu1 %vm459_vm2, %v1026_v43  ;;  %v342_v43 = vld [vmem:[#allocation2 + $0x98] sm:$0xff] }
 0x16b   : > { %1265 = vmatprep.mubr.f32.mxu1 %v4216_v9  ;;  %752 = vmatprep.mubr.f32.mxu0 %v4216_v9 }
 0x16d   : > { %v1027_v45 = vpop.trf.xlu0  ;;  %v1059_v63 = vpop.trf.xlu1 }
 0x16e   : > { %3913 = vmatmul.mubr.msk.f32.gmra.mxu0 %vm459_vm2, %v449_v23  ;;  %3929 = vmatmul.mubr.msk.f32.gmra.mxu1 %vm459_vm2, %v1027_v45 }
 0x16f   : > { %1271 = vmatprep.mubr.f32.mxu1 %v4216_v9  ;;  %758 = vmatprep.mubr.f32.mxu0 %v4216_v9 }
 0x171   : > { %v1028_v47 = vpop.trf.xlu0  ;;  %v1060_v0 = vpop.trf.xlu1 }
 0x172   : > { %3914 = vmatmul.mubr.msk.f32.gmra.mxu0 %vm459_vm2, %v450_v25  ;;  %3930 = vmatmul.mubr.msk.f32.gmra.mxu1 %vm459_vm2, %v1028_v47 }
 0x173   : > { %1277 = vmatprep.mubr.f32.mxu1 %v4216_v9  ;;  %764 = vmatprep.mubr.f32.mxu0 %v4216_v9 }
 0x175   : > { %v1029_v48 = vpop.trf.xlu0  ;;  %v1061_v1 = vpop.trf.xlu1 }
 0x176   : > { %3915 = vmatmul.mubr.msk.f32.gmra.mxu0 %vm459_vm2, %v451_v29  ;;  %3931 = vmatmul.mubr.msk.f32.gmra.mxu1 %vm459_vm2, %v1029_v48 }
 0x177   : > { %1283 = vmatprep.mubr.f32.mxu1 %v4216_v9  ;;  %770 = vmatprep.mubr.f32.mxu0 %v4216_v9 }
 0x179   : > { %v1030_v50 = vpop.trf.xlu0  ;;  %v1062_v2 = vpop.trf.xlu1 }
 0x17a   : > { %3916 = vmatmul.mubr.msk.f32.gmra.mxu0 %vm459_vm2, %v452_v31  ;;  %3932 = vmatmul.mubr.msk.f32.gmra.mxu1 %vm459_vm2, %v1030_v50  ;;  %v338_v31 = vld [vmem:[#allocation2 + $0x48] sm:$0xff] }
 0x17b   : > { %1289 = vmatprep.mubr.f32.mxu1 %v4216_v9  ;;  %776 = vmatprep.mubr.f32.mxu0 %v4216_v9 }
 0x17d   : > { %v1031_v52 = vpop.trf.xlu0  ;;  %v1063_v3 = vpop.trf.xlu1 }
 0x17e   : > { %3917 = vmatmul.mubr.msk.f32.gmra.mxu0 %vm459_vm2, %v453_v34  ;;  %3933 = vmatmul.mubr.msk.f32.gmra.mxu1 %vm459_vm2, %v1031_v52  ;;  %v339_v34 = vld [vmem:[#allocation2 + $0x180] sm:$0xff]  ;;  %v345_v52 = vld [vmem:[#allocation2 + $0x108] sm:$0xff] }
 0x17f   : > { %1295 = vmatprep.mubr.f32.mxu1 %v4216_v9  ;;  %782 = vmatprep.mubr.f32.mxu0 %v4216_v9 }
 0x181   : > { %v1032_v53 = vpop.trf.xlu0  ;;  %v1064_v4 = vpop.trf.xlu1 }
 0x182   : > { %3918 = vmatmul.mubr.msk.f32.gmra.mxu0 %vm459_vm2, %v454_v36  ;;  %3934 = vmatmul.mubr.msk.f32.gmra.mxu1 %vm459_vm2, %v1032_v53 }
 0x183   : > { %1301 = vmatprep.mubr.f32.mxu1 %v4216_v9  ;;  %788 = vmatprep.mubr.f32.mxu0 %v4216_v9 }
 0x185   : > { %v1033_v55 = vpop.trf.xlu0  ;;  %v1065_v5 = vpop.trf.xlu1 }
 0x186   : > { %3919 = vmatmul.mubr.msk.f32.gmra.mxu0 %vm459_vm2, %v455_v39  ;;  %3935 = vmatmul.mubr.msk.f32.gmra.mxu1 %vm459_vm2, %v1033_v55  ;;  %v346_v55 = vld [vmem:[#allocation2 + $0x60] sm:$0xff] }
 0x187   : > { %1307 = vmatprep.mubr.f32.mxu1 %v4216_v9  ;;  %794 = vmatprep.mubr.f32.mxu0 %v4216_v9 }
 0x189   : > { %v1034_v58 = vpop.trf.xlu0  ;;  %v1066_v7 = vpop.trf.xlu1 }
 0x18a   : > { %3920 = vmatmul.mubr.msk.f32.gmra.mxu0 %vm459_vm2, %v456_v41  ;;  %3936 = vmatmul.mubr.msk.f32.gmra.mxu1 %vm459_vm2, %v1034_v58 }
 0x18b   : > { %1313 = vmatprep.mubr.f32.mxu1 %v4216_v9  ;;  %800 = vmatprep.mubr.f32.mxu0 %v4216_v9 }
 0x18d   : > { %v1035_v59 = vpop.trf.xlu0  ;;  %v1067_v8 = vpop.trf.xlu1 }
 0x18e   : > { %3921 = vmatmul.mubr.msk.f32.gmra.mxu0 %vm459_vm2, %v457_v44  ;;  %3937 = vmatmul.mubr.msk.f32.gmra.mxu1 %vm459_vm2, %v1035_v59  ;;  %v347_v59 = vld [vmem:[#allocation2 + $0xe0] sm:$0xff] }
 0x18f   : > { %1319 = vmatprep.mubr.f32.mxu1 %v4216_v9  ;;  %806 = vmatprep.mubr.f32.mxu0 %v4216_v9 }
 0x191   : > { %v1036_v61 = vpop.trf.xlu0  ;;  %v1068_v11 = vpop.trf.xlu1 }
 0x192   : > { %3922 = vmatmul.mubr.msk.f32.gmra.mxu0 %vm459_vm2, %v458_v46  ;;  %3938 = vmatmul.mubr.msk.f32.gmra.mxu1 %vm459_vm2, %v1036_v61  ;;  %v343_v46 = vld [vmem:[#allocation2 + $0x120] sm:$0xff] }
 0x193   : > { %1325 = vmatprep.mubr.f32.mxu1 %v4216_v9 }
 0x196   : > { %3939 = vmatmul.mubr.msk.f32.gmra.mxu1 %vm459_vm2, %v1053_v49  ;;  %v344_v49 = vld [vmem:[#allocation2 + $0x150] sm:$0xff] }
 0x197   : > { %1331 = vmatprep.mubr.f32.mxu1 %v4216_v9 }
 0x19a   : > { %3940 = vmatmul.mubr.msk.f32.gmra.mxu1 %vm459_vm2, %v1054_v51 }
 0x19b   : > { %1337 = vmatprep.mubr.f32.mxu1 %v4216_v9 }
 0x19e   : > { %3941 = vmatmul.mubr.msk.f32.gmra.mxu1 %vm459_vm2, %v1055_v54 }
 0x19f   : > { %1343 = vmatprep.mubr.f32.mxu1 %v4216_v9 }
 0x1a2   : > { %3942 = vmatmul.mubr.msk.f32.gmra.mxu1 %vm459_vm2, %v1056_v56 }
 0x1a3   : > { %1349 = vmatprep.mubr.f32.mxu1 %v4216_v9 }
 0x1a6   : > { %3943 = vmatmul.mubr.msk.f32.gmra.mxu1 %vm459_vm2, %v1057_v60 }
 0x1a7   : > { %1355 = vmatprep.mubr.f32.mxu1 %v4216_v9 }
 0x1aa   : > { %3944 = vmatmul.mubr.msk.f32.gmra.mxu1 %vm459_vm2, %v1058_v62  ;;  %v348_v62 = vld [vmem:[#allocation2 + $0x188] sm:$0xff] }
 0x1ab   : > { %1361 = vmatprep.mubr.f32.mxu1 %v4216_v9 }
 0x1ae   : > { %3945 = vmatmul.mubr.msk.f32.gmra.mxu1 %vm459_vm2, %v1059_v63 }
 0x1af   : > { %1367 = vmatprep.mubr.f32.mxu1 %v4216_v9 }
 0x1b2   : > { %3946 = vmatmul.mubr.msk.f32.gmra.mxu1 %vm459_vm2, %v1060_v0 }
 0x1b3   : > { %1373 = vmatprep.mubr.f32.mxu1 %v4216_v9 }
 0x1b6   : > { %3947 = vmatmul.mubr.msk.f32.gmra.mxu1 %vm459_vm2, %v1061_v1  ;;  %v349_v1 = vld [vmem:[#allocation2 + $0x138] sm:$0xff] }
 0x1b7   : > { %1379 = vmatprep.mubr.f32.mxu1 %v4216_v9 }
 0x1ba   : > { %3948 = vmatmul.mubr.msk.f32.gmra.mxu1 %vm459_vm2, %v1062_v2 }
 0x1bb   : > { %1385 = vmatprep.mubr.f32.mxu1 %v4216_v9 }
 0x1be   : > { %3949 = vmatmul.mubr.msk.f32.gmra.mxu1 %vm459_vm2, %v1063_v3 }
 0x1bf   : > { %1391 = vmatprep.mubr.f32.mxu1 %v4216_v9 }
 0x1c2   : > { %3950 = vmatmul.mubr.msk.f32.gmra.mxu1 %vm459_vm2, %v1064_v4  ;;  %v350_v4 = vld [vmem:[#allocation2 + $0x140] sm:$0xff] }
 0x1c3   : > { %1397 = vmatprep.mubr.f32.mxu1 %v4216_v9 }
 0x1c6   : > { %3951 = vmatmul.mubr.msk.f32.gmra.mxu1 %vm459_vm2, %v1065_v5 }
 0x1c7   : > { %1403 = vmatprep.mubr.f32.mxu1 %v4216_v9 }
 0x1ca   : > { %3952 = vmatmul.mubr.msk.f32.gmra.mxu1 %vm459_vm2, %v1066_v7 }
 0x1cb   : > { %1409 = vmatprep.mubr.f32.mxu1 %v4216_v9 }
 0x1ce   : > { %3953 = vmatmul.mubr.msk.f32.gmra.mxu1 %vm459_vm2, %v1067_v8  ;;  %v351_v8 = vld [vmem:[#allocation2 + $0x80] sm:$0xff] }
 0x1cf   : > { %1415 = vmatprep.mubr.f32.mxu1 %v4216_v9  ;;  %v336_v9 = vld [vmem:[#allocation2 + $0x168] sm:$0xff] }
 0x1d2   : > { %3954 = vmatmul.mubr.msk.f32.gmra.mxu1 %vm459_vm2, %v1068_v11 }
 0x1d6   : > { %v622_v6 = vpop.f32.mrf.mxu0 }
 0x1d7   : > { %v813_v13 = vadd.f32 %v622_v6, %v331_v12  ;;  %v352_v6 = vld [vmem:[#allocation2 + $0x1a8] sm:$0xff] }
 0x1d8   : > { %v624_v15 = vpop.f32.mrf.mxu0 }
 0x1d9   : > { %877 = vst [vmem:[#allocation2 + $0xb0] sm:$0xff] %v813_v13  ;;  %v814_v17 = vadd.f32 %v624_v15, %v332_v10  ;;  %v353_v15 = vld [vmem:[#allocation2 + $0x1b8] sm:$0xff] }
 0x1da   : > { %v628_v18 = vpop.f32.mrf.mxu0 }
 0x1db   : > { %878 = vst [vmem:[#allocation2 + $0x1b0] sm:$0xff] %v814_v17  ;;  %v815_v20 = vadd.f32 %v628_v18, %v333_v16  ;;  %v354_v18 = vld [vmem:[#allocation2 + $0x28] sm:$0xff] }
 0x1dc   : > { %v630_v21 = vpop.f32.mrf.mxu0 }
 0x1dd   : > { %879 = vst [vmem:[#allocation2 + $0xd8] sm:$0xff] %v815_v20  ;;  %v816_v23 = vadd.f32 %v630_v21, %v334_v19  ;;  %v355_v21 = vld [vmem:[#allocation2 + $0x1e8] sm:$0xff] }
 0x1de   : > { %v634_v24 = vpop.f32.mrf.mxu0 }
 0x1df   : > { %880 = vst [vmem:[#allocation2 + $0x18] sm:$0xff] %v816_v23  ;;  %v817_v25 = vadd.f32 %v634_v24, %v335_v22  ;;  %v356_v24 = vld [vmem:[#allocation2 + $0xf8] sm:$0xff] }
 0x1e0   : > { %v636_v26 = vpop.f32.mrf.mxu0 }
 0x1e1   : > { %881 = vst [vmem:[#allocation2 + $0x50] sm:$0xff] %v817_v25  ;;  %v818_v29 = vadd.f32 %v636_v26, %v336_v9  ;;  %v357_v26 = vld [vmem:[#allocation2 + $0x160] sm:$0xff] }
 0x1e2   : > { %v640_v30 = vpop.f32.mrf.mxu0 }
 0x1e3   : > { %882 = vst [vmem:[#allocation2 + $0x168] sm:$0xff] %v818_v29  ;;  %v819_v32 = vadd.f32 %v640_v30, %v337_v27  ;;  %v358_v30 = vld [vmem:[#allocation2 + $0x30] sm:$0xff] }
 0x1e4   : > { %v642_v33 = vpop.f32.mrf.mxu0 }
 0x1e5   : > { %883 = vst [vmem:[#allocation2 + $0x130] sm:$0xff] %v819_v32  ;;  %v820_v35 = vadd.f32 %v642_v33, %v338_v31  ;;  %v359_v33 = vld [vmem:[#allocation2 + $0x1e0] sm:$0xff] }
 0x1e6   : > { %v646_v36 = vpop.f32.mrf.mxu0 }
 0x1e7   : > { %884 = vst [vmem:[#allocation2 + $0x48] sm:$0xff] %v820_v35  ;;  %v821_v38 = vadd.f32 %v646_v36, %v339_v34  ;;  %v360_v36 = vld [vmem:[#allocation2] sm:$0xff] }
 0x1e8   : > { %v648_v39 = vpop.f32.mrf.mxu0 }
 0x1e9   : > { %885 = vst [vmem:[#allocation2 + $0x180] sm:$0xff] %v821_v38  ;;  %v822_v41 = vadd.f32 %v648_v39, %v340_v37  ;;  %v361_v39 = vld [vmem:[#allocation2 + $0xf0] sm:$0xff] }
 0x1ea   : > { %v652_v42 = vpop.f32.mrf.mxu0 }
 0x1eb   : > { %886 = vst [vmem:[#allocation2 + $0x110] sm:$0xff] %v822_v41  ;;  %v823_v44 = vadd.f32 %v652_v42, %v341_v40  ;;  %v362_v42 = vld [vmem:[#allocation2 + $0x8] sm:$0xff] }
 0x1ec   : > { %v654_v45 = vpop.f32.mrf.mxu0 }
 0x1ed   : > { %887 = vst [vmem:[#allocation2 + $0x118] sm:$0xff] %v823_v44  ;;  %v824_v47 = vadd.f32 %v654_v45, %v342_v43  ;;  %v363_v45 = vld [vmem:[#allocation2 + $0x148] sm:$0xff] }
 0x1ee   : > { %v658_v48 = vpop.f32.mrf.mxu0 }
 0x1ef   : > { %888 = vst [vmem:[#allocation2 + $0x98] sm:$0xff] %v824_v47  ;;  %v825_v50 = vadd.f32 %v658_v48, %v343_v46  ;;  %v941_v46 = vld [vmem:[#allocation3 + $0x68] sm:$0xff] }
 0x1f0   : > { %v660_v51 = vpop.f32.mrf.mxu0 }
 0x1f1   : > { %889 = vst [vmem:[#allocation2 + $0x120] sm:$0xff] %v825_v50  ;;  %v826_v53 = vadd.f32 %v660_v51, %v344_v49  ;;  %v364_v50 = vld [vmem:[#allocation2 + $0x1d0] sm:$0xff] }
 0x1f2   : > { %v664_v54 = vpop.f32.mrf.mxu0  ;;  %v942_v51 = vld [vmem:[#allocation3 + $0x150] sm:$0xff] }
 0x1f3   : > { %890 = vst [vmem:[#allocation2 + $0x150] sm:$0xff] %v826_v53  ;;  %v827_v56 = vadd.f32 %v664_v54, %v345_v52 }
 0x1f4   : > { %v666_v58 = vpop.f32.mrf.mxu0 }
 0x1f5   : > { %891 = vst [vmem:[#allocation2 + $0x108] sm:$0xff] %v827_v56  ;;  %v828_v60 = vadd.f32 %v666_v58, %v346_v55  ;;  %v365_v56 = vld [vmem:[#allocation2 + $0x100] sm:$0xff]  ;;  %v943_v58 = vld [vmem:[#allocation3 + $0x70] sm:$0xff] }
 0x1f6   : > { %v670_v61 = vpop.f32.mrf.mxu0 }
 0x1f7   : > { %892 = vst [vmem:[#allocation2 + $0x60] sm:$0xff] %v828_v60  ;;  %v829_v63 = vadd.f32 %v670_v61, %v347_v59 }
 0x1f8   : > { %v672_v0 = vpop.f32.mrf.mxu0 }
 0x1f9   : > { %893 = vst [vmem:[#allocation2 + $0xe0] sm:$0xff] %v829_v63  ;;  %v830_v2 = vadd.f32 %v672_v0, %v348_v62  ;;  %v366_v63 = vld [vmem:[#allocation2 + $0xc8] sm:$0xff]  ;;  %v944_v0 = vld [vmem:[#allocation3 + $0x160] sm:$0xff] }
 0x1fa   : > { %v676_v3 = vpop.f32.mrf.mxu0 }
 0x1fb   : > { %894 = vst [vmem:[#allocation2 + $0x188] sm:$0xff] %v830_v2  ;;  %v831_v5 = vadd.f32 %v676_v3, %v349_v1 }
 0x1fc   : > { %v678_v7 = vpop.f32.mrf.mxu0 }
 0x1fd   : > { %895 = vst [vmem:[#allocation2 + $0x138] sm:$0xff] %v831_v5  ;;  %v832_v11 = vadd.f32 %v678_v7, %v350_v4  ;;  %v367_v5 = vld [vmem:[#allocation2 + $0x40] sm:$0xff]  ;;  %v945_v7 = vld [vmem:[#allocation3 + $0xd0] sm:$0xff] }
 0x1fe   : > { %v682_v12 = vpop.f32.mrf.mxu0 }
 0x1ff   : > { %896 = vst [vmem:[#allocation2 + $0x140] sm:$0xff] %v832_v11  ;;  %v833_v10 = vadd.f32 %v682_v12, %v351_v8 }
 0x200   : > { %v684_v13 = vpop.f32.mrf.mxu0 }
 0x201   : > { %897 = vst [vmem:[#allocation2 + $0x80] sm:$0xff] %v833_v10  ;;  %v834_v16 = vadd.f32 %v684_v13, %v352_v6  ;;  %v368_v10 = vld [vmem:[#allocation2 + $0x1f8] sm:$0xff] }
 0x202   : > { %v688_v17 = vpop.f32.mrf.mxu0  ;;  %v946_v13 = vld [vmem:[#allocation3 + $0xd8] sm:$0xff] }
 0x203   : > { %898 = vst [vmem:[#allocation2 + $0x1a8] sm:$0xff] %v834_v16  ;;  %v835_v19 = vadd.f32 %v688_v17, %v353_v15 }
 0x204   : > { %v690_v20 = vpop.f32.mrf.mxu0 }
 0x205   : > { %899 = vst [vmem:[#allocation2 + $0x1b8] sm:$0xff] %v835_v19  ;;  %v836_v22 = vadd.f32 %v690_v20, %v354_v18  ;;  %v369_v19 = vld [vmem:[#allocation2 + $0x20] sm:$0xff] }
 0x206   : > { %v694_v23 = vpop.f32.mrf.mxu0  ;;  %v947_v20 = vld [vmem:[#allocation3 + $0x1e0] sm:$0xff] }
 0x207   : > { %900 = vst [vmem:[#allocation2 + $0x28] sm:$0xff] %v836_v22  ;;  %v837_v9 = vadd.f32 %v694_v23, %v355_v21 }
 0x208   : > { %v696_v25 = vpop.f32.mrf.mxu0 }
 0x209   : > { %901 = vst [vmem:[#allocation2 + $0x1e8] sm:$0xff] %v837_v9  ;;  %v838_v27 = vadd.f32 %v696_v25, %v356_v24  ;;  %v370_v9 = vld [vmem:[#allocation2 + $0x128] sm:$0xff]  ;;  %v948_v25 = vld [vmem:[#allocation3 + $0x30] sm:$0xff] }
 0x20a   : > { %v700_v29 = vpop.f32.mrf.mxu0 }
 0x20b   : > { %902 = vst [vmem:[#allocation2 + $0xf8] sm:$0xff] %v838_v27  ;;  %v839_v31 = vadd.f32 %v700_v29, %v357_v26 }
 0x20c   : > { %v702_v32 = vpop.f32.mrf.mxu0 }
 0x20d   : > { %903 = vst [vmem:[#allocation2 + $0x160] sm:$0xff] %v839_v31  ;;  %v840_v34 = vadd.f32 %v702_v32, %v358_v30  ;;  %v371_v31 = vld [vmem:[#allocation2 + $0x1a0] sm:$0xff]  ;;  %v949_v32 = vld [vmem:[#allocation3 + $0x148] sm:$0xff] }
 0x20e   : > { %v706_v35 = vpop.f32.mrf.mxu0 }
 0x20f   : > { %904 = vst [vmem:[#allocation2 + $0x30] sm:$0xff] %v840_v34  ;;  %v841_v37 = vadd.f32 %v706_v35, %v359_v33 }
 0x210   : > { %v708_v38 = vpop.f32.mrf.mxu0 }
 0x211   : > { %905 = vst [vmem:[#allocation2 + $0x1e0] sm:$0xff] %v841_v37  ;;  %v842_v40 = vadd.f32 %v708_v38, %v360_v36  ;;  %v372_v37 = vld [vmem:[#allocation2 + $0x1f0] sm:$0xff] }
 0x212   : > { %v712_v41 = vpop.f32.mrf.mxu0  ;;  %v950_v38 = vld [vmem:[#allocation3 + $0x50] sm:$0xff] }
 0x213   : > { %906 = vst [vmem:[#allocation2] sm:$0xff] %v842_v40  ;;  %v843_v43 = vadd.f32 %v712_v41, %v361_v39 }
 0x214   : > { %v714_v44 = vpop.f32.mrf.mxu0 }
 0x215   : > { %907 = vst [vmem:[#allocation2 + $0xf0] sm:$0xff] %v843_v43  ;;  %v844_v47 = vadd.f32 %v714_v44, %v362_v42  ;;  %v373_v43 = vld [vmem:[#allocation2 + $0xe8] sm:$0xff]  ;;  %v951_v44 = vld [vmem:[#allocation3 + $0x1f0] sm:$0xff] }
 0x216   : > { %v718_v48 = vpop.f32.mrf.mxu0  ;;  %v1231_v49 = vpop.f32.mrf.mxu1 }
 0x217   : > { %908 = vst [vmem:[#allocation2 + $0x8] sm:$0xff] %v844_v47  ;;  %v845_v52 = vadd.f32 %v718_v48, %v363_v45  ;;  %v1422_v53 = vadd.f32 %v1231_v49, %v941_v46  ;;  %v374_v49 = vld [vmem:[#allocation2 + $0x78] sm:$0xff] }
 0x218   : > { %v720_v54 = vpop.f32.mrf.mxu0  ;;  %v1233_v55 = vpop.f32.mrf.mxu1 }
 0x219   : > { %909 = vst [vmem:[#allocation2 + $0x148] sm:$0xff] %v845_v52  ;;  %1486 = vst [vmem:[#allocation3 + $0x68] sm:$0xff] %v1422_v53  ;;  %v846_v59 = vadd.f32 %v720_v54, %v364_v50  ;;  %v1423_v60 = vadd.f32 %v1233_v55, %v942_v51  ;;  %v952_v50 = vld [vmem:[#allocation3 + $0x130] sm:$0xff] }
 0x21a   : > { %v724_v61 = vpop.f32.mrf.mxu0  ;;  %v1237_v62 = vpop.f32.mrf.mxu1  ;;  %v375_v55 = vld [vmem:[#allocation2 + $0x70] sm:$0xff] }
 0x21b   : > { %910 = vst [vmem:[#allocation2 + $0x1d0] sm:$0xff] %v846_v59  ;;  %1487 = vst [vmem:[#allocation3 + $0x150] sm:$0xff] %v1423_v60  ;;  %v847_v1 = vadd.f32 %v724_v61, %v365_v56  ;;  %v1424_v2 = vadd.f32 %v1237_v62, %v943_v58  ;;  %v953_v56 = vld [vmem:[#allocation3 + $0x190] sm:$0xff] }
 0x21c   : > { %v726_v3 = vpop.f32.mrf.mxu0  ;;  %v1239_v4 = vpop.f32.mrf.mxu1  ;;  %v376_v62 = vld [vmem:[#allocation2 + $0x90] sm:$0xff] }
 0x21d   : > { %911 = vst [vmem:[#allocation2 + $0x100] sm:$0xff] %v847_v1  ;;  %1488 = vst [vmem:[#allocation3 + $0x70] sm:$0xff] %v1424_v2  ;;  %v848_v8 = vadd.f32 %v726_v3, %v366_v63  ;;  %v1425_v11 = vadd.f32 %v1239_v4, %v944_v0  ;;  %v954_v63 = vld [vmem:[#allocation3 + $0x8] sm:$0xff]  ;;  %v377_v4 = vld [vmem:[#allocation2 + $0x1d8] sm:$0xff] }
 0x21e   : > { %v730_v12 = vpop.f32.mrf.mxu0  ;;  %v1243_v6 = vpop.f32.mrf.mxu1 }
 0x21f   : > { %912 = vst [vmem:[#allocation2 + $0xc8] sm:$0xff] %v848_v8  ;;  %1489 = vst [vmem:[#allocation3 + $0x160] sm:$0xff] %v1425_v11  ;;  %v849_v15 = vadd.f32 %v730_v12, %v367_v5  ;;  %v1426_v16 = vadd.f32 %v1243_v6, %v945_v7  ;;  %v955_v5 = vld [vmem:[#allocation3 + $0x88] sm:$0xff]  ;;  %v378_v6 = vld [vmem:[#allocation2 + $0xd0] sm:$0xff] }
 0x220   : > { %v732_v17 = vpop.f32.mrf.mxu0  ;;  %v1245_v18 = vpop.f32.mrf.mxu1 }
 0x221   : > { %913 = vst [vmem:[#allocation2 + $0x40] sm:$0xff] %v849_v15  ;;  %1490 = vst [vmem:[#allocation3 + $0xd0] sm:$0xff] %v1426_v16  ;;  %v850_v21 = vadd.f32 %v732_v17, %v368_v10  ;;  %v1427_v22 = vadd.f32 %v1245_v18, %v946_v13  ;;  %v956_v10 = vld [vmem:[#allocation3 + $0x38] sm:$0xff] }
 0x222   : > { %v736_v23 = vpop.f32.mrf.mxu0  ;;  %v1249_v24 = vpop.f32.mrf.mxu1  ;;  %v379_v18 = vld [vmem:[#allocation2 + $0xb8] sm:$0xff] }
 0x223   : > { %914 = vst [vmem:[#allocation2 + $0x1f8] sm:$0xff] %v850_v21  ;;  %1491 = vst [vmem:[#allocation3 + $0xd8] sm:$0xff] %v1427_v22  ;;  %v851_v26 = vadd.f32 %v736_v23, %v369_v19  ;;  %v1428_v27 = vadd.f32 %v1249_v24, %v947_v20  ;;  %v957_v19 = vld [vmem:[#allocation3 + $0xe0] sm:$0xff]  ;;  %v380_v24 = vld [vmem:[#allocation2 + $0x88] sm:$0xff] }
 0x224   : > { %v738_v29 = vpop.f32.mrf.mxu0  ;;  %v1251_v30 = vpop.f32.mrf.mxu1 }
 0x225   : > { %915 = vst [vmem:[#allocation2 + $0x20] sm:$0xff] %v851_v26  ;;  %1492 = vst [vmem:[#allocation3 + $0x1e0] sm:$0xff] %v1428_v27  ;;  %v852_v33 = vadd.f32 %v738_v29, %v370_v9  ;;  %v1429_v34 = vadd.f32 %v1251_v30, %v948_v25  ;;  %v958_v9 = vld [vmem:[#allocation3 + $0x10] sm:$0xff]  ;;  %v381_v30 = vld [vmem:[#allocation2 + $0xa8] sm:$0xff] }
 0x226   : > { %v742_v35 = vpop.f32.mrf.mxu0  ;;  %v1255_v36 = vpop.f32.mrf.mxu1 }
 0x227   : > { %916 = vst [vmem:[#allocation2 + $0x128] sm:$0xff] %v852_v33  ;;  %1493 = vst [vmem:[#allocation3 + $0x30] sm:$0xff] %v1429_v34  ;;  %v853_v39 = vadd.f32 %v742_v35, %v371_v31  ;;  %v1430_v40 = vadd.f32 %v1255_v36, %v949_v32  ;;  %v959_v31 = vld [vmem:[#allocation3 + $0x1a8] sm:$0xff] }
 0x228   : > { %v744_v41 = vpop.f32.mrf.mxu0  ;;  %v1257_v42 = vpop.f32.mrf.mxu1  ;;  %v382_v36 = vld [vmem:[#allocation2 + $0x1c8] sm:$0xff] }
 0x229   : > { %917 = vst [vmem:[#allocation2 + $0x1a0] sm:$0xff] %v853_v39  ;;  %1494 = vst [vmem:[#allocation3 + $0x148] sm:$0xff] %v1430_v40  ;;  %v854_v45 = vadd.f32 %v744_v41, %v372_v37  ;;  %v1431_v46 = vadd.f32 %v1257_v42, %v950_v38  ;;  %v960_v37 = vld [vmem:[#allocation3 + $0xa0] sm:$0xff]  ;;  %v383_v42 = vld [vmem:[#allocation2 + $0x170] sm:$0xff] }
 0x22a   : > { %v748_v47 = vpop.f32.mrf.mxu0  ;;  %v1261_v48 = vpop.f32.mrf.mxu1 }
 0x22b   : > { %918 = vst [vmem:[#allocation2 + $0x1f0] sm:$0xff] %v854_v45  ;;  %1495 = vst [vmem:[#allocation3 + $0x50] sm:$0xff] %v1431_v46  ;;  %v855_v51 = vadd.f32 %v748_v47, %v373_v43  ;;  %v1432_v52 = vadd.f32 %v1261_v48, %v951_v44  ;;  %v961_v43 = vld [vmem:[#allocation3 + $0x1c0] sm:$0xff]  ;;  %v384_v48 = vld [vmem:[#allocation2 + $0x178] sm:$0xff] }
 0x22c   : > { %v750_v53 = vpop.f32.mrf.mxu0  ;;  %v1263_v54 = vpop.f32.mrf.mxu1 }
 0x22d   : > { %919 = vst [vmem:[#allocation2 + $0xe8] sm:$0xff] %v855_v51  ;;  %1496 = vst [vmem:[#allocation3 + $0x1f0] sm:$0xff] %v1432_v52  ;;  %v856_v58 = vadd.f32 %v750_v53, %v374_v49  ;;  %v1433_v59 = vadd.f32 %v1263_v54, %v952_v50  ;;  %v962_v49 = vld [vmem:[#allocation3 + $0x78] sm:$0xff]  ;;  %v385_v54 = vld [vmem:[#allocation2 + $0x68] sm:$0xff] }
 0x22e   : > { %v754_v60 = vpop.f32.mrf.mxu0  ;;  %v1267_v61 = vpop.f32.mrf.mxu1 }
 0x22f   : > { %920 = vst [vmem:[#allocation2 + $0x78] sm:$0xff] %v856_v58  ;;  %1497 = vst [vmem:[#allocation3 + $0x130] sm:$0xff] %v1433_v59  ;;  %v857_v0 = vadd.f32 %v754_v60, %v375_v55  ;;  %v1434_v1 = vadd.f32 %v1267_v61, %v953_v56  ;;  %v963_v55 = vld [vmem:[#allocation3 + $0x108] sm:$0xff]  ;;  %v386_v61 = vld [vmem:[#allocation2 + $0x190] sm:$0xff] }
 0x230   : > { %v756_v2 = vpop.f32.mrf.mxu0  ;;  %v1269_v3 = vpop.f32.mrf.mxu1 }
 0x231   : > { %921 = vst [vmem:[#allocation2 + $0x70] sm:$0xff] %v857_v0  ;;  %1498 = vst [vmem:[#allocation3 + $0x190] sm:$0xff] %v1434_v1  ;;  %v858_v7 = vadd.f32 %v756_v2, %v376_v62  ;;  %v1435_v8 = vadd.f32 %v1269_v3, %v954_v63  ;;  %v964_v62 = vld [vmem:[#allocation3 + $0x80] sm:$0xff]  ;;  %v387_v3 = vld [vmem:[#allocation2 + $0x198] sm:$0xff] }
 0x232   : > { %v760_v11 = vpop.f32.mrf.mxu0  ;;  %v1273_v12 = vpop.f32.mrf.mxu1 }
 0x233   : > { %922 = vst [vmem:[#allocation2 + $0x90] sm:$0xff] %v858_v7  ;;  %1499 = vst [vmem:[#allocation3 + $0x8] sm:$0xff] %v1435_v8  ;;  %v859_v13 = vadd.f32 %v760_v11, %v377_v4  ;;  %v1436_v15 = vadd.f32 %v1273_v12, %v955_v5  ;;  %v965_v4 = vld [vmem:[#allocation3 + $0x58] sm:$0xff] }
 0x234   : > { %v762_v16 = vpop.f32.mrf.mxu0  ;;  %v1275_v17 = vpop.f32.mrf.mxu1  ;;  %v388_v12 = vld [vmem:[#allocation2 + $0x38] sm:$0xff] }
 0x235   : > { %923 = vst [vmem:[#allocation2 + $0x1d8] sm:$0xff] %v859_v13  ;;  %1500 = vst [vmem:[#allocation3 + $0x88] sm:$0xff] %v1436_v15  ;;  %v860_v20 = vadd.f32 %v762_v16, %v378_v6  ;;  %v1437_v21 = vadd.f32 %v1275_v17, %v956_v10  ;;  %v966_v6 = vld [vmem:[#allocation3 + $0x48] sm:$0xff]  ;;  %v389_v17 = vld [vmem:[#allocation2 + $0xc0] sm:$0xff] }
 0x236   : > { %v766_v22 = vpop.f32.mrf.mxu0  ;;  %v1279_v23 = vpop.f32.mrf.mxu1 }
 0x237   : > { %924 = vst [vmem:[#allocation2 + $0xd0] sm:$0xff] %v860_v20  ;;  %1501 = vst [vmem:[#allocation3 + $0x38] sm:$0xff] %v1437_v21  ;;  %v861_v25 = vadd.f32 %v766_v22, %v379_v18  ;;  %v1438_v26 = vadd.f32 %v1279_v23, %v957_v19  ;;  %v967_v18 = vld [vmem:[#allocation3 + $0x40] sm:$0xff] }
 0x238   : > { %v768_v27 = vpop.f32.mrf.mxu0  ;;  %v1281_v29 = vpop.f32.mrf.mxu1  ;;  %v390_v23 = vld [vmem:[#allocation2 + $0x1c0] sm:$0xff] }
 0x239   : > { %925 = vst [vmem:[#allocation2 + $0xb8] sm:$0xff] %v861_v25  ;;  %1502 = vst [vmem:[#allocation3 + $0xe0] sm:$0xff] %v1438_v26  ;;  %v862_v32 = vadd.f32 %v768_v27, %v380_v24  ;;  %v1439_v33 = vadd.f32 %v1281_v29, %v958_v9  ;;  %v968_v24 = vld [vmem:[#allocation3 + $0x1a0] sm:$0xff]  ;;  %v391_v29 = vld [vmem:[#allocation2 + $0x158] sm:$0xff] }
 0x23a   : > { %v772_v34 = vpop.f32.mrf.mxu0  ;;  %v1285_v35 = vpop.f32.mrf.mxu1 }
 0x23b   : > { %926 = vst [vmem:[#allocation2 + $0x88] sm:$0xff] %v862_v32  ;;  %1503 = vst [vmem:[#allocation3 + $0x10] sm:$0xff] %v1439_v33  ;;  %v863_v38 = vadd.f32 %v772_v34, %v381_v30  ;;  %v1440_v39 = vadd.f32 %v1285_v35, %v959_v31  ;;  %v969_v30 = vld [vmem:[#allocation3 + $0x198] sm:$0xff]  ;;  %v392_v35 = vld [vmem:[#allocation2 + $0x10] sm:$0xff] }
 0x23c   : > { %v774_v40 = vpop.f32.mrf.mxu0  ;;  %v1287_v41 = vpop.f32.mrf.mxu1 }
 0x23d   : > { %927 = vst [vmem:[#allocation2 + $0xa8] sm:$0xff] %v863_v38  ;;  %1504 = vst [vmem:[#allocation3 + $0x1a8] sm:$0xff] %v1440_v39  ;;  %v864_v44 = vadd.f32 %v774_v40, %v382_v36  ;;  %v1441_v45 = vadd.f32 %v1287_v41, %v960_v37  ;;  %v970_v36 = vld [vmem:[#allocation3 + $0xe8] sm:$0xff]  ;;  %v393_v41 = vld [vmem:[#allocation2 + $0x58] sm:$0xff] }
 0x23e   : > { %v778_v46 = vpop.f32.mrf.mxu0  ;;  %v1291_v47 = vpop.f32.mrf.mxu1 }
 0x23f   : > { %928 = vst [vmem:[#allocation2 + $0x1c8] sm:$0xff] %v864_v44  ;;  %1505 = vst [vmem:[#allocation3 + $0xa0] sm:$0xff] %v1441_v45  ;;  %v865_v50 = vadd.f32 %v778_v46, %v383_v42  ;;  %v1442_v51 = vadd.f32 %v1291_v47, %v961_v43  ;;  %v971_v42 = vld [vmem:[#allocation3 + $0x168] sm:$0xff]  ;;  %v394_v47 = vld [vmem:[#allocation2 + $0xa0] sm:$0xff] }
 0x240   : > { %v780_v52 = vpop.f32.mrf.mxu0  ;;  %v1293_v53 = vpop.f32.mrf.mxu1 }
 0x241   : > { %929 = vst [vmem:[#allocation2 + $0x170] sm:$0xff] %v865_v50  ;;  %1506 = vst [vmem:[#allocation3 + $0x1c0] sm:$0xff] %v1442_v51  ;;  %v866_v56 = vadd.f32 %v780_v52, %v384_v48  ;;  %v1443_v58 = vadd.f32 %v1293_v53, %v962_v49  ;;  %v972_v48 = vld [vmem:[#allocation3 + $0x158] sm:$0xff] }
 0x242   : > { %v784_v59 = vpop.f32.mrf.mxu0  ;;  %v1297_v60 = vpop.f32.mrf.mxu1  ;;  %v973_v53 = vld [vmem:[#allocation3 + $0x1d8] sm:$0xff] }
 0x243   : > { %930 = vst [vmem:[#allocation2 + $0x178] sm:$0xff] %v866_v56  ;;  %1507 = vst [vmem:[#allocation3 + $0x78] sm:$0xff] %v1443_v58  ;;  %v867_v63 = vadd.f32 %v784_v59, %v385_v54  ;;  %v1444_v0 = vadd.f32 %v1297_v60, %v963_v55  ;;  %v974_v58 = vld [vmem:[#allocation3 + $0x28] sm:$0xff] }
 0x244   : > { %v786_v1 = vpop.f32.mrf.mxu0  ;;  %v1299_v2 = vpop.f32.mrf.mxu1 }
 0x245   : > { %931 = vst [vmem:[#allocation2 + $0x68] sm:$0xff] %v867_v63  ;;  %1508 = vst [vmem:[#allocation3 + $0x108] sm:$0xff] %v1444_v0  ;;  %v868_v5 = vadd.f32 %v786_v1, %v386_v61  ;;  %v1445_v7 = vadd.f32 %v1299_v2, %v964_v62  ;;  %v975_v61 = vld [vmem:[#allocation3] sm:$0xff]  ;;  %v976_v0 = vld [vmem:[#allocation3 + $0x1c8] sm:$0xff] }
 0x246   : > { %v790_v8 = vpop.f32.mrf.mxu0  ;;  %v1303_v11 = vpop.f32.mrf.mxu1 }
 0x247   : > { %932 = vst [vmem:[#allocation2 + $0x190] sm:$0xff] %v868_v5  ;;  %1509 = vst [vmem:[#allocation3 + $0x80] sm:$0xff] %v1445_v7  ;;  %v869_v10 = vadd.f32 %v790_v8, %v387_v3  ;;  %v1446_v13 = vadd.f32 %v1303_v11, %v965_v4  ;;  %v977_v3 = vld [vmem:[#allocation3 + $0x1e8] sm:$0xff]  ;;  %v978_v7 = vld [vmem:[#allocation3 + $0x140] sm:$0xff] }
 0x248   : > { %v792_v15 = vpop.f32.mrf.mxu0  ;;  %v1305_v16 = vpop.f32.mrf.mxu1 }
 0x249   : > { %933 = vst [vmem:[#allocation2 + $0x198] sm:$0xff] %v869_v10  ;;  %1510 = vst [vmem:[#allocation3 + $0x58] sm:$0xff] %v1446_v13  ;;  %v870_v19 = vadd.f32 %v792_v15, %v388_v12  ;;  %v1447_v20 = vadd.f32 %v1305_v16, %v966_v6  ;;  %v979_v12 = vld [vmem:[#allocation3 + $0x60] sm:$0xff]  ;;  %v980_v13 = vld [vmem:[#allocation3 + $0x98] sm:$0xff] }
 0x24a   : > { %v796_v21 = vpop.f32.mrf.mxu0  ;;  %v1309_v22 = vpop.f32.mrf.mxu1 }
 0x24b   : > { %934 = vst [vmem:[#allocation2 + $0x38] sm:$0xff] %v870_v19  ;;  %1511 = vst [vmem:[#allocation3 + $0x48] sm:$0xff] %v1447_v20  ;;  %v871_v9 = vadd.f32 %v796_v21, %v389_v17  ;;  %v1448_v25 = vadd.f32 %v1309_v22, %v967_v18  ;;  %v981_v17 = vld [vmem:[#allocation3 + $0x1b8] sm:$0xff]  ;;  %v982_v20 = vld [vmem:[#allocation3 + $0x100] sm:$0xff] }
 0x24c   : > { %v798_v26 = vpop.f32.mrf.mxu0  ;;  %v1311_v27 = vpop.f32.mrf.mxu1 }
 0x24d   : > { %935 = vst [vmem:[#allocation2 + $0xc0] sm:$0xff] %v871_v9  ;;  %1512 = vst [vmem:[#allocation3 + $0x40] sm:$0xff] %v1448_v25  ;;  %v872_v31 = vadd.f32 %v798_v26, %v390_v23  ;;  %v1449_v32 = vadd.f32 %v1311_v27, %v968_v24  ;;  %v983_v23 = vld [vmem:[#allocation3 + $0xc8] sm:$0xff]  ;;  %v984_v25 = vld [vmem:[#allocation3 + $0xf8] sm:$0xff] }
 0x24e   : > { %v802_v33 = vpop.f32.mrf.mxu0  ;;  %v1315_v34 = vpop.f32.mrf.mxu1 }
 0x24f   : > { %936 = vst [vmem:[#allocation2 + $0x1c0] sm:$0xff] %v872_v31  ;;  %1513 = vst [vmem:[#allocation3 + $0x1a0] sm:$0xff] %v1449_v32  ;;  %v873_v37 = vadd.f32 %v802_v33, %v391_v29  ;;  %v1450_v38 = vadd.f32 %v1315_v34, %v969_v30  ;;  %v985_v29 = vld [vmem:[#allocation3 + $0x178] sm:$0xff]  ;;  %v986_v32 = vld [vmem:[#allocation3 + $0x180] sm:$0xff] }
 0x250   : > { %v804_v39 = vpop.f32.mrf.mxu0  ;;  %v1317_v40 = vpop.f32.mrf.mxu1 }
 0x251   : > { %937 = vst [vmem:[#allocation2 + $0x158] sm:$0xff] %v873_v37  ;;  %1514 = vst [vmem:[#allocation3 + $0x198] sm:$0xff] %v1450_v38  ;;  %v874_v43 = vadd.f32 %v804_v39, %v392_v35  ;;  %v1451_v44 = vadd.f32 %v1317_v40, %v970_v36  ;;  %v987_v35 = vld [vmem:[#allocation3 + $0xb0] sm:$0xff] }
 0x252   : > { %v808_v45 = vpop.f32.mrf.mxu0  ;;  %v1321_v46 = vpop.f32.mrf.mxu1  ;;  %v988_v38 = vld [vmem:[#allocation3 + $0x110] sm:$0xff] }
 0x253   : > { %938 = vst [vmem:[#allocation2 + $0x10] sm:$0xff] %v874_v43  ;;  %1515 = vst [vmem:[#allocation3 + $0xe8] sm:$0xff] %v1451_v44  ;;  %v875_v49 = vadd.f32 %v808_v45, %v393_v41  ;;  %v1452_v50 = vadd.f32 %v1321_v46, %v971_v42  ;;  %v989_v41 = vld [vmem:[#allocation3 + $0x20] sm:$0xff]  ;;  %v990_v44 = vld [vmem:[#allocation3 + $0xb8] sm:$0xff] }
 0x254   : > { %v810_v51 = vpop.f32.mrf.mxu0  ;;  %v1323_v52 = vpop.f32.mrf.mxu1 }
 0x255   : > { %939 = vst [vmem:[#allocation2 + $0x58] sm:$0xff] %v875_v49  ;;  %1516 = vst [vmem:[#allocation3 + $0x168] sm:$0xff] %v1452_v50  ;;  %v876_v54 = vadd.f32 %v810_v51, %v394_v47  ;;  %v1453_v55 = vadd.f32 %v1323_v52, %v972_v48  ;;  %v991_v47 = vld [vmem:[#allocation3 + $0x120] sm:$0xff]  ;;  %v992_v50 = vld [vmem:[#allocation3 + $0x90] sm:$0xff] }
 0x256   : > { %v1327_v56 = vpop.f32.mrf.mxu1 }
 0x257   : > { %940 = vst [vmem:[#allocation2 + $0xa0] sm:$0xff] %v876_v54  ;;  %1517 = vst [vmem:[#allocation3 + $0x158] sm:$0xff] %v1453_v55  ;;  %v1454_v59 = vadd.f32 %v1327_v56, %v973_v53  ;;  %v993_v53 = vld [vmem:[#allocation3 + $0xa8] sm:$0xff]  ;;  %v994_v56 = vld [vmem:[#allocation3 + $0xc0] sm:$0xff] }
 0x258   : > { %v1329_v60 = vpop.f32.mrf.mxu1 }
 0x259   : > { %1518 = vst [vmem:[#allocation3 + $0x1d8] sm:$0xff] %v1454_v59  ;;  %v1455_v62 = vadd.f32 %v1329_v60, %v974_v58  ;;  %v995_v60 = vld [vmem:[#allocation3 + $0x138] sm:$0xff] }
 0x25a   : > { %v1333_v63 = vpop.f32.mrf.mxu1 }
 0x25b   : > { %1519 = vst [vmem:[#allocation3 + $0x28] sm:$0xff] %v1455_v62  ;;  %v1456_v1 = vadd.f32 %v1333_v63, %v975_v61  ;;  %v996_v63 = vld [vmem:[#allocation3 + $0x188] sm:$0xff] }
 0x25c   : > { %v1335_v2 = vpop.f32.mrf.mxu1 }
 0x25d   : > { %1520 = vst [vmem:[#allocation3] sm:$0xff] %v1456_v1  ;;  %v1457_v4 = vadd.f32 %v1335_v2, %v976_v0  ;;  %v997_v2 = vld [vmem:[#allocation3 + $0x1b0] sm:$0xff] }
 0x25e   : > { %v1339_v5 = vpop.f32.mrf.mxu1 }
 0x25f   : > { %1521 = vst [vmem:[#allocation3 + $0x1c8] sm:$0xff] %v1457_v4  ;;  %v1458_v8 = vadd.f32 %v1339_v5, %v977_v3  ;;  %v998_v5 = vld [vmem:[#allocation3 + $0x18] sm:$0xff] }
 0x260   : > { %v1341_v11 = vpop.f32.mrf.mxu1 }
 0x261   : > { %1522 = vst [vmem:[#allocation3 + $0x1e8] sm:$0xff] %v1458_v8  ;;  %v1459_v6 = vadd.f32 %v1341_v11, %v978_v7  ;;  %v999_v11 = vld [vmem:[#allocation3 + $0xf0] sm:$0xff] }
 0x262   : > { %v1345_v10 = vpop.f32.mrf.mxu1 }
 0x263   : > { %1523 = vst [vmem:[#allocation3 + $0x140] sm:$0xff] %v1459_v6  ;;  %v1460_v15 = vadd.f32 %v1345_v10, %v979_v12  ;;  %v1000_v10 = vld [vmem:[#allocation3 + $0x128] sm:$0xff] }
 0x264   : > { %v1347_v16 = vpop.f32.mrf.mxu1 }
 0x265   : > { %1524 = vst [vmem:[#allocation3 + $0x60] sm:$0xff] %v1460_v15  ;;  %v1461_v18 = vadd.f32 %v1347_v16, %v980_v13  ;;  %v1001_v16 = vld [vmem:[#allocation3 + $0x1f8] sm:$0xff] }
 0x266   : > { %v1351_v19 = vpop.f32.mrf.mxu1 }
 0x267   : > { %1525 = vst [vmem:[#allocation3 + $0x98] sm:$0xff] %v1461_v18  ;;  %v1462_v21 = vadd.f32 %v1351_v19, %v981_v17  ;;  %v1002_v19 = vld [vmem:[#allocation3 + $0x170] sm:$0xff] }
 0x268   : > { %v1353_v22 = vpop.f32.mrf.mxu1 }
 0x269   : > { %1526 = vst [vmem:[#allocation3 + $0x1b8] sm:$0xff] %v1462_v21  ;;  %v1463_v24 = vadd.f32 %v1353_v22, %v982_v20  ;;  %v1003_v22 = vld [vmem:[#allocation3 + $0x1d0] sm:$0xff] }
 0x26a   : > { %v1357_v9 = vpop.f32.mrf.mxu1 }
 0x26b   : > { %1527 = vst [vmem:[#allocation3 + $0x100] sm:$0xff] %v1463_v24  ;;  %v1464_v26 = vadd.f32 %v1357_v9, %v983_v23  ;;  %v1004_v9 = vld [vmem:[#allocation3 + $0x118] sm:$0xff] }
 0x26c   : > { %v1359_v27 = vpop.f32.mrf.mxu1 }
 0x26d   : > { %1528 = vst [vmem:[#allocation3 + $0xc8] sm:$0xff] %v1464_v26  ;;  %v1465_v30 = vadd.f32 %v1359_v27, %v984_v25 }
 0x26e   : > { %v1363_v31 = vpop.f32.mrf.mxu1 }
 0x26f   : > { %1529 = vst [vmem:[#allocation3 + $0xf8] sm:$0xff] %v1465_v30  ;;  %v1466_v33 = vadd.f32 %v1363_v31, %v985_v29 }
 0x270   : > { %v1365_v34 = vpop.f32.mrf.mxu1 }
 0x271   : > { %1530 = vst [vmem:[#allocation3 + $0x178] sm:$0xff] %v1466_v33  ;;  %v1467_v36 = vadd.f32 %v1365_v34, %v986_v32 }
 0x272   : > { %v1369_v37 = vpop.f32.mrf.mxu1 }
 0x273   : > { %1531 = vst [vmem:[#allocation3 + $0x180] sm:$0xff] %v1467_v36  ;;  %v1468_v39 = vadd.f32 %v1369_v37, %v987_v35 }
 0x274   : > { %v1371_v40 = vpop.f32.mrf.mxu1 }
 0x275   : > { %1532 = vst [vmem:[#allocation3 + $0xb0] sm:$0xff] %v1468_v39  ;;  %v1469_v42 = vadd.f32 %v1371_v40, %v988_v38 }
 0x276   : > { %v1375_v43 = vpop.f32.mrf.mxu1 }
 0x277   : > { %1533 = vst [vmem:[#allocation3 + $0x110] sm:$0xff] %v1469_v42  ;;  %v1470_v45 = vadd.f32 %v1375_v43, %v989_v41 }
 0x278   : > { %v1377_v46 = vpop.f32.mrf.mxu1 }
 0x279   : > { %1534 = vst [vmem:[#allocation3 + $0x20] sm:$0xff] %v1470_v45  ;;  %v1471_v48 = vadd.f32 %v1377_v46, %v990_v44 }
 0x27a   : > { %v1381_v49 = vpop.f32.mrf.mxu1 }
 0x27b   : > { %1535 = vst [vmem:[#allocation3 + $0xb8] sm:$0xff] %v1471_v48  ;;  %v1472_v51 = vadd.f32 %v1381_v49, %v991_v47 }
 0x27c   : > { %v1383_v52 = vpop.f32.mrf.mxu1 }
 0x27d   : > { %1536 = vst [vmem:[#allocation3 + $0x120] sm:$0xff] %v1472_v51  ;;  %v1473_v54 = vadd.f32 %v1383_v52, %v992_v50 }
 0x27e   : > { %v1387_v55 = vpop.f32.mrf.mxu1 }
 0x27f   : > { %1537 = vst [vmem:[#allocation3 + $0x90] sm:$0xff] %v1473_v54  ;;  %v1474_v58 = vadd.f32 %v1387_v55, %v993_v53 }
 0x280   : > { %v1389_v59 = vpop.f32.mrf.mxu1 }
 0x281   : > { %1538 = vst [vmem:[#allocation3 + $0xa8] sm:$0xff] %v1474_v58  ;;  %v1475_v61 = vadd.f32 %v1389_v59, %v994_v56 }
 0x282   : > { %v1393_v62 = vpop.f32.mrf.mxu1 }
 0x283   : > { %1539 = vst [vmem:[#allocation3 + $0xc0] sm:$0xff] %v1475_v61  ;;  %v1476_v0 = vadd.f32 %v1393_v62, %v995_v60 }
 0x284   : > { %v1395_v1 = vpop.f32.mrf.mxu1 }
 0x285   : > { %1540 = vst [vmem:[#allocation3 + $0x138] sm:$0xff] %v1476_v0  ;;  %v1477_v3 = vadd.f32 %v1395_v1, %v996_v63 }
 0x286   : > { %v1399_v4 = vpop.f32.mrf.mxu1 }
 0x287   : > { %1541 = vst [vmem:[#allocation3 + $0x188] sm:$0xff] %v1477_v3  ;;  %v1478_v7 = vadd.f32 %v1399_v4, %v997_v2 }
 0x288   : > { %v1401_v8 = vpop.f32.mrf.mxu1 }
 0x289   : > { %1542 = vst [vmem:[#allocation3 + $0x1b0] sm:$0xff] %v1478_v7  ;;  %v1479_v12 = vadd.f32 %v1401_v8, %v998_v5 }
 0x28a   : > { %v1405_v6 = vpop.f32.mrf.mxu1 }
 0x28b   : > { %1543 = vst [vmem:[#allocation3 + $0x18] sm:$0xff] %v1479_v12  ;;  %v1480_v13 = vadd.f32 %v1405_v6, %v999_v11 }
 0x28c   : > { %v1407_v15 = vpop.f32.mrf.mxu1 }
 0x28d   : > { %1544 = vst [vmem:[#allocation3 + $0xf0] sm:$0xff] %v1480_v13  ;;  %v1481_v17 = vadd.f32 %v1407_v15, %v1000_v10 }
 0x28e   : > { %v1411_v18 = vpop.f32.mrf.mxu1 }
 0x28f   : > { %1545 = vst [vmem:[#allocation3 + $0x128] sm:$0xff] %v1481_v17  ;;  %v1482_v20 = vadd.f32 %v1411_v18, %v1001_v16 }
 0x290   : > { %v1413_v21 = vpop.f32.mrf.mxu1 }
 0x291   : > { %1546 = vst [vmem:[#allocation3 + $0x1f8] sm:$0xff] %v1482_v20  ;;  %v1483_v23 = vadd.f32 %v1413_v21, %v1002_v19 }
 0x292   : > { %v1417_v24 = vpop.f32.mrf.mxu1 }
 0x293   : > { %1547 = vst [vmem:[#allocation3 + $0x170] sm:$0xff] %v1483_v23  ;;  %v1484_v25 = vadd.f32 %v1417_v24, %v1003_v22  ;;  %1660 = sbr.rel (%p3955_p8) target bundleno = 1464 (0x5b8), region = 44 }
 0x294   : > { %v1419_v26 = vpop.f32.mrf.mxu1 }
 0x295   : > { %1548 = vst [vmem:[#allocation3 + $0x1d0] sm:$0xff] %v1484_v25  ;;  %v1485_v27 = vadd.f32 %v1419_v26, %v1004_v9 }
 0x297   : > { %1549 = vst [vmem:[#allocation3 + $0x118] sm:$0xff] %v1485_v27 }
 0x298   : > { %v1661_v29 = vld [vmem:[#allocation4] sm:$0x3]  ;;  %v4218_v31 = vmov 0.0   ;;  %v1663_v32 = vld [vmem:[#allocation5] sm:$0x3] }
 0x299   : > { %v1662_v30 = vmul.f32 0.03125, %v1661_v29  ;;  %1993 = vmatprep.mubr.f32.mxu0 %v4218_v31  ;;  %2960 = vmatprep.mubr.f32.mxu1 %v4218_v31  ;;  %v1664_v33 = vmul.f32 0.03125, %v1663_v32 }
 0x29b   : > { %1765 = vst.msk [vmem:[#allocation7] ss:$8 sm:$0x3] %vm4531_vm1, %v1662_v30 }
 0x2a2   : > { %v1767_v34 = vld [vmem:[#allocation7] sm:$0xff]  ;;  %v1768_v35 = vld [vmem:[#allocation7 + $0x8] sm:$0xff] }
 0x2a3   : > { %1769 = vxpose.xlu0.b32.start.end [1/1] (short) %v1767_v34, 128  ;;  %1801 = vxpose.xlu1.b32.start.end [1/1] (short) %v1768_v35, 128  ;;  %2732 = vst.msk [vmem:[#allocation7] ss:$8 sm:$0x3] %vm4531_vm1, %v1664_v33 }
 0x2a4   : > { %1959 = vmatprep.subr.mxu0 %v1768_v35 }
 0x2a5   : > { %1960 = vmatpush1.msra.mxu0 %v1767_v34 }
 0x2aa   : > { %v2735_v36 = vld [vmem:[#allocation7 + $0x8] sm:$0xff]  ;;  %v2734_v37 = vld [vmem:[#allocation7] sm:$0xff] }
 0x2ab   : > { %2926 = vmatprep.subr.mxu1 %v2735_v36 }
 0x2ac   : > { %2927 = vmatpush1.msra.mxu1 %v2734_v37 }
 0x2e0   : > { %2736 = vxpose.xlu0.b32.start.end [1/1] (short) %v2734_v37, 128  ;;  %2768 = vxpose.xlu1.b32.start.end [1/1] (short) %v2735_v36, 128 }
 0x31f   : > { %v1785_v38 = vpop.trf.xlu0  ;;  %v1817_v39 = vpop.trf.xlu1 }
 0x320   : > { %3956 = vmatmul.mubr.msk.f32.vlgmr.msra.gmra.mxu0 %vm459_vm2, %v1785_v38 }
 0x321   : > { %1999 = vmatprep.mubr.f32.mxu0 %v4218_v31 }
 0x323   : > { %v1786_v40 = vpop.trf.xlu0  ;;  %v1818_v57 = vpop.trf.xlu1 }
 0x324   : > { %3957 = vmatmul.mubr.msk.f32.gmra.mxu0 %vm459_vm2, %v1786_v40 }
 0x325   : > { %2005 = vmatprep.mubr.f32.mxu0 %v4218_v31 }
 0x327   : > { %v1787_v41 = vpop.trf.xlu0  ;;  %v1819_v43 = vpop.trf.xlu1 }
 0x328   : > { %3958 = vmatmul.mubr.msk.f32.gmra.mxu0 %vm459_vm2, %v1787_v41  ;;  %v2186_v41 = vld [vmem:[#allocation2 + $0xb0] sm:$0xff] }
 0x329   : > { %2011 = vmatprep.mubr.f32.mxu0 %v4218_v31 }
 0x32b   : > { %v1788_v42 = vpop.trf.xlu0  ;;  %v1820_v45 = vpop.trf.xlu1 }
 0x32c   : > { %3959 = vmatmul.mubr.msk.f32.gmra.mxu0 %vm459_vm2, %v1788_v42 }
 0x32d   : > { %2017 = vmatprep.mubr.f32.mxu0 %v4218_v31 }
 0x32f   : > { %v1789_v44 = vpop.trf.xlu0  ;;  %v1821_v48 = vpop.trf.xlu1 }
 0x330   : > { %3960 = vmatmul.mubr.msk.f32.gmra.mxu0 %vm459_vm2, %v1789_v44  ;;  %v2187_v44 = vld [vmem:[#allocation2 + $0x1b0] sm:$0xff] }
 0x331   : > { %2023 = vmatprep.mubr.f32.mxu0 %v4218_v31 }
 0x333   : > { %v1790_v46 = vpop.trf.xlu0  ;;  %v1822_v50 = vpop.trf.xlu1 }
 0x334   : > { %3961 = vmatmul.mubr.msk.f32.gmra.mxu0 %vm459_vm2, %v1790_v46 }
 0x335   : > { %2029 = vmatprep.mubr.f32.mxu0 %v4218_v31 }
 0x337   : > { %v1791_v47 = vpop.trf.xlu0  ;;  %v1823_v53 = vpop.trf.xlu1 }
 0x338   : > { %3962 = vmatmul.mubr.msk.f32.gmra.mxu0 %vm459_vm2, %v1791_v47 }
 0x339   : > { %2035 = vmatprep.mubr.f32.mxu0 %v4218_v31 }
 0x33b   : > { %v1792_v49 = vpop.trf.xlu0  ;;  %v1824_v55 = vpop.trf.xlu1 }
 0x33c   : > { %3963 = vmatmul.mubr.msk.f32.gmra.mxu0 %vm459_vm2, %v1792_v49 }
 0x33d   : > { %2041 = vmatprep.mubr.f32.mxu0 %v4218_v31 }
 0x33f   : > { %v1793_v51 = vpop.trf.xlu0  ;;  %v1825_v59 = vpop.trf.xlu1 }
 0x340   : > { %3964 = vmatmul.mubr.msk.f32.gmra.mxu0 %vm459_vm2, %v1793_v51 }
 0x341   : > { %2047 = vmatprep.mubr.f32.mxu0 %v4218_v31 }
 0x343   : > { %v1794_v52 = vpop.trf.xlu0  ;;  %v1826_v61 = vpop.trf.xlu1 }
 0x344   : > { %3965 = vmatmul.mubr.msk.f32.gmra.mxu0 %vm459_vm2, %v1794_v52 }
 0x345   : > { %2053 = vmatprep.mubr.f32.mxu0 %v4218_v31 }
 0x347   : > { %v1795_v54 = vpop.trf.xlu0  ;;  %v1827_v0 = vpop.trf.xlu1 }
 0x348   : > { %3966 = vmatmul.mubr.msk.f32.gmra.mxu0 %vm459_vm2, %v1795_v54  ;;  %v4809_v54 = vadd.s32 16, %v4527_v28 }
 0x349   : > { %2059 = vmatprep.mubr.f32.mxu0 %v4218_v31 }
 0x34b   : > { %v1796_v56 = vpop.trf.xlu0  ;;  %v1828_v2 = vpop.trf.xlu1 }
 0x34c   : > { %3967 = vmatmul.mubr.msk.f32.gmra.mxu0 %vm459_vm2, %v1796_v56  ;;  %v2189_v56 = vld [vmem:[#allocation2 + $0x18] sm:$0xff] }
 0x34d   : > { %2065 = vmatprep.mubr.f32.mxu0 %v4218_v31 }
 0x34f   : > { %v1797_v58 = vpop.trf.xlu0  ;;  %v1829_v5 = vpop.trf.xlu1 }
 0x350   : > { %3968 = vmatmul.mubr.msk.f32.gmra.mxu0 %vm459_vm2, %v1797_v58 }
 0x351   : > { %2071 = vmatprep.mubr.f32.mxu0 %v4218_v31 }
 0x353   : > { %v1798_v60 = vpop.trf.xlu0  ;;  %v1830_v8 = vpop.trf.xlu1 }
 0x354   : > { %3969 = vmatmul.mubr.msk.f32.gmra.mxu0 %vm459_vm2, %v1798_v60  ;;  %v2190_v60 = vld [vmem:[#allocation2 + $0x50] sm:$0xff] }
 0x355   : > { %2077 = vmatprep.mubr.f32.mxu0 %v4218_v31 }
 0x357   : > { %v1799_v62 = vpop.trf.xlu0  ;;  %v1831_v6 = vpop.trf.xlu1 }
 0x358   : > { %3970 = vmatmul.mubr.msk.f32.gmra.mxu0 %vm459_vm2, %v1799_v62 }
 0x359   : > { %2083 = vmatprep.mubr.f32.mxu0 %v4218_v31 }
 0x35b   : > { %v1800_v63 = vpop.trf.xlu0  ;;  %v1832_v13 = vpop.trf.xlu1 }
 0x35c   : > { %3971 = vmatmul.mubr.msk.f32.gmra.mxu0 %vm459_vm2, %v1800_v63 }
 0x35d   : > { %2089 = vmatprep.mubr.f32.mxu0 %v4218_v31 }
 0x35f   : > { %v2752_v1 = vpop.trf.xlu0  ;;  %v2784_v17 = vpop.trf.xlu1 }
 0x360   : > { %3972 = vmatmul.mubr.msk.f32.gmra.mxu0 %vm459_vm2, %v1817_v39  ;;  %3988 = vmatmul.mubr.msk.f32.vlgmr.msra.gmra.mxu1 %vm459_vm2, %v2752_v1 }
 0x361   : > { %2095 = vmatprep.mubr.f32.mxu0 %v4218_v31  ;;  %2966 = vmatprep.mubr.f32.mxu1 %v4218_v31 }
 0x363   : > { %v2753_v3 = vpop.trf.xlu0  ;;  %v2785_v19 = vpop.trf.xlu1 }
 0x364   : > { %3973 = vmatmul.mubr.msk.f32.gmra.mxu0 %vm459_vm2, %v1818_v57  ;;  %3989 = vmatmul.mubr.msk.f32.gmra.mxu1 %vm459_vm2, %v2753_v3 }
 0x365   : > { %2101 = vmatprep.mubr.f32.mxu0 %v4218_v31  ;;  %2972 = vmatprep.mubr.f32.mxu1 %v4218_v31 }
 0x367   : > { %v2754_v4 = vpop.trf.xlu0  ;;  %v2786_v22 = vpop.trf.xlu1 }
 0x368   : > { %3974 = vmatmul.mubr.msk.f32.gmra.mxu0 %vm459_vm2, %v1819_v43  ;;  %3990 = vmatmul.mubr.msk.f32.gmra.mxu1 %vm459_vm2, %v2754_v4 }
 0x369   : > { %2107 = vmatprep.mubr.f32.mxu0 %v4218_v31  ;;  %2978 = vmatprep.mubr.f32.mxu1 %v4218_v31 }
 0x36b   : > { %v2755_v7 = vpop.trf.xlu0  ;;  %v2787_v24 = vpop.trf.xlu1 }
 0x36c   : > { %3975 = vmatmul.mubr.msk.f32.gmra.mxu0 %vm459_vm2, %v1820_v45  ;;  %3991 = vmatmul.mubr.msk.f32.gmra.mxu1 %vm459_vm2, %v2755_v7  ;;  %v4803_v45 = vand.u32 127, %v1569_v14 }
 0x36d   : > { %2113 = vmatprep.mubr.f32.mxu0 %v4218_v31  ;;  %2984 = vmatprep.mubr.f32.mxu1 %v4218_v31 }
 0x36e   : > { %vm1701_vm3 = vcmp.eq.s32.totalorder %v4527_v28, %v4803_v45  ;;  %vm1705_vm5 = vcmp.eq.s32.totalorder %v4809_v54, %v4803_v45 }
 0x36f   : > { %v2756_v11 = vpop.trf.xlu0  ;;  %v2788_v26 = vpop.trf.xlu1 }
 0x370   : > { %3976 = vmatmul.mubr.msk.f32.gmra.mxu0 %vm459_vm2, %v1821_v48  ;;  %3992 = vmatmul.mubr.msk.f32.gmra.mxu1 %vm459_vm2, %v2756_v11  ;;  %v4806_v48 = vadd.s32 8, %v4527_v28  ;;  %v2191_v11 = vld [vmem:[#allocation2 + $0x168] sm:$0xff] }
 0x371   : > { %2119 = vmatprep.mubr.f32.mxu0 %v4218_v31  ;;  %2990 = vmatprep.mubr.f32.mxu1 %v4218_v31 }
 0x372   : > { %vm1703_vm4 = vcmp.eq.s32.totalorder %v4806_v48, %v4803_v45  ;;  %v4988_v48 = vadd.s32 224, %v4527_v28 }
 0x373   : > { %v2757_v12 = vpop.trf.xlu0  ;;  %v2789_v29 = vpop.trf.xlu1 }
 0x374   : > { %3977 = vmatmul.mubr.msk.f32.gmra.mxu0 %vm459_vm2, %v1822_v50  ;;  %3993 = vmatmul.mubr.msk.f32.gmra.mxu1 %vm459_vm2, %v2757_v12  ;;  %v2188_v50 = vld [vmem:[#allocation2 + $0xd8] sm:$0xff]  ;;  %5491 = vst [vmem:[#allocation28_spill] sm:$0xff] %v4988_v48 }
 0x375   : > { %2125 = vmatprep.mubr.f32.mxu0 %v4218_v31  ;;  %2996 = vmatprep.mubr.f32.mxu1 %v4218_v31 }
 0x377   : > { %v2758_v10 = vpop.trf.xlu0  ;;  %v2790_v30 = vpop.trf.xlu1 }
 0x378   : > { %3978 = vmatmul.mubr.msk.f32.gmra.mxu0 %vm459_vm2, %v1823_v53  ;;  %3994 = vmatmul.mubr.msk.f32.gmra.mxu1 %vm459_vm2, %v2758_v10 }
 0x379   : > { %2131 = vmatprep.mubr.f32.mxu0 %v4218_v31  ;;  %3002 = vmatprep.mubr.f32.mxu1 %v4218_v31 }
 0x37b   : > { %v2759_v15 = vpop.trf.xlu0  ;;  %v2791_v32 = vpop.trf.xlu1 }
 0x37c   : > { %3979 = vmatmul.mubr.msk.f32.gmra.mxu0 %vm459_vm2, %v1824_v55  ;;  %3995 = vmatmul.mubr.msk.f32.gmra.mxu1 %vm459_vm2, %v2759_v15 }
 0x37d   : > { %2137 = vmatprep.mubr.f32.mxu0 %v4218_v31  ;;  %3008 = vmatprep.mubr.f32.mxu1 %v4218_v31 }
 0x37f   : > { %v2760_v16 = vpop.trf.xlu0  ;;  %v2792_v33 = vpop.trf.xlu1 }
 0x380   : > { %3980 = vmatmul.mubr.msk.f32.gmra.mxu0 %vm459_vm2, %v1825_v59  ;;  %3996 = vmatmul.mubr.msk.f32.gmra.mxu1 %vm459_vm2, %v2760_v16  ;;  %v2192_v16 = vld [vmem:[#allocation2 + $0x130] sm:$0xff] }
 0x381   : > { %2143 = vmatprep.mubr.f32.mxu0 %v4218_v31  ;;  %3014 = vmatprep.mubr.f32.mxu1 %v4218_v31 }
 0x383   : > { %v2761_v18 = vpop.trf.xlu0  ;;  %v2793_v34 = vpop.trf.xlu1 }
 0x384   : > { %3981 = vmatmul.mubr.msk.f32.gmra.mxu0 %vm459_vm2, %v1826_v61  ;;  %3997 = vmatmul.mubr.msk.f32.gmra.mxu1 %vm459_vm2, %v2761_v18 }
 0x385   : > { %2149 = vmatprep.mubr.f32.mxu0 %v4218_v31  ;;  %3020 = vmatprep.mubr.f32.mxu1 %v4218_v31 }
 0x387   : > { %v2762_v20 = vpop.trf.xlu0  ;;  %v2794_v35 = vpop.trf.xlu1 }
 0x388   : > { %3982 = vmatmul.mubr.msk.f32.gmra.mxu0 %vm459_vm2, %v1827_v0  ;;  %3998 = vmatmul.mubr.msk.f32.gmra.mxu1 %vm459_vm2, %v2762_v20 }
 0x389   : > { %2155 = vmatprep.mubr.f32.mxu0 %v4218_v31  ;;  %3026 = vmatprep.mubr.f32.mxu1 %v4218_v31 }
 0x38b   : > { %v2763_v21 = vpop.trf.xlu0  ;;  %v2795_v36 = vpop.trf.xlu1 }
 0x38c   : > { %3983 = vmatmul.mubr.msk.f32.gmra.mxu0 %vm459_vm2, %v1828_v2  ;;  %3999 = vmatmul.mubr.msk.f32.gmra.mxu1 %vm459_vm2, %v2763_v21 }
 0x38d   : > { %2161 = vmatprep.mubr.f32.mxu0 %v4218_v31  ;;  %3032 = vmatprep.mubr.f32.mxu1 %v4218_v31 }
 0x38f   : > { %v2764_v23 = vpop.trf.xlu0  ;;  %v2796_v37 = vpop.trf.xlu1 }
 0x390   : > { %3984 = vmatmul.mubr.msk.f32.gmra.mxu0 %vm459_vm2, %v1829_v5  ;;  %4000 = vmatmul.mubr.msk.f32.gmra.mxu1 %vm459_vm2, %v2764_v23  ;;  %v2193_v23 = vld [vmem:[#allocation2 + $0x48] sm:$0xff] }
 0x391   : > { %2167 = vmatprep.mubr.f32.mxu0 %v4218_v31  ;;  %3038 = vmatprep.mubr.f32.mxu1 %v4218_v31 }
 0x393   : > { %v2765_v9 = vpop.trf.xlu0  ;;  %v2797_v38 = vpop.trf.xlu1 }
 0x394   : > { %3985 = vmatmul.mubr.msk.f32.gmra.mxu0 %vm459_vm2, %v1830_v8  ;;  %4001 = vmatmul.mubr.msk.f32.gmra.mxu1 %vm459_vm2, %v2765_v9 }
 0x395   : > { %2173 = vmatprep.mubr.f32.mxu0 %v4218_v31  ;;  %3044 = vmatprep.mubr.f32.mxu1 %v4218_v31 }
 0x397   : > { %v2766_v25 = vpop.trf.xlu0  ;;  %v2798_v39 = vpop.trf.xlu1 }
 0x398   : > { %3986 = vmatmul.mubr.msk.f32.gmra.mxu0 %vm459_vm2, %v1831_v6  ;;  %4002 = vmatmul.mubr.msk.f32.gmra.mxu1 %vm459_vm2, %v2766_v25 }
 0x399   : > { %2179 = vmatprep.mubr.f32.mxu0 %v4218_v31  ;;  %3050 = vmatprep.mubr.f32.mxu1 %v4218_v31 }
 0x39b   : > { %v2767_v27 = vpop.trf.xlu0  ;;  %v2799_v40 = vpop.trf.xlu1 }
 0x39c   : > { %3987 = vmatmul.mubr.msk.f32.gmra.mxu0 %vm459_vm2, %v1832_v13  ;;  %4003 = vmatmul.mubr.msk.f32.gmra.mxu1 %vm459_vm2, %v2767_v27  ;;  %v4824_v13 = vadd.s32 24, %v4527_v28 }
 0x39d   : > { %3056 = vmatprep.mubr.f32.mxu1 %v4218_v31 }
 0x39e   : > { %vm1707_vm6 = vcmp.eq.s32.totalorder %v4824_v13, %v4803_v45  ;;  %v3162_v13 = vld [vmem:[#allocation3 + $0x50] sm:$0xff] }
 0x3a0   : > { %4004 = vmatmul.mubr.msk.f32.gmra.mxu1 %vm459_vm2, %v2784_v17 }
 0x3a1   : > { %3062 = vmatprep.mubr.f32.mxu1 %v4218_v31 }
 0x3a4   : > { %4005 = vmatmul.mubr.msk.f32.gmra.mxu1 %vm459_vm2, %v2785_v19 }
 0x3a5   : > { %3068 = vmatprep.mubr.f32.mxu1 %v4218_v31 }
 0x3a8   : > { %4006 = vmatmul.mubr.msk.f32.gmra.mxu1 %vm459_vm2, %v2786_v22 }
 0x3a9   : > { %3074 = vmatprep.mubr.f32.mxu1 %v4218_v31 }
 0x3ac   : > { %4007 = vmatmul.mubr.msk.f32.gmra.mxu1 %vm459_vm2, %v2787_v24  ;;  %v4827_v24 = vadd.s32 32, %v4527_v28 }
 0x3ad   : > { %3080 = vmatprep.mubr.f32.mxu1 %v4218_v31 }
 0x3ae   : > { %vm1709_vm7 = vcmp.eq.s32.totalorder %v4827_v24, %v4803_v45 }
 0x3b0   : > { %4008 = vmatmul.mubr.msk.f32.gmra.mxu1 %vm459_vm2, %v2788_v26 }
 0x3b1   : > { %3086 = vmatprep.mubr.f32.mxu1 %v4218_v31 }
 0x3b4   : > { %4009 = vmatmul.mubr.msk.f32.gmra.mxu1 %vm459_vm2, %v2789_v29 }
 0x3b5   : > { %3092 = vmatprep.mubr.f32.mxu1 %v4218_v31 }
 0x3b8   : > { %4010 = vmatmul.mubr.msk.f32.gmra.mxu1 %vm459_vm2, %v2790_v30 }
 0x3b9   : > { %3098 = vmatprep.mubr.f32.mxu1 %v4218_v31 }
 0x3bc   : > { %4011 = vmatmul.mubr.msk.f32.gmra.mxu1 %vm459_vm2, %v2791_v32 }
 0x3bd   : > { %3104 = vmatprep.mubr.f32.mxu1 %v4218_v31 }
 0x3c0   : > { %4012 = vmatmul.mubr.msk.f32.gmra.mxu1 %vm459_vm2, %v2792_v33 }
 0x3c1   : > { %3110 = vmatprep.mubr.f32.mxu1 %v4218_v31 }
 0x3c4   : > { %4013 = vmatmul.mubr.msk.f32.gmra.mxu1 %vm459_vm2, %v2793_v34  ;;  %v2194_v34 = vld [vmem:[#allocation2 + $0x180] sm:$0xff] }
 0x3c5   : > { %3116 = vmatprep.mubr.f32.mxu1 %v4218_v31 }
 0x3c8   : > { %4014 = vmatmul.mubr.msk.f32.gmra.mxu1 %vm459_vm2, %v2794_v35 }
 0x3c9   : > { %3122 = vmatprep.mubr.f32.mxu1 %v4218_v31 }
 0x3cc   : > { %4015 = vmatmul.mubr.msk.f32.gmra.mxu1 %vm459_vm2, %v2795_v36 }
 0x3cd   : > { %3128 = vmatprep.mubr.f32.mxu1 %v4218_v31 }
 0x3d0   : > { %4016 = vmatmul.mubr.msk.f32.gmra.mxu1 %vm459_vm2, %v2796_v37 }
 0x3d1   : > { %3134 = vmatprep.mubr.f32.mxu1 %v4218_v31 }
 0x3d4   : > { %4017 = vmatmul.mubr.msk.f32.gmra.mxu1 %vm459_vm2, %v2797_v38 }
 0x3d5   : > { %3140 = vmatprep.mubr.f32.mxu1 %v4218_v31 }
 0x3d8   : > { %4018 = vmatmul.mubr.msk.f32.gmra.mxu1 %vm459_vm2, %v2798_v39 }
 0x3d9   : > { %3146 = vmatprep.mubr.f32.mxu1 %v4218_v31 }
 0x3dc   : > { %4019 = vmatmul.mubr.msk.f32.gmra.mxu1 %vm459_vm2, %v2799_v40 }
 0x3e0   : > { %v1995_v57 = vpop.f32.mrf.mxu0 }
 0x3e1   : > { %v2250_v42 = vmul.f32 32.0, %v1995_v57 }
 0x3e2   : > { %v1997_v43 = vpop.f32.mrf.mxu0 }
 0x3e3   : > { %v2314_v46 = vsub.f32 %v2186_v41, %v2250_v42  ;;  %v2251_v47 = vmul.f32 32.0, %v1997_v43 }
 0x3e4   : > { %v2001_v49 = vpop.f32.mrf.mxu0 }
 0x3e5   : > { %v2378_v51 = vmul.f32 0.032258064, %v2314_v46  ;;  %v2315_v52 = vsub.f32 %v2187_v44, %v2251_v47  ;;  %v2252_v31 = vmul.f32 32.0, %v2001_v49  ;;  %v2195_v44 = vld [vmem:[#allocation2 + $0x110] sm:$0xff] }
 0x3e6   : > { %v2003_v53 = vpop.f32.mrf.mxu0 }
 0x3e7   : > { %v2379_v55 = vmul.f32 0.032258064, %v2315_v52  ;;  %v2316_v14 = vsub.f32 %v2188_v50, %v2252_v31  ;;  %v2253_v58 = vmul.f32 32.0, %v2003_v53  ;;  %v2580_v61 = vmul.f32 %v2378_v51, %v2378_v51  ;;  %v2196_v52 = vld [vmem:[#allocation2 + $0x118] sm:$0xff] }
 0x3e8   : > { %v2007_v59 = vpop.f32.mrf.mxu0  ;;  %v2442_v1 = vsel %vm1701_vm3, %v2378_v51, 0.0  ;;  %v4840_v50 = vadd.s32 40, %v4527_v28 }
 0x3e9   : > { %v2581_v62 = vmul.f32 %v2379_v55, %v2379_v55  ;;  %v2380_v63 = vmul.f32 0.032258064, %v2316_v14  ;;  %v2254_v0 = vmul.f32 32.0, %v2007_v59  ;;  %v2317_v2 = vsub.f32 %v2189_v56, %v2253_v58  ;;  %v2197_v59 = vld [vmem:[#allocation2 + $0x98] sm:$0xff] }
 0x3ea   : > { %v2009_v3 = vpop.f32.mrf.mxu0  ;;  %vm1711_vm8 = vcmp.eq.s32.totalorder %v4840_v50, %v4803_v45  ;;  %v2231_v50 = vld [vmem:[#allocation2 + $0x90] sm:$0xff] }
 0x3eb   : > { %v2644_v4 = vadd.f32 %v2581_v62, %v2580_v61  ;;  %v2444_v5 = vsel %vm1703_vm4, %v2380_v63, 0.0  ;;  %v2582_v7 = vmul.f32 %v2380_v63, %v2380_v63  ;;  %v2318_v8 = vsub.f32 %v2190_v60, %v2254_v0 }
 0x3ec   : > { %v2506_v12 = vadd.f32 %v2444_v5, %v2442_v1  ;;  %v2381_v6 = vmul.f32 0.032258064, %v2317_v2  ;;  %v2255_v10 = vmul.f32 32.0, %v2009_v3  ;;  %v2013_v15 = vpop.f32.mrf.mxu0  ;;  %v4843_v60 = vadd.s32 48, %v4527_v28  ;;  %v2198_v5 = vld [vmem:[#allocation2 + $0x120] sm:$0xff] }
 0x3ed   : > { %v2645_v17 = vadd.f32 %v2644_v4, %v2582_v7  ;;  %v2382_v18 = vmul.f32 0.032258064, %v2318_v8  ;;  %v2256_v19 = vmul.f32 32.0, %v2013_v15 }
 0x3ee   : > { %v2583_v20 = vmul.f32 %v2381_v6, %v2381_v6  ;;  %v2319_v21 = vsub.f32 %v2191_v11, %v2255_v10  ;;  %v2015_v22 = vpop.f32.mrf.mxu0  ;;  %vm1713_vm9 = vcmp.eq.s32.totalorder %v4843_v60, %v4803_v45 }
 0x3ef   : > { %v2446_v9 = vsel %vm1705_vm5, %v2382_v18, 0.0  ;;  %v2584_v25 = vmul.f32 %v2382_v18, %v2382_v18  ;;  %v2320_v26 = vsub.f32 %v2192_v16, %v2256_v19  ;;  %v2257_v27 = vmul.f32 32.0, %v2015_v22  ;;  %v2199_v19 = vld [vmem:[#allocation2 + $0x150] sm:$0xff] }
 0x3f0   : > { %v2646_v29 = vadd.f32 %v2645_v17, %v2583_v20  ;;  %v2507_v30 = vadd.f32 %v2506_v12, %v2446_v9  ;;  %v2383_v32 = vmul.f32 0.032258064, %v2319_v21  ;;  %v2019_v33 = vpop.f32.mrf.mxu0 }
 0x3f1   : > { %v2384_v35 = vmul.f32 0.032258064, %v2320_v26  ;;  %v2321_v36 = vsub.f32 %v2193_v23, %v2257_v27  ;;  %v2258_v37 = vmul.f32 32.0, %v2019_v33  ;;  %v4856_v23 = vadd.s32 56, %v4527_v28 }
 0x3f2   : > { %v2647_v38 = vadd.f32 %v2646_v29, %v2584_v25  ;;  %v2585_v39 = vmul.f32 %v2383_v32, %v2383_v32  ;;  %v2021_v40 = vpop.f32.mrf.mxu0  ;;  %v2200_v25 = vld [vmem:[#allocation2 + $0x108] sm:$0xff] }
 0x3f3   : > { %v2448_v57 = vsel %vm1707_vm6, %v2384_v35, 0.0  ;;  %v2586_v41 = vmul.f32 %v2384_v35, %v2384_v35  ;;  %v2385_v42 = vmul.f32 0.032258064, %v2321_v36  ;;  %v2322_v43 = vsub.f32 %v2194_v34, %v2258_v37  ;;  %v2201_v34 = vld [vmem:[#allocation2 + $0x60] sm:$0xff] }
 0x3f4   : > { %v2648_v46 = vadd.f32 %v2647_v38, %v2585_v39  ;;  %v2508_v47 = vadd.f32 %v2507_v30, %v2448_v57  ;;  %v2259_v49 = vmul.f32 32.0, %v2021_v40  ;;  %v2025_v51 = vpop.f32.mrf.mxu0  ;;  %v4859_v35 = vadd.s32 64, %v4527_v28 }
 0x3f5   : > { %v2587_v31 = vmul.f32 %v2385_v42, %v2385_v42  ;;  %v2386_v53 = vmul.f32 0.032258064, %v2322_v43  ;;  %v2260_v55 = vmul.f32 32.0, %v2025_v51  ;;  %vm1715_vm10 = vcmp.eq.s32.totalorder %v4856_v23, %v4803_v45  ;;  %v2202_v43 = vld [vmem:[#allocation2 + $0xe0] sm:$0xff] }
 0x3f6   : > { %v2649_v14 = vadd.f32 %v2648_v46, %v2586_v41  ;;  %v2323_v56 = vsub.f32 %v2195_v44, %v2259_v49  ;;  %v2027_v58 = vpop.f32.mrf.mxu0  ;;  %vm1717_vm11 = vcmp.eq.s32.totalorder %v4859_v35, %v4803_v45  ;;  %v3172_v35 = vld [vmem:[#allocation3 + $0xa0] sm:$0xff] }
 0x3f7   : > { %v2450_v61 = vsel %vm1709_vm7, %v2386_v53, 0.0  ;;  %v2588_v62 = vmul.f32 %v2386_v53, %v2386_v53  ;;  %v2324_v63 = vsub.f32 %v2196_v52, %v2260_v55  ;;  %v2261_v0 = vmul.f32 32.0, %v2027_v58 }
 0x3f8   : > { %v2650_v1 = vadd.f32 %v2649_v14, %v2587_v31  ;;  %v2509_v2 = vadd.f32 %v2508_v47, %v2450_v61  ;;  %v2387_v3 = vmul.f32 0.032258064, %v2323_v56  ;;  %v2031_v4 = vpop.f32.mrf.mxu0  ;;  %v2203_v56 = vld [vmem:[#allocation2 + $0x188] sm:$0xff] }
 0x3f9   : > { %v2388_v7 = vmul.f32 0.032258064, %v2324_v63  ;;  %v2325_v8 = vsub.f32 %v2197_v59, %v2261_v0  ;;  %v2262_v11 = vmul.f32 32.0, %v2031_v4  ;;  %v2204_v0 = vld [vmem:[#allocation2 + $0x138] sm:$0xff] }
 0x3fa   : > { %v2651_v12 = vadd.f32 %v2650_v1, %v2588_v62  ;;  %v2589_v6 = vmul.f32 %v2387_v3, %v2387_v3  ;;  %v2033_v10 = vpop.f32.mrf.mxu0  ;;  %v4872_v62 = vadd.s32 72, %v4527_v28 }
 0x3fb   : > { %v2452_v15 = vsel %vm1711_vm8, %v2388_v7, 0.0  ;;  %v2590_v16 = vmul.f32 %v2388_v7, %v2388_v7  ;;  %v2389_v17 = vmul.f32 0.032258064, %v2325_v8  ;;  %v2326_v18 = vsub.f32 %v2198_v5, %v2262_v11  ;;  %v2205_v8 = vld [vmem:[#allocation2 + $0x140] sm:$0xff] }
 0x3fc   : > { %v2652_v20 = vadd.f32 %v2651_v12, %v2589_v6  ;;  %v2510_v21 = vadd.f32 %v2509_v2, %v2452_v15  ;;  %v2263_v22 = vmul.f32 32.0, %v2033_v10  ;;  %v2037_v9 = vpop.f32.mrf.mxu0  ;;  %v4875_v11 = vadd.s32 80, %v4527_v28 }
 0x3fd   : > { %v2591_v26 = vmul.f32 %v2389_v17, %v2389_v17  ;;  %v2390_v27 = vmul.f32 0.032258064, %v2326_v18  ;;  %v2264_v29 = vmul.f32 32.0, %v2037_v9  ;;  %vm1719_vm12 = vcmp.eq.s32.totalorder %v4872_v62, %v4803_v45 }
 0x3fe   : > { %v2653_v30 = vadd.f32 %v2652_v20, %v2590_v16  ;;  %v2327_v32 = vsub.f32 %v2199_v19, %v2263_v22  ;;  %v2039_v33 = vpop.f32.mrf.mxu0  ;;  %v2206_v20 = vld [vmem:[#allocation2 + $0x80] sm:$0xff]  ;;  %vm1721_vm13 = vcmp.eq.s32.totalorder %v4875_v11, %v4803_v45 }
 0x3ff   : > { %v2454_v36 = vsel %vm1713_vm9, %v2390_v27, 0.0  ;;  %v2592_v37 = vmul.f32 %v2390_v27, %v2390_v27  ;;  %v2328_v38 = vsub.f32 %v2200_v25, %v2264_v29  ;;  %v2265_v39 = vmul.f32 32.0, %v2039_v33  ;;  %v3176_v11 = vld [vmem:[#allocation3 + $0x80] sm:$0xff] }
 0x400   : > { %v2654_v40 = vadd.f32 %v2653_v30, %v2591_v26  ;;  %v2511_v57 = vadd.f32 %v2510_v21, %v2454_v36  ;;  %v2391_v41 = vmul.f32 0.032258064, %v2327_v32  ;;  %v2043_v42 = vpop.f32.mrf.mxu0 }
 0x401   : > { %v2392_v44 = vmul.f32 0.032258064, %v2328_v38  ;;  %v2329_v46 = vsub.f32 %v2201_v34, %v2265_v39  ;;  %v2266_v47 = vmul.f32 32.0, %v2043_v42  ;;  %v2207_v34 = vld [vmem:[#allocation2 + $0x1a8] sm:$0xff]  ;;  %v4888_v39 = vadd.s32 88, %v4527_v28 }
 0x402   : > { %v2655_v49 = vadd.f32 %v2654_v40, %v2592_v37  ;;  %v2593_v51 = vmul.f32 %v2391_v41, %v2391_v41  ;;  %v2045_v52 = vpop.f32.mrf.mxu0 }
 0x403   : > { %v2456_v31 = vsel %vm1715_vm10, %v2392_v44, 0.0  ;;  %v2594_v53 = vmul.f32 %v2392_v44, %v2392_v44  ;;  %v2393_v55 = vmul.f32 0.032258064, %v2329_v46  ;;  %v2330_v14 = vsub.f32 %v2202_v43, %v2266_v47  ;;  %5481 = vst [vmem:[#allocation18_spill] sm:$0xff] %v4888_v39 }
 0x404   : > { %v2656_v58 = vadd.f32 %v2655_v49, %v2593_v51  ;;  %v2512_v59 = vadd.f32 %v2511_v57, %v2456_v31  ;;  %v2267_v61 = vmul.f32 32.0, %v2045_v52  ;;  %v2049_v63 = vpop.f32.mrf.mxu0  ;;  %v2208_v57 = vld [vmem:[#allocation2 + $0x1b8] sm:$0xff]  ;;  %v4891_v44 = vadd.s32 96, %v4527_v28  ;;  %v2209_v51 = vld [vmem:[#allocation2 + $0x28] sm:$0xff] }
 0x405   : > { %v2595_v1 = vmul.f32 %v2393_v55, %v2393_v55  ;;  %v2394_v2 = vmul.f32 0.032258064, %v2330_v14  ;;  %v2268_v3 = vmul.f32 32.0, %v2049_v63  ;;  %vm1723_vm14 = vcmp.eq.s32.totalorder %v4888_v39, %v4803_v45 }
 0x406   : > { %v2657_v4 = vadd.f32 %v2656_v58, %v2594_v53  ;;  %v2331_v5 = vsub.f32 %v2203_v56, %v2267_v61  ;;  %v2051_v7 = vpop.f32.mrf.mxu0  ;;  %5482 = vst [vmem:[#allocation19_spill] sm:$0xff] %v4891_v44  ;;  %v2210_v61 = vld [vmem:[#allocation2 + $0x1e8] sm:$0xff]  ;;  %vm1725_vm15 = vcmp.eq.s32.totalorder %v4891_v44, %v4803_v45 }
 0x407   : > { %v2458_v12 = vsel %vm1717_vm11, %v2394_v2, 0.0  ;;  %v2596_v6 = vmul.f32 %v2394_v2, %v2394_v2  ;;  %v2332_v10 = vsub.f32 %v2204_v0, %v2268_v3  ;;  %v2269_v15 = vmul.f32 32.0, %v2051_v7  ;;  %v2225_v44 = vld [vmem:[#allocation2 + $0x128] sm:$0xff] }
 0x408   : > { %v2658_v16 = vadd.f32 %v2657_v4, %v2595_v1  ;;  %v2513_v17 = vadd.f32 %v2512_v59, %v2458_v12  ;;  %v2395_v18 = vmul.f32 0.032258064, %v2331_v5  ;;  %v2055_v19 = vpop.f32.mrf.mxu0  ;;  %v4901_v5 = vadd.s32 104, %v4527_v28 }
 0x409   : > { %v2396_v21 = vmul.f32 0.032258064, %v2332_v10  ;;  %v2333_v22 = vsub.f32 %v2205_v8, %v2269_v15  ;;  %v2270_v9 = vmul.f32 32.0, %v2055_v19  ;;  %v4904_v7 = vadd.s32 112, %v4527_v28  ;;  %v2211_v15 = vld [vmem:[#allocation2 + $0xf8] sm:$0xff] }
 0x40a   : > { %v2659_v25 = vadd.f32 %v2658_v16, %v2596_v6  ;;  %v2597_v26 = vmul.f32 %v2395_v18, %v2395_v18  ;;  %v2057_v27 = vpop.f32.mrf.mxu0  ;;  %5483 = vst [vmem:[#allocation20_spill] sm:$0xff] %v4901_v5  ;;  %vm1727_vm0 = vcmp.eq.s32.totalorder %v4901_v5, %v4803_v45 }
 0x40b   : > { %v2460_v29 = vsel %vm1719_vm12, %v2396_v21, 0.0  ;;  %v2598_v30 = vmul.f32 %v2396_v21, %v2396_v21  ;;  %v2397_v32 = vmul.f32 0.032258064, %v2333_v22  ;;  %v2334_v33 = vsub.f32 %v2206_v20, %v2270_v9  ;;  %5484 = vst [vmem:[#allocation21_spill] sm:$0xff] %v4904_v7  ;;  %v2212_v20 = vld [vmem:[#allocation2 + $0x160] sm:$0xff] }
 0x40c   : > { %v2660_v36 = vadd.f32 %v2659_v25, %v2597_v26  ;;  %v2514_v37 = vadd.f32 %v2513_v17, %v2460_v29  ;;  %v2271_v38 = vmul.f32 32.0, %v2057_v27  ;;  %v2061_v40 = vpop.f32.mrf.mxu0  ;;  %v4910_v21 = vadd.s32 120, %v4527_v28 }
 0x40d   : > { %v2599_v41 = vmul.f32 %v2397_v32, %v2397_v32  ;;  %v2398_v42 = vmul.f32 0.032258064, %v2334_v33  ;;  %v2272_v43 = vmul.f32 32.0, %v2061_v40  ;;  %vm1729_vm1 = vcmp.eq.s32.totalorder %v4904_v7, %v4803_v45 }
 0x40e   : > { %v2661_v46 = vadd.f32 %v2660_v36, %v2598_v30  ;;  %v2335_v47 = vsub.f32 %v2207_v34, %v2271_v38  ;;  %v2063_v49 = vpop.f32.mrf.mxu0  ;;  %5485 = vst [vmem:[#allocation22_spill] sm:$0xff] %v4910_v21  ;;  %v2213_v30 = vld [vmem:[#allocation2 + $0x30] sm:$0xff]  ;;  %vm5445_vm2 = vcmp.eq.s32.totalorder %v4910_v21, %v4803_v45 }
 0x40f   : > { %v2462_v52 = vsel %vm1721_vm13, %v2398_v42, 0.0  ;;  %v2600_v31 = vmul.f32 %v2398_v42, %v2398_v42  ;;  %v2336_v53 = vsub.f32 %v2208_v57, %v2272_v43  ;;  %v2273_v55 = vmul.f32 32.0, %v2063_v49 }
 0x410   : > { %v2662_v14 = vadd.f32 %v2661_v46, %v2599_v41  ;;  %v2515_v56 = vadd.f32 %v2514_v37, %v2462_v52  ;;  %v2399_v58 = vmul.f32 0.032258064, %v2335_v47  ;;  %v2067_v59 = vpop.f32.mrf.mxu0  ;;  %v2214_v41 = vld [vmem:[#allocation2 + $0x1e0] sm:$0xff]  ;;  %v4922_v47 = vadd.s32 128, %v4527_v28 }
 0x411   : > { %v2400_v63 = vmul.f32 0.032258064, %v2336_v53  ;;  %v2337_v0 = vsub.f32 %v2209_v51, %v2273_v55  ;;  %v2274_v1 = vmul.f32 32.0, %v2067_v59  ;;  %v4928_v53 = vadd.s32 136, %v4527_v28  ;;  %v2215_v59 = vld [vmem:[#allocation2] sm:$0xff] }
 0x412   : > { %v2663_v2 = vadd.f32 %v2662_v14, %v2600_v31  ;;  %v2601_v3 = vmul.f32 %v2399_v58, %v2399_v58  ;;  %v2069_v4 = vpop.f32.mrf.mxu0  ;;  %5486 = vst [vmem:[#allocation23_spill] sm:$0xff] %v4922_v47  ;;  %v4925_v31 = vadd.s32 128, %v4803_v45 }
 0x413   : > { %v2464_v8 = vsel %vm1723_vm14, %v2400_v63, 0.0  ;;  %v2602_v12 = vmul.f32 %v2400_v63, %v2400_v63  ;;  %v2401_v6 = vmul.f32 0.032258064, %v2337_v0  ;;  %v2338_v10 = vsub.f32 %v2210_v61, %v2274_v1  ;;  %5487 = vst [vmem:[#allocation24_spill] sm:$0xff] %v4928_v53 }
 0x414   : > { %v2664_v16 = vadd.f32 %v2663_v2, %v2601_v3  ;;  %v2516_v17 = vadd.f32 %v2515_v56, %v2464_v8  ;;  %v2275_v18 = vmul.f32 32.0, %v2069_v4  ;;  %v2073_v19 = vpop.f32.mrf.mxu0  ;;  %v2216_v2 = vld [vmem:[#allocation2 + $0xf0] sm:$0xff]  ;;  %v4934_v3 = vadd.s32 144, %v4527_v28 }
 0x415   : > { %v2603_v22 = vmul.f32 %v2401_v6, %v2401_v6  ;;  %v2402_v9 = vmul.f32 0.032258064, %v2338_v10  ;;  %v2276_v25 = vmul.f32 32.0, %v2073_v19  ;;  %v4937_v6 = vadd.s32 152, %v4527_v28 }
 0x416   : > { %v2665_v26 = vadd.f32 %v2664_v16, %v2602_v12  ;;  %v2339_v27 = vsub.f32 %v2211_v15, %v2275_v18  ;;  %v2075_v29 = vpop.f32.mrf.mxu0  ;;  %5488 = vst [vmem:[#allocation25_spill] sm:$0xff] %v4934_v3  ;;  %v4940_v18 = vadd.s32 160, %v4527_v28  ;;  %v4943_v19 = vadd.s32 168, %v4527_v28 }
 0x417   : > { %v2466_v32 = vsel %vm1725_vm15, %v2402_v9, 0.0  ;;  %v2604_v33 = vmul.f32 %v2402_v9, %v2402_v9  ;;  %v2340_v34 = vsub.f32 %v2212_v20, %v2276_v25  ;;  %v2277_v36 = vmul.f32 32.0, %v2075_v29 }
 0x418   : > { %v2666_v37 = vadd.f32 %v2665_v26, %v2603_v22  ;;  %v2517_v38 = vadd.f32 %v2516_v17, %v2466_v32  ;;  %v2403_v40 = vmul.f32 0.032258064, %v2339_v27  ;;  %v2079_v57 = vpop.f32.mrf.mxu0  ;;  %v2217_v17 = vld [vmem:[#allocation2 + $0x8] sm:$0xff] }
 0x419   : > { %v2404_v42 = vmul.f32 0.032258064, %v2340_v34  ;;  %v2341_v43 = vsub.f32 %v2213_v30, %v2277_v36  ;;  %v2278_v46 = vmul.f32 32.0, %v2079_v57  ;;  %v2218_v32 = vld [vmem:[#allocation2 + $0x148] sm:$0xff]  ;;  %v4949_v34 = vadd.s32 176, %v4527_v28 }
 0x41a   : > { %v2667_v49 = vadd.f32 %v2666_v37, %v2604_v33  ;;  %v2605_v51 = vmul.f32 %v2403_v40, %v2403_v40  ;;  %v2081_v52 = vpop.f32.mrf.mxu0  ;;  %v3153_v40 = vld [vmem:[#allocation3 + $0x68] sm:$0xff] }
 0x41b   : > { %v2468_v55 = vsel %vm1727_vm0, %v2404_v42, 0.0  ;;  %v2606_v14 = vmul.f32 %v2404_v42, %v2404_v42  ;;  %v2405_v56 = vmul.f32 0.032258064, %v2341_v43  ;;  %v2342_v58 = vsub.f32 %v2214_v41, %v2278_v46 }
 0x41c   : > { %v2668_v61 = vadd.f32 %v2667_v49, %v2605_v51  ;;  %v2518_v63 = vadd.f32 %v2517_v38, %v2468_v55  ;;  %v2279_v0 = vmul.f32 32.0, %v2081_v52  ;;  %v2085_v1 = vpop.f32.mrf.mxu0  ;;  %v4952_v49 = vadd.s32 184, %v4527_v28 }
 0x41d   : > { %v2607_v4 = vmul.f32 %v2405_v56, %v2405_v56  ;;  %v2406_v8 = vmul.f32 0.032258064, %v2342_v58  ;;  %v2280_v12 = vmul.f32 32.0, %v2085_v1  ;;  %v4955_v51 = vadd.s32 192, %v4527_v28  ;;  %v2219_v58 = vld [vmem:[#allocation2 + $0x1d0] sm:$0xff] }
 0x41e   : > { %v2669_v10 = vadd.f32 %v2668_v61, %v2606_v14  ;;  %v2343_v15 = vsub.f32 %v2215_v59, %v2279_v0  ;;  %v2087_v16 = vpop.f32.mrf.mxu0  ;;  %v3154_v1 = vld [vmem:[#allocation3 + $0x150] sm:$0xff] }
 0x41f   : > { %v2470_v20 = vsel %vm1729_vm1, %v2406_v8, 0.0  ;;  %v2608_v22 = vmul.f32 %v2406_v8, %v2406_v8  ;;  %v2344_v9 = vsub.f32 %v2216_v2, %v2280_v12  ;;  %v2281_v25 = vmul.f32 32.0, %v2087_v16 }
 0x420   : > { %v2670_v26 = vadd.f32 %v2669_v10, %v2607_v4  ;;  %v2519_v27 = vadd.f32 %v2518_v63, %v2470_v20  ;;  %v2407_v29 = vmul.f32 0.032258064, %v2343_v15  ;;  %v2091_v30 = vpop.f32.mrf.mxu0  ;;  %v2962_v33 = vpop.f32.mrf.mxu1  ;;  %v2220_v4 = vld [vmem:[#allocation2 + $0x100] sm:$0xff] }
 0x421   : > { %v2408_v36 = vmul.f32 0.032258064, %v2344_v9  ;;  %v2345_v37 = vsub.f32 %v2217_v17, %v2281_v25  ;;  %v2282_v38 = vmul.f32 32.0, %v2091_v30  ;;  %v3217_v57 = vmul.f32 32.0, %v2962_v33  ;;  %v3155_v25 = vld [vmem:[#allocation3 + $0x70] sm:$0xff] }
 0x422   : > { %v2671_v41 = vadd.f32 %v2670_v26, %v2608_v22  ;;  %v2609_v42 = vmul.f32 %v2407_v29, %v2407_v29  ;;  %v2093_v43 = vpop.f32.mrf.mxu0  ;;  %v2964_v46 = vpop.f32.mrf.mxu1 }
 0x423   : > { %v2472_v52 = vsel %vm5445_vm2, %v2408_v36, 0.0  ;;  %v2610_v55 = vmul.f32 %v2408_v36, %v2408_v36  ;;  %v2409_v14 = vmul.f32 0.032258064, %v2345_v37  ;;  %v2346_v56 = vsub.f32 %v2218_v32, %v2282_v38  ;;  %v2221_v37 = vld [vmem:[#allocation2 + $0xc8] sm:$0xff]  ;;  %v3156_v38 = vld [vmem:[#allocation3 + $0x160] sm:$0xff] }
 0x424   : > { %v2672_v59 = vadd.f32 %v2671_v41, %v2609_v42  ;;  %v2520_v61 = vadd.f32 %v2519_v27, %v2472_v52  ;;  %v3281_v63 = vsub.f32 %v3153_v40, %v3217_v57  ;;  %v2283_v0 = vmul.f32 32.0, %v2093_v43  ;;  %v2097_v2 = vpop.f32.mrf.mxu0  ;;  %v2968_v8 = vpop.f32.mrf.mxu1 }
 0x425   : > { %v2611_v12 = vmul.f32 %v2409_v14, %v2409_v14  ;;  %v2410_v10 = vmul.f32 0.032258064, %v2346_v56  ;;  %v3218_v15 = vmul.f32 32.0, %v2964_v46  ;;  %v2284_v16 = vmul.f32 32.0, %v2097_v2 }
 0x426   : > { %v2537_v17 = vrot.slane %v2520_v61, 4  ;;  %v2673_v20 = vadd.f32 %v2672_v59, %v2610_v55  ;;  %v3345_v22 = vmul.f32 0.032258064, %v3281_v63  ;;  %v2347_v9 = vsub.f32 %v2219_v58, %v2283_v0  ;;  %v2099_v26 = vpop.f32.mrf.mxu0  ;;  %v2970_v29 = vpop.f32.mrf.mxu1 }
 0x427   : > { %v2612_v30 = vmul.f32 %v2410_v10, %v2410_v10  ;;  %v3282_v32 = vsub.f32 %v3154_v1, %v3218_v15  ;;  %v2348_v27 = vsub.f32 %v2220_v4, %v2284_v16  ;;  %v3219_v33 = vmul.f32 32.0, %v2968_v8 }
 0x428   : > { %v2674_v36 = vadd.f32 %v2673_v20, %v2611_v12  ;;  %v2103_v40 = vpop.f32.mrf.mxu0  ;;  %v2974_v57 = vpop.f32.mrf.mxu1  ;;  %v4961_v41 = vadd.s32 200, %v4527_v28  ;;  %v4964_v42 = vadd.s32 208, %v4527_v28  ;;  %v4967_v43 = vadd.s32 216, %v4527_v28 }
 0x429   : > { %v4969_v46 = vmul.f32 0.032258064, %v2347_v9  ;;  %v3346_v52 = vmul.f32 0.032258064, %v3282_v32  ;;  %v2412_v55 = vmul.f32 0.032258064, %v2348_v27  ;;  %v3283_v14 = vsub.f32 %v3155_v25, %v3219_v33 }
 0x42a   : > { %5489 = vst [vmem:[#allocation26_spill] sm:$0xff] %v4964_v42  ;;  %5490 = vst [vmem:[#allocation27_spill] sm:$0xff] %v4967_v43  ;;  %v2538_v56 = vadd.f32 %v2537_v17, %v2520_v61  ;;  %v2675_v58 = vadd.f32 %v2674_v36, %v2612_v30  ;;  %v2285_v59 = vmul.f32 32.0, %v2099_v26  ;;  %v3220_v63 = vmul.f32 32.0, %v2970_v29  ;;  %v2105_v0 = vpop.f32.mrf.mxu0  ;;  %v2976_v1 = vpop.f32.mrf.mxu1  ;;  %v2222_v9 = vld [vmem:[#allocation2 + $0x40] sm:$0xff]  ;;  %v3157_v36 = vld [vmem:[#allocation3 + $0xd0] sm:$0xff] }
 0x42b   : > { %v3547_v2 = vmul.f32 %v3345_v22, %v3345_v22  ;;  %v2613_v4 = vmul.f32 %v4969_v46, %v4969_v46  ;;  %v3548_v8 = vmul.f32 %v3346_v52, %v3346_v52  ;;  %v2614_v12 = vmul.f32 %v2412_v55, %v2412_v55 }
 0x42c   : > { %v3409_v10 = vsel %vm1701_vm3, %v3345_v22, 0.0  ;;  %v3347_v15 = vmul.f32 0.032258064, %v3283_v14  ;;  %v2349_v16 = vsub.f32 %v2221_v37, %v2285_v59  ;;  %v3284_v20 = vsub.f32 %v3156_v38, %v3220_v63  ;;  %v2109_v61 = vpop.f32.mrf.mxu0  ;;  %v2980_v17 = vpop.f32.mrf.mxu1 }
 0x42d   : > { %vm1734_vm2 = vcmp.eq.s32.totalorder %v4922_v47, %v4925_v31  ;;  %v2676_v25 = vadd.f32 %v2675_v58, %v2613_v4  ;;  %v3611_v26 = vadd.f32 %v3548_v8, %v3547_v2  ;;  %v2286_v29 = vmul.f32 32.0, %v2103_v40 }
 0x42e   : > { %v3221_v30 = vmul.f32 32.0, %v2974_v57  ;;  %v2539_v32 = vrot.slane %v2538_v56, 2  ;;  %v3411_v27 = vsel %vm1703_vm4, %v3347_v15, 0.0  ;;  %v3549_v33 = vmul.f32 %v3347_v15, %v3347_v15  ;;  %v2111_v37 = vpop.f32.mrf.mxu0  ;;  %v2982_v38 = vpop.f32.mrf.mxu1 }
 0x42f   : > { %vm1736_vm3 = vcmp.eq.s32.totalorder %v4928_v53, %v4925_v31  ;;  %v2413_v22 = vmul.f32 0.032258064, %v2349_v16  ;;  %v2677_v52 = vadd.f32 %v2676_v25, %v2614_v12  ;;  %v3473_v55 = vadd.f32 %v3411_v27, %v3409_v10  ;;  %v2223_v16 = vld [vmem:[#allocation2 + $0x1f8] sm:$0xff] }
 0x430   : > { %v3348_v14 = vmul.f32 0.032258064, %v3284_v20  ;;  %v2350_v58 = vsub.f32 %v2222_v9, %v2286_v29  ;;  %v3612_v59 = vadd.f32 %v3611_v26, %v3549_v33  ;;  %v4983_v57 = vpop.f32.mrf.mxu0  ;;  %v4985_v63 = vpop.f32.mrf.mxu1  ;;  %v4991_v2 = vadd.s32 232, %v4527_v28  ;;  %v3158_v12 = vld [vmem:[#allocation3 + $0xd8] sm:$0xff]  ;;  %v2224_v29 = vld [vmem:[#allocation2 + $0x20] sm:$0xff] }
 0x431   : > { %v2615_v40 = vmul.f32 %v2413_v22, %v2413_v22  ;;  %v3285_v15 = vsub.f32 %v3157_v36, %v3221_v30  ;;  %v4994_v10 = vadd.s32 240, %v4527_v28  ;;  %v4996_v20 = vadd.f32 %v2539_v32, %v2538_v56  ;;  %v3159_v36 = vld [vmem:[#allocation3 + $0x1e0] sm:$0xff] }
 0x432   : > { %5492 = vst [vmem:[#allocation29_spill] sm:$0xff] %v4991_v2  ;;  %v3550_v4 = vmul.f32 %v3348_v14, %v3348_v14  ;;  %v2414_v8 = vmul.f32 0.032258064, %v2350_v58  ;;  %v2287_v25 = vmul.f32 32.0, %v2105_v0  ;;  %v3222_v26 = vmul.f32 32.0, %v2976_v1  ;;  %v2117_v27 = vpop.f32.mrf.mxu0  ;;  %v2988_v33 = vpop.f32.mrf.mxu1 }
 0x433   : > { %5493 = vst [vmem:[#allocation30_spill] sm:$0xff] %v4994_v10  ;;  %5494 = vst [vmem:[#allocation31_spill] sm:$0xff] %v4996_v20  ;;  %v2678_v9 = vadd.f32 %v2677_v52, %v2615_v40  ;;  %v3349_v5 = vmul.f32 0.032258064, %v3285_v15  ;;  %vm5462_vm4 = vcmp.eq.s32.totalorder %v4934_v3, %v4925_v31  ;;  %v2288_v30 = vmul.f32 32.0, %v2109_v61  ;;  %v3160_v61 = vld [vmem:[#allocation3 + $0x30] sm:$0xff] }
 0x434   : > { %v3613_v21 = vadd.f32 %v3612_v59, %v3550_v4  ;;  %v2616_v7 = vmul.f32 %v2414_v8, %v2414_v8  ;;  %v2351_v14 = vsub.f32 %v2223_v16, %v2287_v25  ;;  %v3286_v58 = vsub.f32 %v3158_v12, %v3222_v26  ;;  %v2121_v32 = vpop.f32.mrf.mxu0  ;;  %v2992_v52 = vpop.f32.mrf.mxu1 }
 0x435   : > { %v3223_v28 = vmul.f32 32.0, %v2980_v17  ;;  %v2289_v56 = vmul.f32 32.0, %v2111_v37  ;;  %v3413_v1 = vsel %vm1705_vm5, %v3349_v5, 0.0  ;;  %v3551_v59 = vmul.f32 %v3349_v5, %v3349_v5 }
 0x436   : > { %v2679_v0 = vadd.f32 %v2678_v9, %v2616_v7  ;;  %v2352_v40 = vsub.f32 %v2224_v29, %v2288_v30  ;;  %v3474_v4 = vadd.f32 %v3473_v55, %v3413_v1  ;;  %v2415_v8 = vmul.f32 0.032258064, %v2351_v14  ;;  %v2123_v2 = vpop.f32.mrf.mxu0  ;;  %v5003_v16 = vpop.f32.mrf.mxu1 }
 0x437   : > { %v3350_v15 = vmul.f32 0.032258064, %v3286_v58  ;;  %v3287_v10 = vsub.f32 %v3159_v36, %v3223_v28  ;;  %v3614_v17 = vadd.f32 %v3613_v21, %v3551_v59  ;;  %v2353_v37 = vsub.f32 %v2225_v44, %v2289_v56  ;;  %v2226_v59 = vld [vmem:[#allocation2 + $0x1a0] sm:$0xff] }
 0x438   : > { %v2416_v12 = vmul.f32 0.032258064, %v2352_v40  ;;  %v3224_v25 = vmul.f32 32.0, %v2982_v38  ;;  %v2475_v54 = vsel %vm1734_vm2, %v4969_v46, 0.0  ;;  %v2617_v7 = vmul.f32 %v2415_v8, %v2415_v8  ;;  %v5009_v55 = vpop.f32.mrf.mxu0  ;;  %v5011_v26 = vpop.f32.mrf.mxu1 }
 0x439   : > { %v3552_v5 = vmul.f32 %v3350_v15, %v3350_v15  ;;  %v3351_v9 = vmul.f32 0.032258064, %v3287_v10  ;;  %v2477_v28 = vsel %vm1736_vm3, %v2413_v22, 0.0  ;;  %vm1740_vm5 = vcmp.eq.s32.totalorder %v4937_v6, %v4925_v31 }
 0x43a   : > { %v2618_v21 = vmul.f32 %v2416_v12, %v2416_v12  ;;  %v2417_v44 = vmul.f32 0.032258064, %v2353_v37  ;;  %v3288_v38 = vsub.f32 %v3160_v61, %v3224_v25  ;;  %v2680_v29 = vadd.f32 %v2679_v0, %v2617_v7  ;;  %v5021_v36 = vpop.f32.mrf.mxu0  ;;  %v5023_v14 = vpop.f32.mrf.mxu1  ;;  %v2227_v12 = vld [vmem:[#allocation2 + $0x1f0] sm:$0xff] }
 0x43b   : > { %v3615_v30 = vadd.f32 %v3614_v17, %v3552_v5  ;;  %v3415_v46 = vsel %vm1707_vm6, %v3351_v9, 0.0  ;;  %v3553_v10 = vmul.f32 %v3351_v9, %v3351_v9  ;;  %v2559_v40 = vadd.f32 %v2477_v28, %v2475_v54  ;;  %v3161_v17 = vld [vmem:[#allocation3 + $0x148] sm:$0xff] }
 0x43c   : > { %v3475_v22 = vadd.f32 %v3474_v4, %v3415_v46  ;;  %v2619_v56 = vmul.f32 %v2417_v44, %v2417_v44  ;;  %v3352_v1 = vmul.f32 0.032258064, %v3288_v38  ;;  %v2681_v15 = vadd.f32 %v2680_v29, %v2618_v21  ;;  %v5027_v37 = vpop.f32.mrf.mxu0  ;;  %v5029_v25 = vpop.f32.mrf.mxu1  ;;  %v2228_v46 = vld [vmem:[#allocation2 + $0xe8] sm:$0xff]  ;;  %v3163_v38 = vld [vmem:[#allocation3 + $0x1f0] sm:$0xff] }
 0x43d   : > { %v3616_v61 = vadd.f32 %v3615_v30, %v3553_v10  ;;  %v2290_v0 = vmul.f32 32.0, %v4983_v57  ;;  %v3225_v5 = vmul.f32 32.0, %v4985_v63  ;;  %v2291_v9 = vmul.f32 32.0, %v2117_v27 }
 0x43e   : > { %v3554_v7 = vmul.f32 %v3352_v1, %v3352_v1  ;;  %v3226_v4 = vmul.f32 32.0, %v2988_v33  ;;  %v2479_v54 = vsel %vm5462_vm4, %v2415_v8, 0.0  ;;  %vm1742_vm6 = vcmp.eq.s32.totalorder %v4940_v18, %v4925_v31  ;;  %v5037_v29 = vpop.f32.mrf.mxu0  ;;  %v5039_v30 = vpop.f32.mrf.mxu1  ;;  %v2229_v1 = vld [vmem:[#allocation2 + $0x78] sm:$0xff] }
 0x43f   : > { %v2354_v28 = vsub.f32 %v2226_v59, %v2290_v0  ;;  %v2292_v57 = vmul.f32 32.0, %v2121_v32  ;;  %v3227_v21 = vmul.f32 32.0, %v2992_v52  ;;  %v2682_v10 = vadd.f32 %v2681_v15, %v2619_v56  ;;  %v3202_v18 = vld [vmem:[#allocation3 + $0xb8] sm:$0xff] }
 0x440   : > { %v3289_v63 = vsub.f32 %v3161_v17, %v3225_v5  ;;  %v2355_v27 = vsub.f32 %v2227_v12, %v2291_v9  ;;  %v3290_v33 = vsub.f32 %v3162_v13, %v3226_v4  ;;  %v2293_v3 = vmul.f32 32.0, %v2123_v2  ;;  %v5041_v8 = vpop.f32.mrf.mxu0  ;;  %v5043_v59 = vpop.f32.mrf.mxu1  ;;  %v3164_v4 = vld [vmem:[#allocation3 + $0x130] sm:$0xff] }
 0x441   : > { %v2418_v58 = vmul.f32 0.032258064, %v2354_v28  ;;  %v2356_v47 = vsub.f32 %v2228_v46, %v2292_v57  ;;  %v3291_v53 = vsub.f32 %v3163_v38, %v3227_v21  ;;  %v3617_v0 = vadd.f32 %v3616_v61, %v3554_v7 }
 0x442   : > { %v3353_v32 = vmul.f32 0.032258064, %v3289_v63  ;;  %v2419_v52 = vmul.f32 0.032258064, %v2355_v27  ;;  %v3354_v20 = vmul.f32 0.032258064, %v3290_v33  ;;  %v2357_v56 = vsub.f32 %v2229_v1, %v2293_v3  ;;  %v5045_v15 = vpop.f32.mrf.mxu0  ;;  %v5047_v17 = vpop.f32.mrf.mxu1 }
 0x443   : > { %v2620_v39 = vmul.f32 %v2418_v58, %v2418_v58  ;;  %v2420_v48 = vmul.f32 0.032258064, %v2356_v47  ;;  %v3355_v43 = vmul.f32 0.032258064, %v3291_v53  ;;  %v2560_v12 = vadd.f32 %v2559_v40, %v2479_v54  ;;  %v3165_v54 = vld [vmem:[#allocation3 + $0x190] sm:$0xff] }
 0x444   : > { %v3417_v2 = vsel %vm1709_vm7, %v3353_v32, 0.0  ;;  %v3555_v13 = vmul.f32 %v3353_v32, %v3353_v32  ;;  %v2621_v5 = vmul.f32 %v2419_v52, %v2419_v52  ;;  %v2481_v61 = vsel %vm1740_vm5, %v2417_v44, 0.0  ;;  %v5057_v53 = vpop.f32.mrf.mxu1  ;;  %v5062_v46 = vpop.f32.mrf.mxu0 }
 0x445   : > { %v2683_v7 = vadd.f32 %v2682_v10, %v2620_v39  ;;  %v3476_v58 = vadd.f32 %v3475_v22, %v3417_v2  ;;  %v3556_v47 = vmul.f32 %v3354_v20, %v3354_v20  ;;  %vm1744_vm4 = vcmp.eq.s32.totalorder %v4943_v19, %v4925_v31  ;;  %v2230_v22 = vld [vmem:[#allocation2 + $0x70] sm:$0xff]  ;;  %v3166_v2 = vld [vmem:[#allocation3 + $0x8] sm:$0xff] }
 0x446   : > { %v3618_v3 = vadd.f32 %v3617_v0, %v3555_v13  ;;  %v2622_v40 = vmul.f32 %v2420_v48, %v2420_v48  ;;  %v3419_v24 = vsel %vm1711_vm8, %v3355_v43, 0.0  ;;  %v3557_v9 = vmul.f32 %v3355_v43, %v3355_v43  ;;  %v5065_v28 = vpop.f32.mrf.mxu1 }
 0x447   : > { %v2684_v38 = vadd.f32 %v2683_v7, %v2621_v5  ;;  %v3477_v44 = vadd.f32 %v3476_v58, %v3419_v24  ;;  %v2421_v39 = vmul.f32 0.032258064, %v2357_v56  ;;  %v3228_v20 = vmul.f32 32.0, %v5003_v16  ;;  %v2232_v5 = vld [vmem:[#allocation2 + $0x1d8] sm:$0xff] }
 0x448   : > { %v3619_v57 = vadd.f32 %v3618_v3, %v3556_v47  ;;  %v2294_v48 = vmul.f32 32.0, %v5009_v55  ;;  %v3229_v21 = vmul.f32 32.0, %v5011_v26  ;;  %v2295_v43 = vmul.f32 32.0, %v5021_v36  ;;  %v5070_v1 = vpop.f32.mrf.mxu1  ;;  %v5075_v55 = vpop.f32.mrf.mxu0 }
 0x449   : > { %v2561_v10 = vadd.f32 %v2560_v12, %v2481_v61  ;;  %v2685_v63 = vadd.f32 %v2684_v38, %v2622_v40  ;;  %v2623_v27 = vmul.f32 %v2421_v39, %v2421_v39  ;;  %v3292_v33 = vsub.f32 %v3164_v4, %v3228_v20 }
 0x44a   : > { %v2483_v16 = vsel %vm1742_vm6, %v2419_v52, 0.0  ;;  %v3620_v0 = vadd.f32 %v3619_v57, %v3557_v9  ;;  %v2358_v32 = vsub.f32 %v2230_v22, %v2294_v48  ;;  %v3293_v56 = vsub.f32 %v3165_v54, %v3229_v21  ;;  %v5080_v61 = vpop.f32.mrf.mxu1  ;;  %v3167_v54 = vld [vmem:[#allocation3 + $0x88] sm:$0xff]  ;;  %v2233_v57 = vld [vmem:[#allocation2 + $0xd0] sm:$0xff]  ;;  %v5090_v48 = vpop.f32.mrf.mxu0 }
 0x44b   : > { %v2686_v26 = vadd.f32 %v2685_v63, %v2623_v27  ;;  %v3356_v13 = vmul.f32 0.032258064, %v3292_v33  ;;  %vm1746_vm7 = vcmp.eq.s32.totalorder %v4949_v34, %v4925_v31  ;;  %v2359_v36 = vsub.f32 %v2231_v50, %v2295_v43  ;;  %v3168_v33 = vld [vmem:[#allocation3 + $0x38] sm:$0xff] }
 0x44c   : > { %v3230_v12 = vmul.f32 32.0, %v5023_v14  ;;  %v2422_v7 = vmul.f32 0.032258064, %v2358_v32  ;;  %v3357_v58 = vmul.f32 0.032258064, %v3293_v56  ;;  %v2296_v52 = vmul.f32 32.0, %v5027_v37  ;;  %v5085_v4 = vpop.f32.mrf.mxu1 }
 0x44d   : > { %v3231_v47 = vmul.f32 32.0, %v5029_v25  ;;  %v3558_v3 = vmul.f32 %v3356_v13, %v3356_v13  ;;  %v2423_v40 = vmul.f32 0.032258064, %v2359_v36  ;;  %v2297_v9 = vmul.f32 32.0, %v5037_v29 }
 0x44e   : > { %v3294_v24 = vsub.f32 %v3166_v2, %v3230_v12  ;;  %v2624_v38 = vmul.f32 %v2422_v7, %v2422_v7  ;;  %v3421_v14 = vsel %vm1713_vm9, %v3357_v58, 0.0  ;;  %v3559_v20 = vmul.f32 %v3357_v58, %v3357_v58  ;;  %v5092_v43 = vpop.f32.mrf.mxu1 }
 0x44f   : > { %v2360_v22 = vsub.f32 %v2232_v5, %v2296_v52  ;;  %v2562_v37 = vadd.f32 %v2561_v10, %v2483_v16  ;;  %v3621_v25 = vadd.f32 %v3620_v0, %v3558_v3  ;;  %v3478_v21 = vadd.f32 %v3477_v44, %v3421_v14  ;;  %v2234_v44 = vld [vmem:[#allocation2 + $0xb8] sm:$0xff] }
 0x450   : > { %v2625_v50 = vmul.f32 %v2423_v40, %v2423_v40  ;;  %v2485_v29 = vsel %vm1744_vm4, %v2421_v39, 0.0  ;;  %v2687_v63 = vadd.f32 %v2686_v26, %v2624_v38  ;;  %v3358_v27 = vmul.f32 0.032258064, %v3294_v24  ;;  %v5100_v16 = vpop.f32.mrf.mxu1  ;;  %v5103_v26 = vpop.f32.mrf.mxu0  ;;  %v3169_v24 = vld [vmem:[#allocation3 + $0xe0] sm:$0xff] }
 0x451   : > { %v2424_v60 = vmul.f32 0.032258064, %v2360_v22  ;;  %v3622_v32 = vadd.f32 %v3621_v25, %v3559_v20  ;;  %v3295_v56 = vsub.f32 %v3167_v54, %v3231_v47  ;;  %vm1748_vm8 = vcmp.eq.s32.totalorder %v4952_v49, %v4925_v31 }
 0x452   : > { %v2361_v2 = vsub.f32 %v2233_v57, %v2297_v9  ;;  %v3232_v10 = vmul.f32 32.0, %v5039_v30  ;;  %v2688_v0 = vadd.f32 %v2687_v63, %v2625_v50  ;;  %v3560_v13 = vmul.f32 %v3358_v27, %v3358_v27  ;;  %v5106_v52 = vpop.f32.mrf.mxu1  ;;  %v2235_v9 = vld [vmem:[#allocation2 + $0x88] sm:$0xff]  ;;  %v5117_v63 = vpop.f32.mrf.mxu0 }
 0x453   : > { %v2626_v36 = vmul.f32 %v2424_v60, %v2424_v60  ;;  %v2298_v39 = vmul.f32 32.0, %v5041_v8  ;;  %v3359_v12 = vmul.f32 0.032258064, %v3295_v56  ;;  %v3233_v58 = vmul.f32 32.0, %v5043_v59  ;;  %v2236_v60 = vld [vmem:[#allocation2 + $0xa8] sm:$0xff] }
 0x454   : > { %v2425_v5 = vmul.f32 0.032258064, %v2361_v2  ;;  %v3296_v7 = vsub.f32 %v3168_v33, %v3232_v10  ;;  %v3623_v47 = vadd.f32 %v3622_v32, %v3560_v13  ;;  %v2299_v38 = vmul.f32 32.0, %v5045_v15  ;;  %v5112_v54 = vpop.f32.mrf.mxu1 }
 0x455   : > { %v2689_v3 = vadd.f32 %v2688_v0, %v2626_v36  ;;  %v2362_v30 = vsub.f32 %v2234_v44, %v2298_v39  ;;  %v2563_v14 = vadd.f32 %v2562_v37, %v2485_v29  ;;  %v3423_v8 = vsel %vm1715_vm10, %v3359_v12, 0.0  ;;  %v3170_v29 = vld [vmem:[#allocation3 + $0x10] sm:$0xff] }
 0x456   : > { %v3561_v20 = vmul.f32 %v3359_v12, %v3359_v12  ;;  %v2627_v22 = vmul.f32 %v2425_v5, %v2425_v5  ;;  %v2487_v59 = vsel %vm1746_vm7, %v2423_v40, 0.0  ;;  %v3479_v57 = vadd.f32 %v3478_v21, %v3423_v8  ;;  %v5121_v33 = vpop.f32.mrf.mxu1 }
 0x457   : > { %v3360_v25 = vmul.f32 0.032258064, %v3296_v7  ;;  %v2426_v50 = vmul.f32 0.032258064, %v2362_v30  ;;  %v3297_v37 = vsub.f32 %v3169_v24, %v3233_v58  ;;  %vm1750_vm9 = vcmp.eq.s32.totalorder %v4955_v51, %v4925_v31  ;;  %v3171_v58 = vld [vmem:[#allocation3 + $0x1a8] sm:$0xff] }
 0x458   : > { %v3624_v27 = vadd.f32 %v3623_v47, %v3561_v20  ;;  %v2690_v15 = vadd.f32 %v2689_v3, %v2627_v22  ;;  %v2363_v23 = vsub.f32 %v2235_v9, %v2299_v38  ;;  %v3234_v40 = vmul.f32 32.0, %v5047_v17  ;;  %v5127_v13 = vpop.f32.mrf.mxu1  ;;  %v2237_v47 = vld [vmem:[#allocation2 + $0x1c8] sm:$0xff]  ;;  %v2159_v3 = vpop.f32.mrf.mxu0 }
 0x459   : > { %v3562_v32 = vmul.f32 %v3360_v25, %v3360_v25  ;;  %v2628_v56 = vmul.f32 %v2426_v50, %v2426_v50  ;;  %v2300_v21 = vmul.f32 32.0, %v5062_v46  ;;  %v3361_v2 = vmul.f32 0.032258064, %v3297_v37 }
 0x45a   : > { %v2427_v10 = vmul.f32 0.032258064, %v2363_v23  ;;  %v3235_v44 = vmul.f32 32.0, %v5057_v53  ;;  %v2301_v0 = vmul.f32 32.0, %v5075_v55  ;;  %v3298_v12 = vsub.f32 %v3170_v29, %v3234_v40  ;;  %v5132_v9 = vpop.f32.mrf.mxu1 }
 0x45b   : > { %v3625_v36 = vadd.f32 %v3624_v27, %v3562_v32  ;;  %v2691_v39 = vadd.f32 %v2690_v15, %v2628_v56  ;;  %v2364_v7 = vsub.f32 %v2236_v60, %v2300_v21  ;;  %v2564_v30 = vadd.f32 %v2563_v14, %v2487_v59  ;;  %v2238_v59 = vld [vmem:[#allocation2 + $0x170] sm:$0xff] }
 0x45c   : > { %v3425_v17 = vsel %vm1717_vm11, %v3361_v2, 0.0  ;;  %v3563_v46 = vmul.f32 %v3361_v2, %v3361_v2  ;;  %v2629_v24 = vmul.f32 %v2427_v10, %v2427_v10  ;;  %v2489_v53 = vsel %vm1748_vm8, %v2425_v5, 0.0  ;;  %v5139_v50 = vpop.f32.mrf.mxu1 }
 0x45d   : > { %v3480_v55 = vadd.f32 %v3479_v57, %v3425_v17  ;;  %v3362_v38 = vmul.f32 0.032258064, %v3298_v12  ;;  %v2428_v8 = vmul.f32 0.032258064, %v2364_v7  ;;  %v3299_v25 = vsub.f32 %v3171_v58, %v3235_v44  ;;  %v5143_v57 = vpop.f32.mrf.mxu0 }
 0x45e   : > { %v3626_v20 = vadd.f32 %v3625_v36, %v3563_v46  ;;  %v2692_v22 = vadd.f32 %v2691_v39, %v2629_v24  ;;  %vm1752_vm10 = vcmp.eq.s32.totalorder %v4961_v41, %v4925_v31  ;;  %v2365_v14 = vsub.f32 %v2237_v47, %v2301_v0  ;;  %v5147_v56 = vpop.f32.mrf.mxu1  ;;  %v3173_v0 = vld [vmem:[#allocation3 + $0x1c0] sm:$0xff]  ;;  %v2239_v36 = vld [vmem:[#allocation2 + $0x178] sm:$0xff] }
 0x45f   : > { %v3564_v27 = vmul.f32 %v3362_v38, %v3362_v38  ;;  %v2630_v15 = vmul.f32 %v2428_v8, %v2428_v8  ;;  %v3236_v37 = vmul.f32 32.0, %v5065_v28  ;;  %v2302_v5 = vmul.f32 32.0, %v5090_v48  ;;  %v2165_v17 = vpop.f32.mrf.mxu0 }
 0x460   : > { %v3363_v23 = vmul.f32 0.032258064, %v3299_v25  ;;  %v2429_v29 = vmul.f32 0.032258064, %v2365_v14  ;;  %v3237_v60 = vmul.f32 32.0, %v5070_v1  ;;  %v2303_v32 = vmul.f32 32.0, %v5103_v26  ;;  %v5152_v7 = vpop.f32.mrf.mxu1 }
 0x461   : > { %v3627_v40 = vadd.f32 %v3626_v20, %v3564_v27  ;;  %v2693_v21 = vadd.f32 %v2692_v22, %v2630_v15  ;;  %v3300_v2 = vsub.f32 %v3172_v35, %v3236_v37  ;;  %v2366_v44 = vsub.f32 %v2238_v59, %v2302_v5 }
 0x462   : > { %v2565_v39 = vadd.f32 %v2564_v30, %v2489_v53  ;;  %v3427_v28 = vsel %vm1719_vm12, %v3363_v23, 0.0  ;;  %v3565_v48 = vmul.f32 %v3363_v23, %v3363_v23  ;;  %v2631_v12 = vmul.f32 %v2429_v29, %v2429_v29  ;;  %v3174_v30 = vld [vmem:[#allocation3 + $0x78] sm:$0xff]  ;;  %v2240_v53 = vld [vmem:[#allocation2 + $0x68] sm:$0xff]  ;;  %v5159_v8 = vpop.f32.mrf.mxu1 }
 0x463   : > { %v2491_v1 = vsel %vm1750_vm9, %v2427_v10, 0.0  ;;  %v3481_v26 = vadd.f32 %v3480_v55, %v3427_v28  ;;  %v3364_v58 = vmul.f32 0.032258064, %v3300_v2  ;;  %v2430_v47 = vmul.f32 0.032258064, %v2366_v44 }
 0x464   : > { %v3628_v46 = vadd.f32 %v3627_v40, %v3565_v48  ;;  %v2694_v24 = vadd.f32 %v2693_v21, %v2631_v12  ;;  %v3301_v38 = vsub.f32 %v3173_v0, %v3237_v60  ;;  %vm5463_vm11 = vcmp.eq.s32.totalorder %v4964_v42, %v4925_v31  ;;  %v5164_v27 = vpop.f32.mrf.mxu1  ;;  %v3175_v60 = vld [vmem:[#allocation3 + $0x108] sm:$0xff]  ;;  %v2169_v40 = vpop.f32.mrf.mxu0 }
 0x465   : > { %v2367_v62 = vsub.f32 %v2239_v36, %v2303_v32  ;;  %v3566_v20 = vmul.f32 %v3364_v58, %v3364_v58  ;;  %v2632_v22 = vmul.f32 %v2430_v47, %v2430_v47  ;;  %v3238_v25 = vmul.f32 32.0, %v5080_v61  ;;  %v2241_v32 = vld [vmem:[#allocation2 + $0x190] sm:$0xff]  ;;  %v2242_v58 = vld [vmem:[#allocation2 + $0x198] sm:$0xff] }
 0x466   : > { %v2304_v10 = vmul.f32 32.0, %v5117_v63  ;;  %v3365_v55 = vmul.f32 0.032258064, %v3301_v38  ;;  %v3239_v35 = vmul.f32 32.0, %v5085_v4  ;;  %v2305_v59 = vmul.f32 32.0, %v2159_v3  ;;  %v5169_v44 = vpop.f32.mrf.mxu1  ;;  %v5496_v47 = vld [vmem:[#allocation28_spill] sm:$0xff] }
 0x467   : > { %v2431_v14 = vmul.f32 0.032258064, %v2367_v62  ;;  %v3629_v15 = vadd.f32 %v3628_v46, %v3566_v20  ;;  %v2695_v37 = vadd.f32 %v2694_v24, %v2632_v22  ;;  %v3302_v5 = vsub.f32 %v3174_v30, %v3238_v25  ;;  %v2171_v62 = vpop.f32.mrf.mxu0 }
 0x468   : > { %v2368_v23 = vsub.f32 %v2240_v53, %v2304_v10  ;;  %v2566_v21 = vadd.f32 %v2565_v39, %v2491_v1  ;;  %v3429_v61 = vsel %vm1721_vm13, %v3365_v55, 0.0  ;;  %v3567_v63 = vmul.f32 %v3365_v55, %v3365_v55  ;;  %v5495_v39 = vld [vmem:[#allocation27_spill] sm:$0xff]  ;;  %v5178_v46 = vpop.f32.mrf.mxu1 }
 0x469   : > { %v2633_v2 = vmul.f32 %v2431_v14, %v2431_v14  ;;  %v2493_v4 = vsel %vm1752_vm10, %v2429_v29, 0.0  ;;  %v3482_v3 = vadd.f32 %v3481_v26, %v3429_v61  ;;  %v3366_v0 = vmul.f32 0.032258064, %v3302_v5 }
 0x46a   : > { %v2432_v36 = vmul.f32 0.032258064, %v2368_v23  ;;  %v3630_v28 = vadd.f32 %v3629_v15, %v3567_v63  ;;  %v3303_v12 = vsub.f32 %v3175_v60, %v3239_v35  ;;  %vm1756_vm12 = vcmp.eq.s32.totalorder %v5495_v39, %v4925_v31  ;;  %v5183_v25 = vpop.f32.mrf.mxu1  ;;  %v3177_v15 = vld [vmem:[#allocation3 + $0x58] sm:$0xff]  ;;  %v3189_v39 = vld [vmem:[#allocation3 + $0x1e8] sm:$0xff] }
 0x46b   : > { %v2696_v48 = vadd.f32 %v2695_v37, %v2633_v2  ;;  %v2369_v1 = vsub.f32 %v2241_v32, %v2305_v59  ;;  %vm1758_vm13 = vcmp.eq.s32.totalorder %v5496_v47, %v4925_v31  ;;  %v3568_v24 = vmul.f32 %v3366_v0, %v3366_v0  ;;  %v2243_v37 = vld [vmem:[#allocation2 + $0x38] sm:$0xff]  ;;  %v2175_v2 = vpop.f32.mrf.mxu0 }
 0x46c   : > { %v2634_v38 = vmul.f32 %v2432_v36, %v2432_v36  ;;  %v3240_v29 = vmul.f32 32.0, %v5092_v43  ;;  %v2306_v26 = vmul.f32 32.0, %v5143_v57  ;;  %v3367_v30 = vmul.f32 0.032258064, %v3303_v12  ;;  %v5188_v32 = vpop.f32.mrf.mxu1  ;;  %v5498_v12 = vld [vmem:[#allocation29_spill] sm:$0xff] }
 0x46d   : > { %v2433_v53 = vmul.f32 0.032258064, %v2369_v1  ;;  %v3241_v20 = vmul.f32 32.0, %v5100_v16  ;;  %v2307_v22 = vmul.f32 32.0, %v2165_v17  ;;  %v3631_v10 = vadd.f32 %v3630_v28, %v3568_v24  ;;  %v3178_v28 = vld [vmem:[#allocation3 + $0x48] sm:$0xff] }
 0x46e   : > { %v2697_v55 = vadd.f32 %v2696_v48, %v2634_v38  ;;  %v3304_v35 = vsub.f32 %v3176_v11, %v3240_v29  ;;  %v2370_v59 = vsub.f32 %v2242_v58, %v2306_v26  ;;  %v2567_v5 = vadd.f32 %v2566_v21, %v2493_v4  ;;  %v2244_v48 = vld [vmem:[#allocation2 + $0xc0] sm:$0xff]  ;;  %v5197_v1 = vpop.f32.mrf.mxu1 }
 0x46f   : > { %v3431_v43 = vsel %vm1723_vm14, %v3367_v30, 0.0  ;;  %v3569_v57 = vmul.f32 %v3367_v30, %v3367_v30  ;;  %v2635_v60 = vmul.f32 %v2433_v53, %v2433_v53  ;;  %v2495_v16 = vsel %vm5463_vm11, %v2431_v14, 0.0 }
 0x470   : > { %v5193_v17 = vadd.f32 %v3482_v3, %v3431_v43  ;;  %v3368_v61 = vmul.f32 0.032258064, %v3304_v35  ;;  %v2434_v63 = vmul.f32 0.032258064, %v2370_v59  ;;  %v3305_v21 = vsub.f32 %v3177_v15, %v3241_v20  ;;  %v5201_v30 = vpop.f32.mrf.mxu1  ;;  %v3179_v35 = vld [vmem:[#allocation3 + $0x40] sm:$0xff]  ;;  %v2177_v15 = vpop.f32.mrf.mxu0 }
 0x471   : > { %v3632_v0 = vadd.f32 %v3631_v10, %v3569_v57  ;;  %v2698_v36 = vadd.f32 %v2697_v55, %v2635_v60  ;;  %v2371_v4 = vsub.f32 %v2243_v37, %v2307_v22  ;;  %vm1760_vm14 = vcmp.eq.s32.totalorder %v5498_v12, %v4925_v31  ;;  %v2245_v59 = vld [vmem:[#allocation2 + $0x1c0] sm:$0xff] }
 0x472   : > { %v3570_v11 = vmul.f32 %v3368_v61, %v3368_v61  ;;  %v2636_v58 = vmul.f32 %v2434_v63, %v2434_v63  ;;  %v3242_v14 = vmul.f32 32.0, %v5106_v52  ;;  %v2308_v3 = vmul.f32 32.0, %v2169_v40  ;;  %v5499_v37 = vld [vmem:[#allocation31_spill] sm:$0xff]  ;;  %v5208_v60 = vpop.f32.mrf.mxu1 }
 0x473   : > { %v3369_v24 = vmul.f32 0.032258064, %v3305_v21  ;;  %v2435_v38 = vmul.f32 0.032258064, %v2371_v4  ;;  %v3243_v29 = vmul.f32 32.0, %v5112_v54  ;;  %v2309_v26 = vmul.f32 32.0, %v2171_v62 }
 0x474   : > { %v3633_v20 = vadd.f32 %v3632_v0, %v3570_v11  ;;  %v2699_v22 = vadd.f32 %v2698_v36, %v2636_v58  ;;  %v3306_v10 = vsub.f32 %v3178_v28, %v3242_v14  ;;  %v2372_v55 = vsub.f32 %v2244_v48, %v2308_v3  ;;  %v5502_v0 = vld [vmem:[#allocation30_spill] sm:$0xff]  ;;  %v5218_v48 = vpop.f32.mrf.mxu1  ;;  %v2181_v3 = vpop.f32.mrf.mxu0 }
 0x475   : > { %v5500_v23 = vrot.slane %v5499_v37, 1  ;;  %v2568_v52 = vadd.f32 %v2567_v5, %v2495_v16  ;;  %v3571_v40 = vmul.f32 %v3369_v24, %v3369_v24  ;;  %v2637_v57 = vmul.f32 %v2435_v38, %v2435_v38  ;;  %v3180_v4 = vld [vmem:[#allocation3 + $0x1a0] sm:$0xff]  ;;  %v2246_v28 = vld [vmem:[#allocation2 + $0x158] sm:$0xff] }
 0x476   : > { %v2497_v54 = vsel %vm1756_vm12, %v2433_v53, 0.0  ;;  %v2499_v62 = vsel %vm1758_vm13, %v2435_v38, 0.0  ;;  %v3370_v61 = vmul.f32 0.032258064, %v3306_v10  ;;  %v2436_v63 = vmul.f32 0.032258064, %v2372_v55 }
 0x477   : > { %v5206_v43 = vadd.f32 %v5500_v23, %v5499_v37  ;;  %vm1762_vm11 = vcmp.eq.s32.totalorder %v5502_v0, %v4925_v31  ;;  %v3634_v36 = vadd.f32 %v3633_v20, %v3571_v40  ;;  %v2700_v21 = vadd.f32 %v2699_v22, %v2637_v57  ;;  %v5224_v20 = vpop.f32.mrf.mxu1  ;;  %v2247_v23 = vld [vmem:[#allocation2 + $0x10] sm:$0xff] }
 0x478   : > { %v3307_v5 = vsub.f32 %v3179_v35, %v3243_v29  ;;  %v2373_v16 = vsub.f32 %v2245_v59, %v2309_v26  ;;  %v3572_v11 = vmul.f32 %v3370_v61, %v3370_v61  ;;  %v2638_v58 = vmul.f32 %v2436_v63, %v2436_v63  ;;  %v3181_v59 = vld [vmem:[#allocation3 + $0x198] sm:$0xff] }
 0x479   : > { %5501 = vst [vmem:[#allocation18_spill] sm:$0xff] %v5206_v43  ;;  %v3244_v53 = vmul.f32 32.0, %v5121_v33  ;;  %v2310_v14 = vmul.f32 32.0, %v2175_v2  ;;  %v3245_v55 = vmul.f32 32.0, %v5127_v13  ;;  %v2311_v37 = vmul.f32 32.0, %v2177_v15  ;;  %v5504_v13 = vld [vmem:[#allocation17_spill] sm:$0xff]  ;;  %v5237_v61 = vpop.f32.mrf.mxu1 }
 0x47a   : > { %v5221_v38 = vmul.f32 0.032258064, %v3307_v5  ;;  %v2437_v10 = vmul.f32 0.032258064, %v2373_v16  ;;  %v2569_v29 = vadd.f32 %v2568_v52, %v2497_v54  ;;  %v3635_v26 = vadd.f32 %v3634_v36, %v3572_v11  ;;  %v2183_v5 = vpop.f32.mrf.mxu0  ;;  %v3182_v11 = vld [vmem:[#allocation3 + $0xe8] sm:$0xff] }
 0x47b   : > { %v3308_v22 = vsub.f32 %v3180_v4, %v3244_v53  ;;  %v2374_v35 = vsub.f32 %v2246_v28, %v2310_v14  ;;  %v5227_v40 = vadd.f32 0.0001, %v5206_v43  ;;  %v3433_v2 = vsel %vm1725_vm15, %v3369_v24, 0.0  ;;  %v5242_v53 = vpop.f32.mrf.mxu1 }
 0x47c   : > { %v3573_v57 = vmul.f32 %v5221_v38, %v5221_v38  ;;  %v5235_v15 = vadd.s32 248, %v5504_v13  ;;  %v2570_v52 = vadd.f32 %v2569_v29, %v2499_v62  ;;  %v2701_v54 = vadd.f32 %v2700_v21, %v2638_v58  ;;  %v2248_v13 = vld [vmem:[#allocation2 + $0x58] sm:$0xff] }
 0x47d   : > { %v2501_v63 = vsel %vm1760_vm14, %v2437_v10, 0.0  ;;  %v3372_v36 = vmul.f32 0.032258064, %v3308_v22  ;;  %v2639_v4 = vmul.f32 %v2437_v10, %v2437_v10  ;;  %v3309_v28 = vsub.f32 %v3181_v59, %v3245_v55  ;;  %v5248_v12 = vpop.f32.mrf.mxu1 }
 0x47e   : > { %5505 = vst [vmem:[#allocation31_spill] sm:$0xff] %v5235_v15  ;;  %v3636_v16 = vadd.f32 %v3635_v26, %v3573_v57  ;;  %v2375_v24 = vsub.f32 %v2247_v23, %v2311_v37  ;;  %v2438_v33 = vmul.f32 0.032258064, %v2374_v35  ;;  %v3246_v43 = vmul.f32 32.0, %v5132_v9  ;;  %v3183_v37 = vld [vmem:[#allocation3 + $0x168] sm:$0xff]  ;;  %v2249_v26 = vld [vmem:[#allocation2 + $0xa0] sm:$0xff] }
 0x47f   : > { %v3574_v14 = vmul.f32 %v3372_v36, %v3372_v36  ;;  %v2312_v62 = vmul.f32 32.0, %v2181_v3  ;;  %v5245_v21 = vmul.f32 0.032258064, %v3309_v28  ;;  %v3247_v29 = vmul.f32 32.0, %v5139_v50  ;;  %v5259_v59 = vpop.f32.mrf.mxu1 }
 0x480   : > { %v2439_v58 = vmul.f32 0.032258064, %v2375_v24  ;;  %v2313_v22 = vmul.f32 32.0, %v2183_v5  ;;  %v3310_v55 = vsub.f32 %v3182_v11, %v3246_v43  ;;  %vm1764_vm15 = vcmp.eq.s32.totalorder %v5235_v15, %v4925_v31  ;;  %v3184_v5 = vld [vmem:[#allocation3 + $0x158] sm:$0xff] }
 0x481   : > { %v3637_v10 = vadd.f32 %v3636_v16, %v3574_v14  ;;  %4095 = vrsqrt.f32 %v5227_v40  ;;  %v3484_v9 = vadd.f32 %v5193_v17, %v3433_v2  ;;  %v2571_v3 = vadd.f32 %v2570_v52, %v2501_v63  ;;  %v3185_v2 = vld [vmem:[#allocation3 + $0x1d8] sm:$0xff]  ;;  %v3186_v52 = vld [vmem:[#allocation3 + $0x28] sm:$0xff]  ;;  %v5262_v63 = vpop.f32.mrf.mxu1 }
 0x482   : > { %v3575_v35 = vmul.f32 %v5245_v21, %v5245_v21  ;;  %v2503_v50 = vsel %vm1762_vm11, %v2439_v58, 0.0  ;;  %v2702_v43 = vadd.f32 %v2701_v54, %v2639_v4  ;;  %v2640_v23 = vmul.f32 %v2438_v33, %v2438_v33 }
 0x483   : > { %v3374_v57 = vmul.f32 0.032258064, %v3310_v55  ;;  %v2376_v36 = vsub.f32 %v2248_v13, %v2312_v62  ;;  %v3311_v28 = vsub.f32 %v3183_v37, %v3247_v29  ;;  %v2377_v24 = vsub.f32 %v2249_v26, %v2313_v22  ;;  %v5267_v62 = vpop.f32.mrf.mxu1  ;;  %v3188_v55 = vld [vmem:[#allocation3 + $0x1c8] sm:$0xff] }
 0x484   : > { %v3638_v16 = vadd.f32 %v3637_v10, %v3575_v35  ;;  %v3248_v17 = vmul.f32 32.0, %v5147_v56  ;;  %v2572_v11 = vadd.f32 %v2571_v3, %v2503_v50  ;;  %v3249_v0 = vmul.f32 32.0, %v5152_v7  ;;  %v3187_v10 = vld [vmem:[#allocation3] sm:$0xff] }
 0x485   : > { %v3576_v14 = vmul.f32 %v3374_v57, %v3374_v57  ;;  %v3250_v47 = vmul.f32 32.0, %v5159_v8  ;;  %v3375_v54 = vmul.f32 0.032258064, %v3311_v28  ;;  %v2441_v4 = vmul.f32 0.032258064, %v2377_v24  ;;  %v5277_v35 = vpop.f32.mrf.mxu1 }
 0x486   : > { %v3312_v33 = vsub.f32 %v3184_v5, %v3248_v17  ;;  %v3251_v13 = vmul.f32 32.0, %v5164_v27  ;;  %v3313_v22 = vsub.f32 %v3185_v2, %v3249_v0  ;;  %v3252_v37 = vmul.f32 32.0, %v5169_v44 }
 0x487   : > { %v3639_v29 = vadd.f32 %v3638_v16, %v3576_v14  ;;  %v3314_v56 = vsub.f32 %v3186_v52, %v3250_v47  ;;  %v3435_v7 = vsel %vm1727_vm0, %v5221_v38, 0.0  ;;  %v3577_v8 = vmul.f32 %v3375_v54, %v3375_v54  ;;  %v5279_v24 = vpop.f32.mrf.mxu1 }
 0x488   : > { %v2505_v3 = vsel %vm1764_vm15, %v2441_v4, 0.0  ;;  %v3376_v27 = vmul.f32 0.032258064, %v3312_v33  ;;  %v2440_v50 = vmul.f32 0.032258064, %v2376_v36  ;;  %v3315_v44 = vsub.f32 %v3187_v10, %v3251_v13 }
 0x489   : > { %v2573_v0 = vadd.f32 %v2572_v11, %v2505_v3  ;;  %v3377_v47 = vmul.f32 0.032258064, %v3313_v22  ;;  %v3378_v57 = vmul.f32 0.032258064, %v3314_v56  ;;  %v3640_v5 = vadd.f32 %v3639_v29, %v3577_v8  ;;  %v5281_v42 = vpop.f32.mrf.mxu1 }
 0x48a   : > { %v3578_v16 = vmul.f32 %v3376_v27, %v3376_v27  ;;  %v3316_v28 = vsub.f32 %v3188_v55, %v3252_v37  ;;  %v2703_v17 = vadd.f32 %v2702_v43, %v2640_v23  ;;  %v2641_v38 = vmul.f32 %v2439_v58, %v2439_v58  ;;  %v5508_v23 = vld [vmem:[#allocation22_spill] sm:$0xff] }
 0x48b   : > { %v2574_v2 = vrot.slane %v2573_v0, 4  ;;  %v3579_v52 = vmul.f32 %v3377_v47, %v3377_v47  ;;  %v3580_v26 = vmul.f32 %v3378_v57, %v3378_v57  ;;  %v3379_v15 = vmul.f32 0.032258064, %v3315_v44  ;;  %v5293_v37 = vpop.f32.mrf.mxu1  ;;  %v3190_v27 = vld [vmem:[#allocation3 + $0x140] sm:$0xff] }
 0x48c   : > { %v3641_v14 = vadd.f32 %v3640_v5, %v3578_v16  ;;  %v3380_v33 = vmul.f32 0.032258064, %v3316_v28  ;;  %v3485_v36 = vadd.f32 %v3484_v9, %v3435_v7  ;;  %v3437_v13 = vsel %vm1729_vm1, %v5245_v21, 0.0  ;;  %v3191_v21 = vld [vmem:[#allocation3 + $0x60] sm:$0xff]  ;;  %v3192_v5 = vld [vmem:[#allocation3 + $0x98] sm:$0xff] }
 0x48d   : > { %v2575_v29 = vadd.f32 %v2574_v2, %v2573_v0  ;;  %v3253_v22 = vmul.f32 32.0, %v5178_v46  ;;  %v2642_v58 = vmul.f32 %v2440_v50, %v2440_v50  ;;  %vm5509_vm0 = vcmp.eq.s32.totalorder %v5508_v23, %v4803_v45  ;;  %v3193_v16 = vld [vmem:[#allocation3 + $0x1b8] sm:$0xff]  ;;  %v3198_v45 = vld [vmem:[#allocation3 + $0x180] sm:$0xff] }
 0x48e   : > { %v5288_v43 = vpop.eup %4095  ;;  %v3439_v56 = vsel %vm5509_vm0, %v3375_v54, 0.0  ;;  %v3642_v10 = vadd.f32 %v3641_v14, %v3579_v52  ;;  %v3581_v55 = vmul.f32 %v3379_v15, %v3379_v15  ;;  %v3582_v7 = vmul.f32 %v3380_v33, %v3380_v33 }
 0x48f   : > { %v2576_v9 = vrot.slane %v2575_v29, 2  ;;  %v3317_v8 = vsub.f32 %v3189_v39, %v3253_v22  ;;  %v2643_v3 = vmul.f32 %v2441_v4, %v2441_v4  ;;  %v2704_v47 = vadd.f32 %v2703_v17, %v2641_v38  ;;  %v5302_v17 = vpop.f32.mrf.mxu1 }
 0x490   : > { %v3643_v0 = vadd.f32 %v3642_v10, %v3580_v26  ;;  %v3254_v46 = vmul.f32 32.0, %v5183_v25  ;;  %v3255_v50 = vmul.f32 32.0, %v5188_v32  ;;  %v3444_v15 = vsel %vm1736_vm3, %v3380_v33, 0.0 }
 0x491   : > { %v3381_v54 = vmul.f32 0.032258064, %v3317_v8  ;;  %v3256_v44 = vmul.f32 32.0, %v5197_v1  ;;  %v3257_v39 = vmul.f32 32.0, %v5201_v30  ;;  %v2705_v28 = vadd.f32 %v2704_v47, %v2642_v58  ;;  %v3194_v1 = vld [vmem:[#allocation3 + $0x100] sm:$0xff]  ;;  %v3195_v47 = vld [vmem:[#allocation3 + $0xc8] sm:$0xff] }
 0x492   : > { %v3644_v4 = vadd.f32 %v3643_v0, %v3581_v55  ;;  %v3318_v2 = vsub.f32 %v3190_v27, %v3254_v46  ;;  %v3319_v52 = vsub.f32 %v3191_v21, %v3255_v50  ;;  %v2577_v25 = vadd.f32 %v2576_v9, %v2575_v29  ;;  %v5308_v21 = vpop.f32.mrf.mxu1 }
 0x493   : > { %v3583_v38 = vmul.f32 %v3381_v54, %v3381_v54  ;;  %v3320_v32 = vsub.f32 %v3192_v5, %v3256_v44  ;;  %v3321_v14 = vsub.f32 %v3193_v16, %v3257_v39  ;;  %v2706_v11 = vadd.f32 %v2705_v28, %v2643_v3  ;;  %v3196_v5 = vld [vmem:[#allocation3 + $0xf8] sm:$0xff] }
 0x494   : > { %v3645_v26 = vadd.f32 %v3644_v4, %v3582_v7  ;;  %v3382_v22 = vmul.f32 0.032258064, %v3318_v2  ;;  %v3383_v23 = vmul.f32 0.032258064, %v3319_v52  ;;  %v3486_v33 = vadd.f32 %v3485_v36, %v3437_v13  ;;  %v5512_v36 = vld [vmem:[#allocation25_spill] sm:$0xff]  ;;  %v5320_v52 = vpop.f32.mrf.mxu1 }
 0x495   : > { %v3384_v10 = vmul.f32 0.032258064, %v3320_v32  ;;  %v3385_v8 = vmul.f32 0.032258064, %v3321_v14  ;;  %v3258_v30 = vmul.f32 32.0, %v5208_v60  ;;  %v3442_v58 = vsel %vm1734_vm2, %v3378_v57, 0.0  ;;  %2707 = vadd.xlane.f32.xlu0 %v2706_v11 }
 0x496   : > { %v3646_v27 = vadd.f32 %v3645_v26, %v3583_v38  ;;  %v3584_v29 = vmul.f32 %v3382_v22, %v3382_v22  ;;  %v3585_v9 = vmul.f32 %v3383_v23, %v3383_v23  ;;  %v5310_v7 = vadd.f32 %v3486_v33, %v3439_v56  ;;  %v3197_v16 = vld [vmem:[#allocation3 + $0x178] sm:$0xff]  ;;  %v3199_v26 = vld [vmem:[#allocation3 + $0xb0] sm:$0xff] }
 0x497   : > { %v2578_v3 = vrot.slane %v2577_v25, 1  ;;  %v3526_v0 = vadd.f32 %v3444_v15, %v3442_v58  ;;  %vm5513_vm1 = vcmp.eq.s32.totalorder %v5512_v36, %v4925_v31  ;;  %v3586_v46 = vmul.f32 %v3384_v10, %v3384_v10  ;;  %v3200_v33 = vld [vmem:[#allocation3 + $0x110] sm:$0xff]  ;;  %v3201_v36 = vld [vmem:[#allocation3 + $0x20] sm:$0xff] }
 0x498   : > { %v3446_v13 = vsel %vm5513_vm1, %v3382_v22, 0.0  ;;  %v3647_v60 = vadd.f32 %v3646_v27, %v3584_v29  ;;  %v3322_v50 = vsub.f32 %v3194_v1, %v3258_v30  ;;  %v3259_v57 = vmul.f32 32.0, %v5218_v48  ;;  %v5329_v30 = vpop.f32.mrf.mxu1 }
 0x499   : > { %v3587_v54 = vmul.f32 %v3385_v8, %v3385_v8  ;;  %v3260_v44 = vmul.f32 32.0, %v5224_v20  ;;  %v3261_v56 = vmul.f32 32.0, %v5237_v61  ;;  %v3262_v15 = vmul.f32 32.0, %v5242_v53 }
 0x49a   : > { %v3648_v39 = vadd.f32 %v3647_v60, %v3585_v9  ;;  %v3386_v4 = vmul.f32 0.032258064, %v3322_v50  ;;  %v3323_v28 = vsub.f32 %v3195_v47, %v3259_v57  ;;  %v3263_v2 = vmul.f32 32.0, %v5248_v12  ;;  %v3204_v50 = vld [vmem:[#allocation3 + $0x90] sm:$0xff] }
 0x49b   : > { %v3448_v48 = vsel %vm1740_vm5, %v3384_v10, 0.0  ;;  %v3324_v38 = vsub.f32 %v3196_v5, %v3260_v44  ;;  %v3325_v32 = vsub.f32 %v3197_v16, %v3261_v56  ;;  %v3326_v14 = vsub.f32 %v3198_v45, %v3262_v15  ;;  %v3203_v45 = vld [vmem:[#allocation3 + $0x120] sm:$0xff] }
 0x49c   : > { %v3649_v20 = vadd.f32 %v3648_v39, %v3586_v46  ;;  %v3588_v11 = vmul.f32 %v3386_v4, %v3386_v4  ;;  %v3387_v61 = vmul.f32 0.032258064, %v3323_v28  ;;  %v3264_v53 = vmul.f32 32.0, %v5259_v59 }
 0x49d   : > { %v3527_v22 = vadd.f32 %v3526_v0, %v3446_v13  ;;  %v3450_v12 = vsel %vm1742_vm6, %v3386_v4, 0.0  ;;  %v3388_v23 = vmul.f32 0.032258064, %v3324_v38  ;;  %v3389_v6 = vmul.f32 0.032258064, %v3325_v32  ;;  %v3205_v4 = vld [vmem:[#allocation3 + $0xa8] sm:$0xff] }
 0x49e   : > { %v3650_v8 = vadd.f32 %v3649_v20, %v3587_v54  ;;  %v3589_v1 = vmul.f32 %v3387_v61, %v3387_v61  ;;  %v3327_v10 = vsub.f32 %v3199_v26, %v3263_v2  ;;  %v3504_v55 = vrot.slane %v5310_v7, 4 }
 0x49f   : > { %v3528_v58 = vadd.f32 %v3527_v22, %v3448_v48  ;;  %v3390_v27 = vmul.f32 0.032258064, %v3326_v14  ;;  %v5332_v29 = vadd.f32 %v2578_v3, %v2577_v25  ;;  %v3590_v9 = vmul.f32 %v3388_v23, %v3388_v23  ;;  %v5338_v3 = vpop.f32.mrf.mxu1  ;;  %v3206_v14 = vld [vmem:[#allocation3 + $0xc0] sm:$0xff]  ;;  %v3207_v22 = vld [vmem:[#allocation3 + $0x138] sm:$0xff] }
 0x4a0   : > { %v3651_v59 = vadd.f32 %v3650_v8, %v3588_v11  ;;  %v3328_v0 = vsub.f32 %v3200_v33, %v3264_v53  ;;  %v3265_v47 = vmul.f32 32.0, %v5262_v63  ;;  %v3266_v60 = vmul.f32 32.0, %v5267_v62 }
 0x4a1   : > { %v3529_v13 = vadd.f32 %v3528_v58, %v3450_v12  ;;  %v3267_v46 = vmul.f32 32.0, %v5277_v35  ;;  %v3591_v5 = vmul.f32 %v3389_v6, %v3389_v6  ;;  %v3391_v16 = vmul.f32 0.032258064, %v3327_v10  ;;  %v3138_v26 = vpop.f32.mrf.mxu1 }
 0x4a2   : > { %v3652_v57 = vadd.f32 %v3651_v59, %v3589_v1  ;;  %v3268_v25 = vmul.f32 32.0, %v5279_v24  ;;  %v3452_v54 = vsel %vm1744_vm4, %v3388_v23, 0.0  ;;  %v3454_v63 = vsel %vm1746_vm7, %v3390_v27, 0.0 }
 0x4a3   : > { %v3329_v62 = vsub.f32 %v3201_v36, %v3265_v47  ;;  %v3330_v44 = vsub.f32 %v3202_v18, %v3266_v60  ;;  %v3592_v56 = vmul.f32 %v3390_v27, %v3390_v27  ;;  %v3392_v15 = vmul.f32 0.032258064, %v3328_v0  ;;  %v3142_v27 = vpop.f32.mrf.mxu1 }
 0x4a4   : > { %v3653_v35 = vadd.f32 %v3652_v57, %v3590_v9  ;;  %v3332_v39 = vsub.f32 %v3204_v50, %v3268_v25  ;;  %v3331_v2 = vsub.f32 %v3203_v45, %v3267_v46  ;;  %v3269_v24 = vmul.f32 32.0, %v5281_v42  ;;  %v5514_v25 = vld [vmem:[#allocation26_spill] sm:$0xff] }
 0x4a5   : > { %v3393_v28 = vmul.f32 0.032258064, %v3329_v62  ;;  %v3270_v48 = vmul.f32 32.0, %v5293_v37  ;;  %v3593_v19 = vmul.f32 %v3391_v16, %v3391_v16  ;;  %v3394_v32 = vmul.f32 0.032258064, %v3330_v44  ;;  %v3144_v57 = vpop.f32.mrf.mxu1  ;;  %v3209_v62 = vld [vmem:[#allocation3 + $0x1b0] sm:$0xff] }
 0x4a6   : > { %v3654_v38 = vadd.f32 %v3653_v35, %v3591_v5  ;;  %v3271_v34 = vmul.f32 32.0, %v5302_v17  ;;  %v5350_v20 = vadd.f32 %v3504_v55, %v5310_v7  ;;  %v5353_v11 = vadd.f32 0.0001, %v5332_v29  ;;  %v3208_v55 = vld [vmem:[#allocation3 + $0x188] sm:$0xff]  ;;  %v3210_v44 = vld [vmem:[#allocation3 + $0x18] sm:$0xff]  ;;  %v3211_v35 = vld [vmem:[#allocation3 + $0xf0] sm:$0xff] }
 0x4a7   : > { %v3530_v61 = vadd.f32 %v3529_v13, %v3452_v54  ;;  %v3333_v53 = vsub.f32 %v3205_v4, %v3269_v24  ;;  %v3456_v42 = vsel %vm1748_vm8, %v3392_v15, 0.0  ;;  %v3594_v37 = vmul.f32 %v3392_v15, %v3392_v15 }
 0x4a8   : > { %v3655_v12 = vadd.f32 %v3654_v38, %v3592_v56  ;;  %v3396_v23 = vmul.f32 0.032258064, %v3332_v39  ;;  %v3595_v8 = vmul.f32 %v3393_v28, %v3393_v28  ;;  %v3395_v17 = vmul.f32 0.032258064, %v3331_v2  ;;  %v3212_v28 = vld [vmem:[#allocation3 + $0x128] sm:$0xff] }
 0x4a9   : > { %v3531_v33 = vadd.f32 %v3530_v61, %v3454_v63  ;;  %v3334_v1 = vsub.f32 %v3206_v14, %v3270_v48  ;;  %v3458_v7 = vsel %vm1750_vm9, %v3394_v32, 0.0  ;;  %v3335_v10 = vsub.f32 %v3207_v22, %v3271_v34 }
 0x4aa   : > { %v3656_v6 = vadd.f32 %v3655_v12, %v3593_v19  ;;  %v3272_v58 = vmul.f32 32.0, %v5308_v21  ;;  %v3397_v9 = vmul.f32 0.032258064, %v3333_v53  ;;  %v3701_v49 = vmul.f32 %v5288_v43, %v5227_v40  ;;  %v3214_v19 = vld [vmem:[#allocation3 + $0x170] sm:$0xff] }
 0x4ab   : > { %v3532_v59 = vadd.f32 %v3531_v33, %v3456_v42  ;;  %v3596_v36 = vmul.f32 %v3394_v32, %v3394_v32  ;;  %v3460_v18 = vsel %vm1752_vm10, %v3396_v23, 0.0  ;;  %v3398_v13 = vmul.f32 0.032258064, %v3334_v1  ;;  %v3148_v32 = vpop.f32.mrf.mxu1  ;;  %v3213_v42 = vld [vmem:[#allocation3 + $0x1f8] sm:$0xff] }
 0x4ac   : > { %v3657_v0 = vadd.f32 %v3656_v6, %v3594_v37  ;;  %v3506_v51 = vrot.slane %v5350_v20, 2  ;;  %v3597_v60 = vmul.f32 %v3395_v17, %v3395_v17  ;;  %v3336_v46 = vsub.f32 %v3208_v55, %v3272_v58 }
 0x4ad   : > { %v3533_v47 = vadd.f32 %v3532_v59, %v3458_v7  ;;  %v3399_v21 = vmul.f32 0.032258064, %v3335_v10  ;;  %vm3702_vm2 = vcmp.eq.f32.partialorder %v5227_v40, inf  ;;  %4097 = vrsqrt.f32 %v5353_v11  ;;  %v3150_v6 = vpop.f32.mrf.mxu1 }
 0x4ae   : > { %v3658_v50 = vadd.f32 %v3657_v0, %v3595_v8  ;;  %v3598_v5 = vmul.f32 %v3396_v23, %v3396_v23  ;;  %v3599_v16 = vmul.f32 %v3397_v9, %v3397_v9  ;;  %v3703_v45 = vsel %vm3702_vm2, %v5227_v40, %v3701_v49  ;;  %v3216_v49 = vld [vmem:[#allocation3 + $0x118] sm:$0xff] }
 0x4af   : > { %v3534_v43 = vadd.f32 %v3533_v47, %v3460_v18  ;;  %vm5515_vm3 = vcmp.eq.s32.totalorder %v5514_v25, %v4925_v31  ;;  %v3600_v63 = vmul.f32 %v3398_v13, %v3398_v13  ;;  %vm3704_vm4 = vcmp.eq.f32.partialorder %v5227_v40, 0.0 }
 0x4b0   : > { %v3659_v41 = vadd.f32 %v3658_v50, %v3596_v36  ;;  %v3462_v54 = vsel %vm5515_vm3, %v3398_v13, 0.0  ;;  %v3400_v56 = vmul.f32 0.032258064, %v3336_v46  ;;  %v3273_v15 = vmul.f32 32.0, %v5320_v52 }
 0x4b1   : > { %v3274_v39 = vmul.f32 32.0, %v5329_v30  ;;  %v3275_v4 = vmul.f32 32.0, %v5338_v3  ;;  %v3601_v24 = vmul.f32 %v3399_v21, %v3399_v21  ;;  %v3705_v48 = vand.u32 2147483648, %v5227_v40 }
 0x4b2   : > { %v3660_v2 = vadd.f32 %v3659_v41, %v3597_v60  ;;  %v3276_v38 = vmul.f32 32.0, %v3138_v26  ;;  %v3337_v14 = vsub.f32 %v3209_v62, %v3273_v15  ;;  %v3277_v61 = vmul.f32 32.0, %v3142_v27 }
 0x4b3   : > { %v3338_v34 = vsub.f32 %v3210_v44, %v3274_v39  ;;  %v3278_v53 = vmul.f32 32.0, %v3144_v57  ;;  %v3706_v52 = vsel %vm3704_vm4, %v3705_v48, %v3703_v45  ;;  %v3339_v12 = vsub.f32 %v3211_v35, %v3275_v4  ;;  %v3215_v57 = vld [vmem:[#allocation3 + $0x1d0] sm:$0xff]  ;;  %v3767_v4 = vld [vmem:[#allocation6] sm:$0x3] }
 0x4b4   : > { %v3661_v22 = vadd.f32 %v3660_v2, %v3598_v5  ;;  %v3340_v30 = vsub.f32 %v3212_v28, %v3276_v38  ;;  %v3535_v3 = vadd.f32 %v3534_v43, %v3462_v54  ;;  %v3464_v23 = vsel %vm1756_vm12, %v3400_v56, 0.0  ;;  %v5520_v48 = vld [vmem:[#allocation17_spill] sm:$0xff] }
 0x4b5   : > { %v3402_v33 = vmul.f32 0.032258064, %v3338_v34  ;;  %v3342_v26 = vsub.f32 %v3214_v19, %v3278_v53  ;;  %vm3709_vm5 = vcmp.eq.f32.partialorder %v5353_v11, inf  ;;  %v3401_v17 = vmul.f32 0.032258064, %v3337_v14 }
 0x4b6   : > { %v3662_v8 = vadd.f32 %v3661_v22, %v3599_v16  ;;  %v3404_v1 = vmul.f32 0.032258064, %v3340_v30  ;;  %vm3711_vm6 = vcmp.eq.f32.partialorder %v5353_v11, 0.0  ;;  %v3730_v40 = vsub.f32 1.0, %v3706_v52 }
 0x4b7   : > { %v3466_v10 = vsel %vm1758_vm13, %v3402_v33, 0.0  ;;  %v3341_v55 = vsub.f32 %v3213_v42, %v3277_v61  ;;  %v3536_v27 = vadd.f32 %v3535_v3, %v3464_v23  ;;  %v3602_v59 = vmul.f32 %v3400_v56, %v3400_v56 }
 0x4b8   : > { %v3663_v58 = vadd.f32 %v3662_v8, %v3600_v63  ;;  %v3403_v9 = vmul.f32 0.032258064, %v3339_v12  ;;  %v3468_v36 = vsel %vm1760_vm14, %v3404_v1, 0.0  ;;  %v3406_v18 = vmul.f32 0.032258064, %v3342_v26 }
 0x4b9   : > { %v3279_v13 = vmul.f32 32.0, %v3148_v32  ;;  %v3280_v47 = vmul.f32 32.0, %v3150_v6  ;;  %v3712_v46 = vand.u32 2147483648, %v5353_v11  ;;  %v3603_v50 = vmul.f32 %v3401_v17, %v3401_v17 }
 0x4ba   : > { %v3664_v60 = vadd.f32 %v3663_v58, %v3601_v24  ;;  %v3537_v21 = vadd.f32 %v3536_v27, %v3466_v10  ;;  %v4098_v43 = vpop.eup %4097  ;;  %v3732_v5 = vmax.f32 %v3730_v40, 0.0  ;;  %v3405_v16 = vmul.f32 0.032258064, %v3341_v55 }
 0x4bb   : > { %v3470_v41 = vsel %vm1762_vm11, %v3406_v18, 0.0  ;;  %v3344_v25 = vsub.f32 %v3216_v49, %v3280_v47  ;;  %v3708_v63 = vmul.f32 %v4098_v43, %v5353_v11  ;;  %v3604_v62 = vmul.f32 %v3402_v33, %v3402_v33 }
 0x4bc   : > { %v3665_v54 = vadd.f32 %v3664_v60, %v3602_v59  ;;  %v3538_v44 = vadd.f32 %v3537_v21, %v3468_v36  ;;  %v3605_v35 = vmul.f32 %v3403_v9, %v3403_v9  ;;  %v3343_v56 = vsub.f32 %v3215_v57, %v3279_v13  ;;  %v5522_v13 = vld [vmem:[#allocation18_spill] sm:$0xff] }
 0x4bd   : > { %v3408_v15 = vmul.f32 0.032258064, %v3344_v25  ;;  %v3507_v39 = vadd.f32 %v3506_v51, %v5350_v20  ;;  %v3710_v28 = vsel %vm3709_vm5, %v5353_v11, %v3708_v63  ;;  %v3771_v38 = vsub.s32 0, %v5520_v48 }
 0x4be   : > { %v3666_v2 = vadd.f32 %v3665_v54, %v3603_v50  ;;  %v3539_v24 = vadd.f32 %v3538_v44, %v3470_v41  ;;  %v3713_v19 = vsel %vm3711_vm6, %v3712_v46, %v3710_v28  ;;  %v3606_v32 = vmul.f32 %v3404_v1, %v3404_v1 }
 0x4bf   : > { %v3472_v34 = vsel %vm1764_vm15, %v3408_v15, 0.0  ;;  %v3508_v61 = vrot.slane %v3507_v39, 1  ;;  %v3731_v53 = vsub.f32 1.0, %v3713_v19  ;;  %v3772_v22 = vrot.slane %v3767_v4, %v3771_v38 }
 0x4c0   : > { %v3667_v20 = vadd.f32 %v3666_v2, %v3604_v62  ;;  %v3540_v51 = vadd.f32 %v3539_v24, %v3472_v34  ;;  %vm2718_vm7 = vcmask 1040384   ;;  %v3607_v52 = vmul.f32 %v3405_v16, %v3405_v16 }
 0x4c1   : > { %v3509_v12 = vadd.f32 %v3508_v61, %v3507_v39  ;;  %v3775_v30 = vsub.s32 1, %v5520_v48  ;;  %v3733_v42 = vmax.f32 %v3731_v53, 0.0  ;;  %v3407_v37 = vmul.f32 0.032258064, %v3343_v56 }
 0x4c2   : > { %v3668_v3 = vadd.f32 %v3667_v20, %v3605_v35  ;;  %v3541_v11 = vrot.slane %v3540_v51, 4  ;;  %v3734_v23 = vsel %vm2718_vm7, %v3732_v5, 0.0  ;;  %v3608_v33 = vmul.f32 %v3406_v18, %v3406_v18 }
 0x4c3   : > { %v3714_v26 = vadd.f32 0.0001, %v3509_v12  ;;  %v3776_v31 = vrot.slane %v3767_v4, %v3775_v30  ;;  %v3735_v8 = vsel %vm2718_vm7, %v3733_v42, 0.0  ;;  %v3779_v6 = vsel %vm2718_vm7, %v3772_v22, 0.0 }
 0x4c4   : > { %v3669_v17 = vadd.f32 %v3668_v3, %v3606_v32  ;;  %v3542_v1 = vadd.f32 %v3541_v11, %v3540_v51  ;;  %v3736_v40 = vadd.f32 %v3735_v8, %v3734_v23  ;;  %v3609_v55 = vmul.f32 %v3407_v37, %v3407_v37 }
 0x4c5   : > { %v3780_v7 = vsel %vm2718_vm7, %v3776_v31, 0.0  ;;  %4099 = vrsqrt.f32 %v3714_v26  ;;  %v3610_v59 = vmul.f32 %v3408_v15, %v3408_v15  ;;  %v2717_v0 = vmul.f32 %v5332_v29, %v5332_v29 }
 0x4c6   : > { %v3670_v10 = vadd.f32 %v3669_v17, %v3607_v52  ;;  %v3543_v58 = vrot.slane %v3542_v1, 2  ;;  %3737 = vadd.xlane.f32.xlu0 %v3736_v40  ;;  %v3781_v27 = vadd.f32 %v3780_v7, %v3779_v6  ;;  %v2716_v47 = vmul.f32 %v5522_v13, %v5522_v13 }
 0x4c7   : > { %v2720_v50 = vsel %vm2718_vm7, %v2717_v0, 0.0  ;;  %v3683_v21 = vmul.f32 %v3509_v12, %v3509_v12  ;;  %vm3718_vm8 = vcmp.eq.f32.partialorder %v3714_v26, inf  ;;  %v3721_v62 = vand.u32 2147483648, %v3714_v26 }
 0x4c8   : > { %v3671_v9 = vadd.f32 %v3670_v10, %v3608_v33  ;;  %v3544_v49 = vadd.f32 %v3543_v58, %v3542_v1  ;;  %v2719_v5 = vsel %vm2718_vm7, %v2716_v47, 0.0  ;;  %vm3720_vm9 = vcmp.eq.f32.partialorder %v3714_v26, 0.0 }
 0x4c9   : > { %v2721_v16 = vadd.f32 %v2720_v50, %v2719_v5  ;;  %v3685_v29 = vsel %vm2718_vm7, %v3683_v21, 0.0 }
 0x4ca   : > { %v3672_v36 = vadd.f32 %v3671_v9, %v3609_v55  ;;  %v3545_v18 = vrot.slane %v3544_v49, 1  ;;  %3782 = vadd.xlane.f32.xlu0 %v3781_v27 }
 0x4cc   : > { %v3673_v60 = vadd.f32 %v3672_v36, %v3610_v59  ;;  %v3546_v46 = vadd.f32 %v3545_v18, %v3544_v49 }
 0x4ce   : > { %3674 = vadd.xlane.f32.xlu1 %v3673_v60  ;;  %v3684_v57 = vmul.f32 %v3546_v46, %v3546_v46  ;;  %v3715_v43 = vadd.f32 0.0001, %v3546_v46 }
 0x4d0   : > { %v3686_v45 = vsel %vm2718_vm7, %v3684_v57, 0.0  ;;  %4101 = vrsqrt.f32 %v3715_v43  ;;  %vm3725_vm10 = vcmp.eq.f32.partialorder %v3715_v43, inf  ;;  %v3728_v39 = vand.u32 2147483648, %v3715_v43 }
 0x4d1   : > { %v3687_v25 = vadd.f32 %v3686_v45, %v3685_v29  ;;  %vm3727_vm11 = vcmp.eq.f32.partialorder %v3715_v43, 0.0 }
 0x4d2   : > { %v4100_v41 = vpop.eup %4099  ;;  %2722 = vadd.xlane.f32.xlu1 %v2721_v16 }
 0x4d3   : > { %v3717_v54 = vmul.f32 %v4100_v41, %v3714_v26 }
 0x4d5   : > { %v3719_v63 = vsel %vm3718_vm8, %v3714_v26, %v3717_v54 }
 0x4d6   : > { %3688 = vadd.xlane.f32.xlu1 %v3687_v25  ;;  %v3722_v44 = vsel %vm3720_vm9, %v3721_v62, %v3719_v63 }
 0x4d7   : > { %v3746_v15 = vsub.f32 1.0, %v3722_v44 }
 0x4d9   : > { %v3748_v24 = vmax.f32 %v3746_v15, 0.0 }
 0x4db   : > { %v3750_v38 = vsel %vm2718_vm7, %v3748_v24, 0.0 }
 0x4dd   : > { %v4102_v35 = vpop.eup %4101 }
 0x4de   : > { %v3724_v56 = vmul.f32 %v4102_v35, %v3715_v43 }
 0x4e0   : > { %v3726_v4 = vsel %vm3725_vm10, %v3715_v43, %v3724_v56 }
 0x4e1   : > { %v3729_v28 = vsel %vm3727_vm11, %v3728_v39, %v3726_v4 }
 0x4e2   : > { %v3747_v2 = vsub.f32 1.0, %v3729_v28 }
 0x4e4   : > { %v3749_v48 = vmax.f32 %v3747_v2, 0.0 }
 0x4e6   : > { %v3751_v19 = vsel %vm2718_vm7, %v3749_v48, 0.0 }
 0x4e7   : > { %v3752_v32 = vadd.f32 %v3751_v19, %v3750_v38 }
 0x4e9   : > { %3753 = vadd.xlane.f32.xlu1 %v3752_v32 }
 0x51e   : > { %v2708_v14 = vpop.xlane.xlu0 %2707 }
 0x51f   : > { %v2709_v34 = vrot.slane %v2708_v14, 4 }
 0x521   : > { %v2710_v61 = vadd.f32 %v2709_v34, %v2708_v14 }
 0x523   : > { %v2711_v53 = vrot.slane %v2710_v61, 2 }
 0x525   : > { %v2712_v20 = vadd.f32 %v2711_v53, %v2710_v61 }
 0x527   : > { %v2713_v51 = vrot.slane %v2712_v20, 1 }
 0x529   : > { %v2714_v22 = vadd.f32 %v2713_v51, %v2712_v20 }
 0x52b   : > { %4026 = vpush %v2714_v22 }
 0x54f   : > { %v3738_v52 = vpop.xlane.xlu0 %3737 }
 0x550   : > { %v3739_v12 = vrot.slane %v3738_v52, 4 }
 0x552   : > { %v3740_v37 = vadd.f32 %v3739_v12, %v3738_v52 }
 0x553   : > { %v3783_v36 = vpop.xlane.xlu0 %3782 }
 0x554   : > { %v3741_v31 = vrot.slane %v3740_v37, 2  ;;  %v3784_v47 = vrot.slane %v3783_v36, 4 }
 0x556   : > { %v3742_v55 = vadd.f32 %v3741_v31, %v3740_v37  ;;  %v3785_v46 = vadd.f32 %v3784_v47, %v3783_v36 }
 0x557   : > { %v3675_v30 = vpop.xlane.xlu1 %3674 }
 0x558   : > { %v3676_v42 = vrot.slane %v3675_v30, 4  ;;  %v3743_v0 = vrot.slane %v3742_v55, 1  ;;  %v3786_v50 = vrot.slane %v3785_v46, 2 }
 0x55a   : > { %v3677_v3 = vadd.f32 %v3676_v42, %v3675_v30  ;;  %v3744_v60 = vadd.f32 %v3743_v0, %v3742_v55  ;;  %v3787_v5 = vadd.f32 %v3786_v50, %v3785_v46 }
 0x55b   : > { %v2723_v11 = vpop.xlane.xlu1 %2722 }
 0x55c   : > { %v3678_v23 = vrot.slane %v3677_v3, 2  ;;  %v2724_v33 = vrot.slane %v2723_v11, 4  ;;  %v3788_v29 = vrot.slane %v3787_v5, 1  ;;  %s4027_s18 = spop %4026 }
 0x55e   : > { %v2725_v26 = vadd.f32 %v2724_v33, %v2723_v11  ;;  %v3679_v17 = vadd.f32 %v3678_v23, %v3677_v3  ;;  %v3789_v54 = vadd.f32 %v3788_v29, %v3787_v5 }
 0x55f   : > { %v3689_v8 = vpop.xlane.xlu1 %3688 }
 0x560   : > { %v2726_v1 = vrot.slane %v2725_v26, 2  ;;  %v3690_v6 = vrot.slane %v3689_v8, 4  ;;  %v3680_v10 = vrot.slane %v3679_v17, 1 }
 0x562   : > { %v3691_v40 = vadd.f32 %v3690_v6, %v3689_v8  ;;  %v2727_v7 = vadd.f32 %v2726_v1, %v2725_v26  ;;  %v3681_v49 = vadd.f32 %v3680_v10, %v3679_v17 }
 0x564   : > { %v3692_v58 = vrot.slane %v3691_v40, 2  ;;  %v2728_v27 = vrot.slane %v2727_v7, 1 }
 0x566   : > { %v2729_v59 = vadd.f32 %v2728_v27, %v2727_v7  ;;  %v3693_v9 = vadd.f32 %v3692_v58, %v3691_v40 }
 0x568   : > { %4028 = vpush %v2729_v59  ;;  %v3694_v18 = vrot.slane %v3693_v9, 1 }
 0x569   : > { %4030 = vpush %v3681_v49 }
 0x56a   : > { %v3695_v13 = vadd.f32 %v3694_v18, %v3693_v9 }
 0x56c   : > { %4032 = vpush %v3695_v13 }
 0x56d   : > { %4034 = vpush %v3744_v60 }
 0x572   : > { %v3754_v21 = vpop.xlane.xlu1 %3753 }
 0x573   : > { %v3755_v57 = vrot.slane %v3754_v21, 4 }
 0x575   : > { %v3756_v43 = vadd.f32 %v3755_v57, %v3754_v21 }
 0x577   : > { %v3757_v16 = vrot.slane %v3756_v43, 2 }
 0x579   : > { %v3758_v45 = vadd.f32 %v3757_v16, %v3756_v43 }
 0x57b   : > { %v3759_v41 = vrot.slane %v3758_v45, 1 }
 0x57d   : > { %v3760_v25 = vadd.f32 %v3759_v41, %v3758_v45 }
 0x57f   : > { %4036 = vpush %v3760_v25 }
 0x580   : > { %4038 = vpush %v3789_v54 }
 0x599   : > { %s4029_s16 = spop %4028 }
 0x59a   : > { %s4031_s23 = spop %4030  ;;  %s2731_s25 = ssub.f32 %s4027_s18, %s4029_s16 }
 0x59d   : > { %s4033_s29 = spop %4032 }
 0x59e   : > { %s3697_s30 = ssub.f32 %s4031_s23, %s4033_s29  ;;  %s4035_s12 = spop %4034 }
 0x5a0   : > { %s3765_s24 = sadd.f32 %s3697_s30, %s2731_s25 }
 0x5a2   : > { %s3766_s26 = smul.f32 0.00390625, %s3765_s24 }
 0x5a4   : > { %3798 = sst [smem:[#allocation13 + $0x2]] %s3766_s26 }
 0x5b0   : > { %s4037_s28 = spop %4036 }
 0x5b1   : > { %s3762_s3 = sadd.f32 %s4037_s28, %s4035_s12  ;;  %s4039_s21 = spop %4038 }
 0x5b2   : > { %s3791_s4 = smul.f32 0.03125, %s4039_s21 }
 0x5b3   : > { %s3763_s20 = smul.f32 0.00390625, %s3762_s3 }
 0x5b4   : > { %s3792_s19 = smul.f32 0.00390625, %s3791_s4 }
 0x5b5   : > { %s3764_s5 = smul.f32 0.5, %s3763_s20 }
 0x5b6   : > { %3794 = sst [smem:[#allocation13]] %s3792_s19 }
 0x5b7   : > { %3796 = sst [smem:[#allocation13 + $0x1]] %s3764_s5 }
 0x5b8 PF: > { %p4056_p3 = scmp.eq.s32.totalorder %s4254_s13, 3  ;;  %s4219_s6 = smov [#allocation13]  }
 0x5ba   : > { %4045 = dma.smem_to_hbm (%p4056_p3), %s4219_s6, 16, %s5443_s2, [#allocation10]  }
 0x5bb   : > { %4194 = dma.done.wait (%p4056_p3), [#allocation10], 16  }
 0x5bc   : > { %4196 = vsyncadd (%p4056_p3), [#allocation10], 4294967280 }
 0x5bd   : > { %3812 = sfence }
 0x5be PF: > { %p16_p5 = scmp.ge.s32.totalorder %s4257_s14, 6   ;;  %s5523_s9 = smov %s4203_s10 }
 0x5bf   : > { %s5524_s10 = smov %s4207_s11  ;;  %s5525_s11 = smov %s4267_s17 }
 0x5c0   : > { %s5526_s12 = smov %s4257_s14  ;;  %18 = sbr.rel (!%p16_p5) target bundleno = 6 (0x6), region = 89 }
 0x5c5   :  { %3818 = vsyncpa [#allocation9], 1 }
 0x5c6   :  { %3820 = vsyncpa [#allocation9 + $0x1], 1 }
 0x5c7   :  { %3821 = vsyncpa [#allocation12], 1 }
 0x5c8   :  { %3823 = vsyncpa [#allocation12 + $0x1], 1 }
 0x5c9   :  { %3824 = vsyncpa [#allocation10], 1 }
 0x5ca   :  { %3826 = vsyncpa [#allocation10 + $0x1], 1 }

</bundles_post_ra>
